<compile_context>
chip_gen: v7x
topology: tpu7x:2x2x1
jax: 0.10.0
libtpu: 0.0.40
codegen_flags: <defaults>
</compile_context>

<pallas_src>
import functools

import numpy as np
import jax
import jax.numpy as jnp
from jax.experimental import pallas as pl

# ------------------------------ static configuration ---------------------------
D_MODEL = 32
N_HEAD = 4
D_HEAD = 8            # N_HEAD * D_HEAD == D_MODEL
D_INNER = 64
LN_EPS = 1e-12
B = 2
H = 4
W = 4
POOL = 8              # number of semantic (pooling) tokens
SEQ = H * W
N = SEQ + POOL        # total token count per batch element
HO, WO = H // 2, W // 2

_BF16 = jnp.bfloat16


def _mm(a, b):
    """MXU matmul with bf16 operands and f32 accumulation."""
    return jnp.dot(a.astype(_BF16), b.astype(_BF16),
                   preferred_element_type=jnp.float32)


def _layer_norm(x, g, b, eps):
    mu = jnp.mean(x, axis=-1, keepdims=True)
    var = jnp.mean((x - mu) ** 2, axis=-1, keepdims=True)
    return (x - mu) * jax.lax.rsqrt(var + eps) * g + b


# ----------------------------- static constant builders ------------------------
def generate_bias_map(h, w, nhead, eps=1e-10):
    """JAX port of EuclideanTransformerRelativeAttention.generate_bias_map."""
    hc = jnp.broadcast_to(jnp.arange(h, dtype=jnp.float32).reshape(h, 1), (h, w))
    wc = jnp.broadcast_to(jnp.arange(w, dtype=jnp.float32).reshape(1, w), (h, w))
    s = h * w
    hv = hc.reshape(s, 1) - hc.reshape(1, s)
    wv = wc.reshape(s, 1) - wc.reshape(1, s)
    vec = jnp.stack([hv, wv], axis=0)                         # (2, S, S)
    norm = jnp.sqrt(jnp.sum(vec ** 2, axis=(-2, -1), keepdims=True))
    vec = (vec + eps) / (norm + eps)
    vec = jnp.concatenate([jnp.maximum(vec, 0.0), jnp.maximum(-vec, 0.0)], axis=0)

    hcf = hc.reshape(s, 1)
    wcf = wc.reshape(s, 1)
    h2 = hcf ** 2 + (hcf.T) ** 2 - 2.0 * (hcf @ hcf.T)
    w2 = wcf ** 2 + (wcf.T) ** 2 - 2.0 * (wcf @ wcf.T)
    all_dist = jnp.sqrt(h2 + w2)
    m = jnp.exp2(-jnp.arange(1, nhead + 1, dtype=jnp.float32).reshape(nhead, 1, 1)
                 * 8.0 / nhead)
    bias_map = all_dist.reshape(1, s, s) * m                  # (nhead, S, S)
    return bias_map, vec


def build_mask():
    mask = jnp.ones((N, N), jnp.float32)
    mask = mask.at[SEQ:, :].set(0.0)
    mask = mask.at[:, SEQ:].set(0.0)
    mask = mask.at[SEQ:, SEQ:].set(jnp.eye(POOL, dtype=jnp.float32))
    mask = mask.at[SEQ:, :SEQ].set(1.0)
    return mask


def build_gather_matrix():
    """Constant 0/1 matrices selecting the 2x2/stride-2 conv taps from the token slab.

    gsel[t, p, r] == 1 iff output patch p (batch-major, row-major Ho x Wo) takes its
    tap t = dy*2+dx from token row r = b*N + (2*ho+dy)*W + (2*wo+dx).
    """
    g = np.zeros((4, B * HO * WO, B * N), np.float32)
    for t, (dy, dx) in enumerate(((0, 0), (0, 1), (1, 0), (1, 1))):
        for b in range(B):
            for ho in range(HO):
                for wo in range(WO):
                    p = b * HO * WO + ho * WO + wo
                    src = b * N + (2 * ho + dy) * W + (2 * wo + dx)
                    g[t, p, src] = 1.0
    return jnp.asarray(g)


def build_constants():
    """All shape-only constants, computed once at setup (hoisted out of the call path)."""
    mask = build_mask()
    m_bias, vec_dir = generate_bias_map(H, W, N_HEAD)
    mbias_ = jnp.zeros((N_HEAD, N, N), jnp.float32).at[:, :SEQ, :SEQ].set(m_bias)
    vdir_ = (jnp.ones((4, N, N), jnp.float32) / 4.0).at[:, :SEQ, :SEQ].set(vec_dir)
    return {"mask": mask, "mbias": mbias_, "vdir": vdir_, "gsel": build_gather_matrix()}


# ------------------- fused Pallas kernel: attention + FF + conv -----------------
def euct_layer_kernel(h_ref, mask_ref, mbias_ref, vdir_ref, gsel_ref,
                      wq_ref, wk_ref, wv_ref, wo_ref,
                      ln1g_ref, ln1b_ref,
                      w1_ref, b1_ref, w2_ref, b2_ref,
                      ln2g_ref, ln2b_ref,
                      convw_ref, convb_ref,
                      out_ref, pix_ref):
    hh = h_ref[...]                          # (B*N, D) f32, batch folded
    mask = mask_ref[...]                     # (N, N)
    neg = (1.0 - mask) * 1e30                # masking stays in f32, never cast to bf16

    # ---- full-width projections: one MXU matmul each for Q, K, V (all heads) ----
    q_all = _mm(hh, wq_ref[...])             # (B*N, NH*DH) = (48, 32)
    k_all = _mm(hh, wk_ref[...])             # (48, 32)
    v_all = _mm(hh, wv_ref[...])             # (B*N, 4*NH*DH) = (48, 128)

    red_rows = []
    for b in range(B):
        r0 = b * N
        qb = q_all[r0:r0 + N]                # (N, 32)
        kbt = k_all[r0:r0 + N].T             # (32, N): one transpose per batch
        vb = v_all[r0:r0 + N]                # (N, 128)
        head_reds = []
        for n in range(N_HEAD):
            qn = qb[:, n * D_HEAD:(n + 1) * D_HEAD]          # (N, dH)
            ktn = kbt[n * D_HEAD:(n + 1) * D_HEAD, :]        # (dH, N)
            s = _mm(qn, ktn)                                 # (N, N) content scores

            # masked log_softmax -> softmax (torch semantics), all in f32
            a1 = s - mbias_ref[n] - neg
            m1 = jnp.max(a1, axis=-1, keepdims=True)
            lse = jnp.log(jnp.sum(jnp.exp(a1 - m1), axis=-1, keepdims=True)) + m1
            a2 = a1 - lse - neg
            m2 = jnp.max(a2, axis=-1, keepdims=True)
            e2 = jnp.exp(a2 - m2)
            na = e2 * pl.reciprocal(jnp.sum(e2, axis=-1, keepdims=True), approx=True)

            # 4-direction reduce as a single K=4N matmul per head
            wdir = jnp.concatenate([na * vdir_ref[k] for k in range(4)], axis=1)  # (N, 4N)
            vstk = jnp.concatenate(
                [vb[:, (k * N_HEAD + n) * D_HEAD:(k * N_HEAD + n + 1) * D_HEAD]
                 for k in range(4)], axis=0)                                      # (4N, dH)
            head_reds.append(_mm(wdir, vstk))                                     # (N, dH)
        red_rows.append(jnp.concatenate(head_reds, axis=1))                       # (N, 32)
    red_all = jnp.concatenate(red_rows, axis=0)                                   # (B*N, 32)

    # single whole-width output projection + residual + LayerNorm
    attn = _mm(red_all, wo_ref[...])                                              # (B*N, D)
    h1 = _layer_norm(attn + hh, ln1g_ref[...], ln1b_ref[...], LN_EPS)

    # feed-forward (gelu_new) + residual + LayerNorm
    ff = _mm(h1, w1_ref[...]) + b1_ref[...]
    ff = jax.nn.gelu(ff, approximate=True)
    ff = _mm(ff, w2_ref[...]) + b2_ref[...]
    out = _layer_norm(ff + h1, ln2g_ref[...], ln2b_ref[...], LN_EPS)              # (B*N, D)
    out_ref[...] = out

    # ---- fused 2x2/stride-2 down-sampling conv epilogue ----
    # patch gather via constant 0/1 selection matmuls, then one lane-dense
    # (B*Ho*Wo, 4D) @ (4D, D) matmul.
    patches = jnp.concatenate([_mm(gsel_ref[t], out) for t in range(4)], axis=1)  # (8, 128)
    pix_ref[...] = _mm(patches, convw_ref[...]) + convb_ref[...]                  # (8, D)


def run_fused_layer(h2, consts, params):
    out_shapes = (
        jax.ShapeDtypeStruct((B * N, D_MODEL), jnp.float32),          # token output
        jax.ShapeDtypeStruct((B * HO * WO, D_MODEL), jnp.float32),    # conv output
    )
    return pl.pallas_call(
        euct_layer_kernel,
        out_shape=out_shapes,
    )(h2, consts["mask"], consts["mbias"], consts["vdir"], consts["gsel"],
      params["wq2"], params["wk2"], params["wv2"], params["wo2"],
      params["ln1_g"], params["ln1_b"],
      params["w1"], params["b1"], params["w2"], params["b2"],
      params["ln2_g"], params["ln2_b"],
      params["conv_w2d"], params["conv_b2d"])


# ------------------------------------ full layer --------------------------------
@functools.partial(jax.jit, static_argnames=("down_sampling",))
def euclidean_transformer_layer(pixel_embeddings, semantic_embeddings, params, consts,
                                down_sampling=True):
    Bc, Hc, Wc, Dc = pixel_embeddings.shape
    seq_len = Hc * Wc
    h_cat = jnp.concatenate(
        [pixel_embeddings.reshape(Bc, seq_len, Dc), semantic_embeddings], axis=1)
    h2 = h_cat.reshape(Bc * (seq_len + semantic_embeddings.shape[1]), Dc)

    out2, conv2 = run_fused_layer(h2, consts, params)

    out = out2.reshape(Bc, seq_len + POOL, Dc)
    sem = out[:, seq_len:, :]
    if down_sampling:
        pix = conv2.reshape(Bc, Hc // 2, Wc // 2, Dc)
    else:
        pix = out[:, :seq_len, :].reshape(Bc, Hc, Wc, Dc)
    return pix, sem


# ----------------------------- pure-JAX reference check -------------------------
def reference_layer(pixel_embeddings, semantic_embeddings, params):
    Bc, Hc, Wc, Dc = pixel_embeddings.shape
    seq_len = Hc * Wc
    h = jnp.concatenate(
        [pixel_embeddings.reshape(Bc, seq_len, Dc), semantic_embeddings], axis=1)
    mask = build_mask()
    m_bias, vec_dir = generate_bias_map(Hc, Wc, N_HEAD)
    mbias_ = jnp.zeros((N_HEAD, N, N), jnp.float32).at[:, :seq_len, :seq_len].set(m_bias)
    vdir_ = (jnp.ones((4, N, N), jnp.float32) / 4.0).at[:, :seq_len, :seq_len].set(vec_dir)

    q3 = params["wq2"].reshape(D_MODEL, N_HEAD, D_HEAD)
    k3 = params["wk2"].reshape(D_MODEL, N_HEAD, D_HEAD)
    v4 = params["wv2"].reshape(D_MODEL, 4, N_HEAD, D_HEAD)
    o3 = jnp.transpose(params["wo2"].reshape(N_HEAD, D_HEAD, D_MODEL), (2, 0, 1))

    qh = jnp.einsum("bih,hnd->bind", h, q3)
    kh = jnp.einsum("bih,hnd->bind", h, k3)
    vh = jnp.einsum("bih,hknd->biknd", h, v4)
    ci = jnp.einsum("bind,bjnd->bnij", qh, kh)
    neg = (1.0 - mask) * 1e30
    alpha = ci - mbias_
    alpha = jax.nn.log_softmax(alpha - neg, axis=-1) - neg
    na = jax.nn.softmax(alpha, axis=-1)
    nasa = jnp.einsum("kij,bnij->bknij", vdir_, na)
    red = jnp.einsum("bknij,bjknd->bind", nasa, vh)
    tr = jnp.einsum("bind,hnd->bih", red, o3)
    h_comp = _layer_norm(tr + h, params["ln1_g"], params["ln1_b"], LN_EPS)

    ff = jax.nn.gelu(h_comp @ params["w1"] + params["b1"], approximate=True)
    ff = ff @ params["w2"] + params["b2"]
    h_comp = _layer_norm(ff + h_comp, params["ln2_g"], params["ln2_b"], LN_EPS)

    pix = h_comp[:, :seq_len, :].reshape(Bc, Hc, Wc, Dc)
    sem = h_comp[:, seq_len:, :]
    pix = jax.lax.conv_general_dilated(
        pix, params["conv_w"], window_strides=(2, 2), padding="VALID",
        dimension_numbers=("NHWC", "HWIO", "NHWC")) + params["conv_b"]
    return pix, sem


# --------------------------------------- main ------------------------------------
def init_params(key):
    ks = jax.random.split(key, 8)
    scale = 0.02
    q = scale * jax.random.normal(ks[0], (D_MODEL, N_HEAD, D_HEAD), jnp.float32)
    k = scale * jax.random.normal(ks[1], (D_MODEL, N_HEAD, D_HEAD), jnp.float32)
    v = scale * jax.random.normal(ks[2], (D_MODEL, 4, N_HEAD, D_HEAD), jnp.float32)
    o = scale * jax.random.normal(ks[3], (D_MODEL, N_HEAD, D_HEAD), jnp.float32)
    conv_w = scale * jax.random.normal(ks[6], (2, 2, D_MODEL, D_MODEL), jnp.float32)
    conv_b = jnp.zeros((D_MODEL,), jnp.float32)
    return {
        "wq2": q.reshape(D_MODEL, N_HEAD * D_HEAD),
        "wk2": k.reshape(D_MODEL, N_HEAD * D_HEAD),
        "wv2": v.reshape(D_MODEL, 4 * N_HEAD * D_HEAD),
        "wo2": jnp.transpose(o, (1, 2, 0)).reshape(N_HEAD * D_HEAD, D_MODEL),
        "ln1_g": jnp.ones((1, D_MODEL), jnp.float32),
        "ln1_b": jnp.zeros((1, D_MODEL), jnp.float32),
        "w1": scale * jax.random.normal(ks[4], (D_MODEL, D_INNER), jnp.float32),
        "b1": jnp.zeros((1, D_INNER), jnp.float32),
        "w2": scale * jax.random.normal(ks[5], (D_INNER, D_MODEL), jnp.float32),
        "b2": jnp.zeros((1, D_MODEL), jnp.float32),
        "ln2_g": jnp.ones((1, D_MODEL), jnp.float32),
        "ln2_b": jnp.zeros((1, D_MODEL), jnp.float32),
        # Conv2d weights stored HWIO (kh, kw, cin, cout) + kernel-ready flat forms
        "conv_w": conv_w,
        "conv_b": conv_b,
        "conv_w2d": conv_w.reshape(4 * D_MODEL, D_MODEL),   # rows = (dy, dx, cin)
        "conv_b2d": conv_b.reshape(1, D_MODEL),
    }


if __name__ == "__main__":
    key = jax.random.PRNGKey(0)
    kp, ks, kw = jax.random.split(key, 3)
    pixel = jax.random.normal(kp, (B, H, W, D_MODEL), jnp.float32)
    semantic = jax.random.normal(ks, (B, POOL, D_MODEL), jnp.float32)
    params = init_params(kw)
    consts = build_constants()     # shape-only constants, built once (hoisted)

    pix_out, sem_out = euclidean_transformer_layer(
        pixel, semantic, params, consts, down_sampling=True)
    pix_out = jax.block_until_ready(pix_out)
    sem_out = jax.block_until_ready(sem_out)

    # sanity check against a pure-JAX f32 reference of the same forward pass
    pix_ref, sem_ref = reference_layer(pixel, semantic, params)
    assert pix_out.shape == (B, H // 2, W // 2, D_MODEL)
    assert sem_out.shape == (B, POOL, D_MODEL)
    assert jnp.all(jnp.isfinite(pix_out)) and jnp.all(jnp.isfinite(sem_out))
    assert jnp.allclose(pix_out, pix_ref, atol=2e-2, rtol=2e-2)
    assert jnp.allclose(sem_out, sem_ref, atol=2e-2, rtol=2e-2)

    print("KERNEL_OK")
</pallas_src>

<mosaic_0001>
module attributes {stable_mosaic.version = 11 : i64} {
  func.func @euct_layer_kernel(%arg0: memref<48x32xf32, #tpu.memory_space<vmem>>, %arg1: memref<24x24xf32, #tpu.memory_space<vmem>>, %arg2: memref<4x24x24xf32, #tpu.memory_space<vmem>>, %arg3: memref<4x24x24xf32, #tpu.memory_space<vmem>>, %arg4: memref<4x8x48xf32, #tpu.memory_space<vmem>>, %arg5: memref<32x32xf32, #tpu.memory_space<vmem>>, %arg6: memref<32x32xf32, #tpu.memory_space<vmem>>, %arg7: memref<32x128xf32, #tpu.memory_space<vmem>>, %arg8: memref<32x32xf32, #tpu.memory_space<vmem>>, %arg9: memref<1x32xf32, #tpu.memory_space<vmem>>, %arg10: memref<1x32xf32, #tpu.memory_space<vmem>>, %arg11: memref<32x64xf32, #tpu.memory_space<vmem>>, %arg12: memref<1x64xf32, #tpu.memory_space<vmem>>, %arg13: memref<64x32xf32, #tpu.memory_space<vmem>>, %arg14: memref<1x32xf32, #tpu.memory_space<vmem>>, %arg15: memref<1x32xf32, #tpu.memory_space<vmem>>, %arg16: memref<1x32xf32, #tpu.memory_space<vmem>>, %arg17: memref<128x32xf32, #tpu.memory_space<vmem>>, %arg18: memref<1x32xf32, #tpu.memory_space<vmem>>, %arg19: memref<48x32xf32, #tpu.memory_space<vmem>>, %arg20: memref<8x32xf32, #tpu.memory_space<vmem>>) attributes {dimension_semantics = [], scalar_prefetch = 0 : i64, scratch_operands = 0 : i64, tpu.core_type = #tpu.core_type<tc>} {
    %c0 = arith.constant 0 : index
    %c0_0 = arith.constant 0 : index
    %0 = vector.load %arg0[%c0, %c0_0] : memref<48x32xf32, #tpu.memory_space<vmem>>, vector<48x32xf32>
    %c0_1 = arith.constant 0 : index
    %c0_2 = arith.constant 0 : index
    %1 = vector.load %arg1[%c0_1, %c0_2] : memref<24x24xf32, #tpu.memory_space<vmem>>, vector<24x24xf32>
    %cst = arith.constant 1.000000e+00 : f32
    %2 = vector.broadcast %cst : f32 to vector<24x24xf32>
    %3 = arith.subf %2, %1 : vector<24x24xf32>
    %cst_3 = arith.constant 1.000000e+30 : f32
    %4 = vector.broadcast %cst_3 : f32 to vector<24x24xf32>
    %5 = arith.mulf %3, %4 : vector<24x24xf32>
    %c0_4 = arith.constant 0 : index
    %c0_5 = arith.constant 0 : index
    %6 = vector.load %arg5[%c0_4, %c0_5] : memref<32x32xf32, #tpu.memory_space<vmem>>, vector<32x32xf32>
    %7 = arith.truncf %0 : vector<48x32xf32> to vector<48x32xbf16>
    %8 = arith.truncf %6 : vector<32x32xf32> to vector<32x32xbf16>
    %cst_6 = arith.constant dense<0.000000e+00> : vector<48x32xf32>
    %9 = tpu.matmul %7, %8, %cst_6 {dimension_numbers = #tpu.dot_dimension_numbers<[1], [0], [0], [1], [0, 0, 1, 1], [], []>} : vector<48x32xbf16>, vector<32x32xbf16>, vector<48x32xf32> -> vector<48x32xf32>
    %c0_7 = arith.constant 0 : index
    %c0_8 = arith.constant 0 : index
    %10 = vector.load %arg6[%c0_7, %c0_8] : memref<32x32xf32, #tpu.memory_space<vmem>>, vector<32x32xf32>
    %11 = arith.truncf %0 : vector<48x32xf32> to vector<48x32xbf16>
    %12 = arith.truncf %10 : vector<32x32xf32> to vector<32x32xbf16>
    %cst_9 = arith.constant dense<0.000000e+00> : vector<48x32xf32>
    %13 = tpu.matmul %11, %12, %cst_9 {dimension_numbers = #tpu.dot_dimension_numbers<[1], [0], [0], [1], [0, 0, 1, 1], [], []>} : vector<48x32xbf16>, vector<32x32xbf16>, vector<48x32xf32> -> vector<48x32xf32>
    %c0_10 = arith.constant 0 : index
    %c0_11 = arith.constant 0 : index
    %14 = vector.load %arg7[%c0_10, %c0_11] : memref<32x128xf32, #tpu.memory_space<vmem>>, vector<32x128xf32>
    %15 = arith.truncf %0 : vector<48x32xf32> to vector<48x32xbf16>
    %16 = arith.truncf %14 : vector<32x128xf32> to vector<32x128xbf16>
    %cst_12 = arith.constant dense<0.000000e+00> : vector<48x128xf32>
    %17 = tpu.matmul %15, %16, %cst_12 {dimension_numbers = #tpu.dot_dimension_numbers<[1], [0], [0], [1], [0, 0, 1, 1], [], []>} : vector<48x32xbf16>, vector<32x128xbf16>, vector<48x128xf32> -> vector<48x128xf32>
    %18 = vector.extract_strided_slice %9 {offsets = [0, 0], sizes = [24, 32], strides = [1, 1]} : vector<48x32xf32> to vector<24x32xf32>
    %19 = vector.extract_strided_slice %13 {offsets = [0, 0], sizes = [24, 32], strides = [1, 1]} : vector<48x32xf32> to vector<24x32xf32>
    %20 = tpu.transpose %19, [1, 0] : vector<24x32xf32> -> vector<32x24xf32>
    %21 = vector.extract_strided_slice %17 {offsets = [0, 0], sizes = [24, 128], strides = [1, 1]} : vector<48x128xf32> to vector<24x128xf32>
    %22 = vector.extract_strided_slice %18 {offsets = [0, 0], sizes = [24, 8], strides = [1, 1]} : vector<24x32xf32> to vector<24x8xf32>
    %23 = vector.extract_strided_slice %20 {offsets = [0, 0], sizes = [8, 24], strides = [1, 1]} : vector<32x24xf32> to vector<8x24xf32>
    %24 = arith.truncf %22 : vector<24x8xf32> to vector<24x8xbf16>
    %25 = arith.truncf %23 : vector<8x24xf32> to vector<8x24xbf16>
    %cst_13 = arith.constant dense<0.000000e+00> : vector<24x24xf32>
    %26 = tpu.matmul %24, %25, %cst_13 {dimension_numbers = #tpu.dot_dimension_numbers<[1], [0], [0], [1], [0, 0, 1, 1], [], []>} : vector<24x8xbf16>, vector<8x24xbf16>, vector<24x24xf32> -> vector<24x24xf32>
    %c0_14 = arith.constant 0 : index
    %c0_15 = arith.constant 0 : index
    %c0_16 = arith.constant 0 : index
    %27 = vector.load %arg2[%c0_14, %c0_15, %c0_16] : memref<4x24x24xf32, #tpu.memory_space<vmem>>, vector<1x24x24xf32>
    %28 = vector.shape_cast %27 : vector<1x24x24xf32> to vector<24x24xf32>
    %29 = arith.subf %26, %28 : vector<24x24xf32>
    %30 = arith.subf %29, %5 : vector<24x24xf32>
    %cst_17 = arith.constant dense<0xFF800000> : vector<24xf32>
    %31 = vector.multi_reduction <maximumf>, %30, %cst_17 [1] : vector<24x24xf32> to vector<24xf32>
    %32 = vector.shape_cast %31 : vector<24xf32> to vector<24x1xf32>
    %33 = vector.broadcast %32 : vector<24x1xf32> to vector<24x24xf32>
    %34 = arith.subf %30, %33 : vector<24x24xf32>
    %35 = math.exp %34 : vector<24x24xf32>
    %cst_18 = arith.constant dense<0.000000e+00> : vector<24xf32>
    %36 = vector.multi_reduction <add>, %35, %cst_18 [1] : vector<24x24xf32> to vector<24xf32>
    %37 = vector.shape_cast %36 : vector<24xf32> to vector<24x1xf32>
    %38 = math.log %37 : vector<24x1xf32>
    %39 = arith.addf %38, %32 : vector<24x1xf32>
    %40 = vector.broadcast %39 : vector<24x1xf32> to vector<24x24xf32>
    %41 = arith.subf %30, %40 : vector<24x24xf32>
    %42 = arith.subf %41, %5 : vector<24x24xf32>
    %cst_19 = arith.constant dense<0xFF800000> : vector<24xf32>
    %43 = vector.multi_reduction <maximumf>, %42, %cst_19 [1] : vector<24x24xf32> to vector<24xf32>
    %44 = vector.shape_cast %43 : vector<24xf32> to vector<24x1xf32>
    %45 = vector.broadcast %44 : vector<24x1xf32> to vector<24x24xf32>
    %46 = arith.subf %42, %45 : vector<24x24xf32>
    %47 = math.exp %46 : vector<24x24xf32>
    %cst_20 = arith.constant dense<0.000000e+00> : vector<24xf32>
    %48 = vector.multi_reduction <add>, %47, %cst_20 [1] : vector<24x24xf32> to vector<24xf32>
    %49 = vector.shape_cast %48 : vector<24xf32> to vector<24x1xf32>
    %50 = tpu.reciprocal %49 {approx = true} : vector<24x1xf32> -> vector<24x1xf32>
    %51 = vector.broadcast %50 : vector<24x1xf32> to vector<24x24xf32>
    %52 = arith.mulf %47, %51 : vector<24x24xf32>
    %c0_21 = arith.constant 0 : index
    %c0_22 = arith.constant 0 : index
    %c0_23 = arith.constant 0 : index
    %53 = vector.load %arg3[%c0_21, %c0_22, %c0_23] : memref<4x24x24xf32, #tpu.memory_space<vmem>>, vector<1x24x24xf32>
    %54 = vector.shape_cast %53 : vector<1x24x24xf32> to vector<24x24xf32>
    %55 = arith.mulf %52, %54 : vector<24x24xf32>
    %c1 = arith.constant 1 : index
    %c0_24 = arith.constant 0 : index
    %c0_25 = arith.constant 0 : index
    %56 = vector.load %arg3[%c1, %c0_24, %c0_25] : memref<4x24x24xf32, #tpu.memory_space<vmem>>, vector<1x24x24xf32>
    %57 = vector.shape_cast %56 : vector<1x24x24xf32> to vector<24x24xf32>
    %58 = arith.mulf %52, %57 : vector<24x24xf32>
    %c2 = arith.constant 2 : index
    %c0_26 = arith.constant 0 : index
    %c0_27 = arith.constant 0 : index
    %59 = vector.load %arg3[%c2, %c0_26, %c0_27] : memref<4x24x24xf32, #tpu.memory_space<vmem>>, vector<1x24x24xf32>
    %60 = vector.shape_cast %59 : vector<1x24x24xf32> to vector<24x24xf32>
    %61 = arith.mulf %52, %60 : vector<24x24xf32>
    %c3 = arith.constant 3 : index
    %c0_28 = arith.constant 0 : index
    %c0_29 = arith.constant 0 : index
    %62 = vector.load %arg3[%c3, %c0_28, %c0_29] : memref<4x24x24xf32, #tpu.memory_space<vmem>>, vector<1x24x24xf32>
    %63 = vector.shape_cast %62 : vector<1x24x24xf32> to vector<24x24xf32>
    %64 = arith.mulf %52, %63 : vector<24x24xf32>
    %65 = tpu.concatenate %55, %58, %61, %64 in 1 : vector<24x24xf32>, vector<24x24xf32>, vector<24x24xf32>, vector<24x24xf32> -> vector<24x96xf32>
    %66 = vector.extract_strided_slice %21 {offsets = [0, 0], sizes = [24, 8], strides = [1, 1]} : vector<24x128xf32> to vector<24x8xf32>
    %67 = vector.extract_strided_slice %21 {offsets = [0, 32], sizes = [24, 8], strides = [1, 1]} : vector<24x128xf32> to vector<24x8xf32>
    %68 = vector.extract_strided_slice %21 {offsets = [0, 64], sizes = [24, 8], strides = [1, 1]} : vector<24x128xf32> to vector<24x8xf32>
    %69 = vector.extract_strided_slice %21 {offsets = [0, 96], sizes = [24, 8], strides = [1, 1]} : vector<24x128xf32> to vector<24x8xf32>
    %70 = tpu.concatenate %66, %67, %68, %69 in 0 : vector<24x8xf32>, vector<24x8xf32>, vector<24x8xf32>, vector<24x8xf32> -> vector<96x8xf32>
    %71 = arith.truncf %65 : vector<24x96xf32> to vector<24x96xbf16>
    %72 = arith.truncf %70 : vector<96x8xf32> to vector<96x8xbf16>
    %cst_30 = arith.constant dense<0.000000e+00> : vector<24x8xf32>
    %73 = tpu.matmul %71, %72, %cst_30 {dimension_numbers = #tpu.dot_dimension_numbers<[1], [0], [0], [1], [0, 0, 1, 1], [], []>} : vector<24x96xbf16>, vector<96x8xbf16>, vector<24x8xf32> -> vector<24x8xf32>
    %74 = vector.extract_strided_slice %18 {offsets = [0, 8], sizes = [24, 8], strides = [1, 1]} : vector<24x32xf32> to vector<24x8xf32>
    %75 = vector.extract_strided_slice %20 {offsets = [8, 0], sizes = [8, 24], strides = [1, 1]} : vector<32x24xf32> to vector<8x24xf32>
    %76 = arith.truncf %74 : vector<24x8xf32> to vector<24x8xbf16>
    %77 = arith.truncf %75 : vector<8x24xf32> to vector<8x24xbf16>
    %cst_31 = arith.constant dense<0.000000e+00> : vector<24x24xf32>
    %78 = tpu.matmul %76, %77, %cst_31 {dimension_numbers = #tpu.dot_dimension_numbers<[1], [0], [0], [1], [0, 0, 1, 1], [], []>} : vector<24x8xbf16>, vector<8x24xbf16>, vector<24x24xf32> -> vector<24x24xf32>
    %c1_32 = arith.constant 1 : index
    %c0_33 = arith.constant 0 : index
    %c0_34 = arith.constant 0 : index
    %79 = vector.load %arg2[%c1_32, %c0_33, %c0_34] : memref<4x24x24xf32, #tpu.memory_space<vmem>>, vector<1x24x24xf32>
    %80 = vector.shape_cast %79 : vector<1x24x24xf32> to vector<24x24xf32>
    %81 = arith.subf %78, %80 : vector<24x24xf32>
    %82 = arith.subf %81, %5 : vector<24x24xf32>
    %cst_35 = arith.constant dense<0xFF800000> : vector<24xf32>
    %83 = vector.multi_reduction <maximumf>, %82, %cst_35 [1] : vector<24x24xf32> to vector<24xf32>
    %84 = vector.shape_cast %83 : vector<24xf32> to vector<24x1xf32>
    %85 = vector.broadcast %84 : vector<24x1xf32> to vector<24x24xf32>
    %86 = arith.subf %82, %85 : vector<24x24xf32>
    %87 = math.exp %86 : vector<24x24xf32>
    %cst_36 = arith.constant dense<0.000000e+00> : vector<24xf32>
    %88 = vector.multi_reduction <add>, %87, %cst_36 [1] : vector<24x24xf32> to vector<24xf32>
    %89 = vector.shape_cast %88 : vector<24xf32> to vector<24x1xf32>
    %90 = math.log %89 : vector<24x1xf32>
    %91 = arith.addf %90, %84 : vector<24x1xf32>
    %92 = vector.broadcast %91 : vector<24x1xf32> to vector<24x24xf32>
    %93 = arith.subf %82, %92 : vector<24x24xf32>
    %94 = arith.subf %93, %5 : vector<24x24xf32>
    %cst_37 = arith.constant dense<0xFF800000> : vector<24xf32>
    %95 = vector.multi_reduction <maximumf>, %94, %cst_37 [1] : vector<24x24xf32> to vector<24xf32>
    %96 = vector.shape_cast %95 : vector<24xf32> to vector<24x1xf32>
    %97 = vector.broadcast %96 : vector<24x1xf32> to vector<24x24xf32>
    %98 = arith.subf %94, %97 : vector<24x24xf32>
    %99 = math.exp %98 : vector<24x24xf32>
    %cst_38 = arith.constant dense<0.000000e+00> : vector<24xf32>
    %100 = vector.multi_reduction <add>, %99, %cst_38 [1] : vector<24x24xf32> to vector<24xf32>
    %101 = vector.shape_cast %100 : vector<24xf32> to vector<24x1xf32>
    %102 = tpu.reciprocal %101 {approx = true} : vector<24x1xf32> -> vector<24x1xf32>
    %103 = vector.broadcast %102 : vector<24x1xf32> to vector<24x24xf32>
    %104 = arith.mulf %99, %103 : vector<24x24xf32>
    %c0_39 = arith.constant 0 : index
    %c0_40 = arith.constant 0 : index
    %c0_41 = arith.constant 0 : index
    %105 = vector.load %arg3[%c0_39, %c0_40, %c0_41] : memref<4x24x24xf32, #tpu.memory_space<vmem>>, vector<1x24x24xf32>
    %106 = vector.shape_cast %105 : vector<1x24x24xf32> to vector<24x24xf32>
    %107 = arith.mulf %104, %106 : vector<24x24xf32>
    %c1_42 = arith.constant 1 : index
    %c0_43 = arith.constant 0 : index
    %c0_44 = arith.constant 0 : index
    %108 = vector.load %arg3[%c1_42, %c0_43, %c0_44] : memref<4x24x24xf32, #tpu.memory_space<vmem>>, vector<1x24x24xf32>
    %109 = vector.shape_cast %108 : vector<1x24x24xf32> to vector<24x24xf32>
    %110 = arith.mulf %104, %109 : vector<24x24xf32>
    %c2_45 = arith.constant 2 : index
    %c0_46 = arith.constant 0 : index
    %c0_47 = arith.constant 0 : index
    %111 = vector.load %arg3[%c2_45, %c0_46, %c0_47] : memref<4x24x24xf32, #tpu.memory_space<vmem>>, vector<1x24x24xf32>
    %112 = vector.shape_cast %111 : vector<1x24x24xf32> to vector<24x24xf32>
    %113 = arith.mulf %104, %112 : vector<24x24xf32>
    %c3_48 = arith.constant 3 : index
    %c0_49 = arith.constant 0 : index
    %c0_50 = arith.constant 0 : index
    %114 = vector.load %arg3[%c3_48, %c0_49, %c0_50] : memref<4x24x24xf32, #tpu.memory_space<vmem>>, vector<1x24x24xf32>
    %115 = vector.shape_cast %114 : vector<1x24x24xf32> to vector<24x24xf32>
    %116 = arith.mulf %104, %115 : vector<24x24xf32>
    %117 = tpu.concatenate %107, %110, %113, %116 in 1 : vector<24x24xf32>, vector<24x24xf32>, vector<24x24xf32>, vector<24x24xf32> -> vector<24x96xf32>
    %118 = vector.extract_strided_slice %21 {offsets = [0, 8], sizes = [24, 8], strides = [1, 1]} : vector<24x128xf32> to vector<24x8xf32>
    %119 = vector.extract_strided_slice %21 {offsets = [0, 40], sizes = [24, 8], strides = [1, 1]} : vector<24x128xf32> to vector<24x8xf32>
    %120 = vector.extract_strided_slice %21 {offsets = [0, 72], sizes = [24, 8], strides = [1, 1]} : vector<24x128xf32> to vector<24x8xf32>
    %121 = vector.extract_strided_slice %21 {offsets = [0, 104], sizes = [24, 8], strides = [1, 1]} : vector<24x128xf32> to vector<24x8xf32>
    %122 = tpu.concatenate %118, %119, %120, %121 in 0 : vector<24x8xf32>, vector<24x8xf32>, vector<24x8xf32>, vector<24x8xf32> -> vector<96x8xf32>
    %123 = arith.truncf %117 : vector<24x96xf32> to vector<24x96xbf16>
    %124 = arith.truncf %122 : vector<96x8xf32> to vector<96x8xbf16>
    %cst_51 = arith.constant dense<0.000000e+00> : vector<24x8xf32>
    %125 = tpu.matmul %123, %124, %cst_51 {dimension_numbers = #tpu.dot_dimension_numbers<[1], [0], [0], [1], [0, 0, 1, 1], [], []>} : vector<24x96xbf16>, vector<96x8xbf16>, vector<24x8xf32> -> vector<24x8xf32>
    %126 = vector.extract_strided_slice %18 {offsets = [0, 16], sizes = [24, 8], strides = [1, 1]} : vector<24x32xf32> to vector<24x8xf32>
    %127 = vector.extract_strided_slice %20 {offsets = [16, 0], sizes = [8, 24], strides = [1, 1]} : vector<32x24xf32> to vector<8x24xf32>
    %128 = arith.truncf %126 : vector<24x8xf32> to vector<24x8xbf16>
    %129 = arith.truncf %127 : vector<8x24xf32> to vector<8x24xbf16>
    %cst_52 = arith.constant dense<0.000000e+00> : vector<24x24xf32>
    %130 = tpu.matmul %128, %129, %cst_52 {dimension_numbers = #tpu.dot_dimension_numbers<[1], [0], [0], [1], [0, 0, 1, 1], [], []>} : vector<24x8xbf16>, vector<8x24xbf16>, vector<24x24xf32> -> vector<24x24xf32>
    %c2_53 = arith.constant 2 : index
    %c0_54 = arith.constant 0 : index
    %c0_55 = arith.constant 0 : index
    %131 = vector.load %arg2[%c2_53, %c0_54, %c0_55] : memref<4x24x24xf32, #tpu.memory_space<vmem>>, vector<1x24x24xf32>
    %132 = vector.shape_cast %131 : vector<1x24x24xf32> to vector<24x24xf32>
    %133 = arith.subf %130, %132 : vector<24x24xf32>
    %134 = arith.subf %133, %5 : vector<24x24xf32>
    %cst_56 = arith.constant dense<0xFF800000> : vector<24xf32>
    %135 = vector.multi_reduction <maximumf>, %134, %cst_56 [1] : vector<24x24xf32> to vector<24xf32>
    %136 = vector.shape_cast %135 : vector<24xf32> to vector<24x1xf32>
    %137 = vector.broadcast %136 : vector<24x1xf32> to vector<24x24xf32>
    %138 = arith.subf %134, %137 : vector<24x24xf32>
    %139 = math.exp %138 : vector<24x24xf32>
    %cst_57 = arith.constant dense<0.000000e+00> : vector<24xf32>
    %140 = vector.multi_reduction <add>, %139, %cst_57 [1] : vector<24x24xf32> to vector<24xf32>
    %141 = vector.shape_cast %140 : vector<24xf32> to vector<24x1xf32>
    %142 = math.log %141 : vector<24x1xf32>
    %143 = arith.addf %142, %136 : vector<24x1xf32>
    %144 = vector.broadcast %143 : vector<24x1xf32> to vector<24x24xf32>
    %145 = arith.subf %134, %144 : vector<24x24xf32>
    %146 = arith.subf %145, %5 : vector<24x24xf32>
    %cst_58 = arith.constant dense<0xFF800000> : vector<24xf32>
    %147 = vector.multi_reduction <maximumf>, %146, %cst_58 [1] : vector<24x24xf32> to vector<24xf32>
    %148 = vector.shape_cast %147 : vector<24xf32> to vector<24x1xf32>
    %149 = vector.broadcast %148 : vector<24x1xf32> to vector<24x24xf32>
    %150 = arith.subf %146, %149 : vector<24x24xf32>
    %151 = math.exp %150 : vector<24x24xf32>
    %cst_59 = arith.constant dense<0.000000e+00> : vector<24xf32>
    %152 = vector.multi_reduction <add>, %151, %cst_59 [1] : vector<24x24xf32> to vector<24xf32>
    %153 = vector.shape_cast %152 : vector<24xf32> to vector<24x1xf32>
    %154 = tpu.reciprocal %153 {approx = true} : vector<24x1xf32> -> vector<24x1xf32>
    %155 = vector.broadcast %154 : vector<24x1xf32> to vector<24x24xf32>
    %156 = arith.mulf %151, %155 : vector<24x24xf32>
    %c0_60 = arith.constant 0 : index
    %c0_61 = arith.constant 0 : index
    %c0_62 = arith.constant 0 : index
    %157 = vector.load %arg3[%c0_60, %c0_61, %c0_62] : memref<4x24x24xf32, #tpu.memory_space<vmem>>, vector<1x24x24xf32>
    %158 = vector.shape_cast %157 : vector<1x24x24xf32> to vector<24x24xf32>
    %159 = arith.mulf %156, %158 : vector<24x24xf32>
    %c1_63 = arith.constant 1 : index
    %c0_64 = arith.constant 0 : index
    %c0_65 = arith.constant 0 : index
    %160 = vector.load %arg3[%c1_63, %c0_64, %c0_65] : memref<4x24x24xf32, #tpu.memory_space<vmem>>, vector<1x24x24xf32>
    %161 = vector.shape_cast %160 : vector<1x24x24xf32> to vector<24x24xf32>
    %162 = arith.mulf %156, %161 : vector<24x24xf32>
    %c2_66 = arith.constant 2 : index
    %c0_67 = arith.constant 0 : index
    %c0_68 = arith.constant 0 : index
    %163 = vector.load %arg3[%c2_66, %c0_67, %c0_68] : memref<4x24x24xf32, #tpu.memory_space<vmem>>, vector<1x24x24xf32>
    %164 = vector.shape_cast %163 : vector<1x24x24xf32> to vector<24x24xf32>
    %165 = arith.mulf %156, %164 : vector<24x24xf32>
    %c3_69 = arith.constant 3 : index
    %c0_70 = arith.constant 0 : index
    %c0_71 = arith.constant 0 : index
    %166 = vector.load %arg3[%c3_69, %c0_70, %c0_71] : memref<4x24x24xf32, #tpu.memory_space<vmem>>, vector<1x24x24xf32>
    %167 = vector.shape_cast %166 : vector<1x24x24xf32> to vector<24x24xf32>
    %168 = arith.mulf %156, %167 : vector<24x24xf32>
    %169 = tpu.concatenate %159, %162, %165, %168 in 1 : vector<24x24xf32>, vector<24x24xf32>, vector<24x24xf32>, vector<24x24xf32> -> vector<24x96xf32>
    %170 = vector.extract_strided_slice %21 {offsets = [0, 16], sizes = [24, 8], strides = [1, 1]} : vector<24x128xf32> to vector<24x8xf32>
    %171 = vector.extract_strided_slice %21 {offsets = [0, 48], sizes = [24, 8], strides = [1, 1]} : vector<24x128xf32> to vector<24x8xf32>
    %172 = vector.extract_strided_slice %21 {offsets = [0, 80], sizes = [24, 8], strides = [1, 1]} : vector<24x128xf32> to vector<24x8xf32>
    %173 = vector.extract_strided_slice %21 {offsets = [0, 112], sizes = [24, 8], strides = [1, 1]} : vector<24x128xf32> to vector<24x8xf32>
    %174 = tpu.concatenate %170, %171, %172, %173 in 0 : vector<24x8xf32>, vector<24x8xf32>, vector<24x8xf32>, vector<24x8xf32> -> vector<96x8xf32>
    %175 = arith.truncf %169 : vector<24x96xf32> to vector<24x96xbf16>
    %176 = arith.truncf %174 : vector<96x8xf32> to vector<96x8xbf16>
    %cst_72 = arith.constant dense<0.000000e+00> : vector<24x8xf32>
    %177 = tpu.matmul %175, %176, %cst_72 {dimension_numbers = #tpu.dot_dimension_numbers<[1], [0], [0], [1], [0, 0, 1, 1], [], []>} : vector<24x96xbf16>, vector<96x8xbf16>, vector<24x8xf32> -> vector<24x8xf32>
    %178 = vector.extract_strided_slice %18 {offsets = [0, 24], sizes = [24, 8], strides = [1, 1]} : vector<24x32xf32> to vector<24x8xf32>
    %179 = vector.extract_strided_slice %20 {offsets = [24, 0], sizes = [8, 24], strides = [1, 1]} : vector<32x24xf32> to vector<8x24xf32>
    %180 = arith.truncf %178 : vector<24x8xf32> to vector<24x8xbf16>
    %181 = arith.truncf %179 : vector<8x24xf32> to vector<8x24xbf16>
    %cst_73 = arith.constant dense<0.000000e+00> : vector<24x24xf32>
    %182 = tpu.matmul %180, %181, %cst_73 {dimension_numbers = #tpu.dot_dimension_numbers<[1], [0], [0], [1], [0, 0, 1, 1], [], []>} : vector<24x8xbf16>, vector<8x24xbf16>, vector<24x24xf32> -> vector<24x24xf32>
    %c3_74 = arith.constant 3 : index
    %c0_75 = arith.constant 0 : index
    %c0_76 = arith.constant 0 : index
    %183 = vector.load %arg2[%c3_74, %c0_75, %c0_76] : memref<4x24x24xf32, #tpu.memory_space<vmem>>, vector<1x24x24xf32>
    %184 = vector.shape_cast %183 : vector<1x24x24xf32> to vector<24x24xf32>
    %185 = arith.subf %182, %184 : vector<24x24xf32>
    %186 = arith.subf %185, %5 : vector<24x24xf32>
    %cst_77 = arith.constant dense<0xFF800000> : vector<24xf32>
    %187 = vector.multi_reduction <maximumf>, %186, %cst_77 [1] : vector<24x24xf32> to vector<24xf32>
    %188 = vector.shape_cast %187 : vector<24xf32> to vector<24x1xf32>
    %189 = vector.broadcast %188 : vector<24x1xf32> to vector<24x24xf32>
    %190 = arith.subf %186, %189 : vector<24x24xf32>
    %191 = math.exp %190 : vector<24x24xf32>
    %cst_78 = arith.constant dense<0.000000e+00> : vector<24xf32>
    %192 = vector.multi_reduction <add>, %191, %cst_78 [1] : vector<24x24xf32> to vector<24xf32>
    %193 = vector.shape_cast %192 : vector<24xf32> to vector<24x1xf32>
    %194 = math.log %193 : vector<24x1xf32>
    %195 = arith.addf %194, %188 : vector<24x1xf32>
    %196 = vector.broadcast %195 : vector<24x1xf32> to vector<24x24xf32>
    %197 = arith.subf %186, %196 : vector<24x24xf32>
    %198 = arith.subf %197, %5 : vector<24x24xf32>
    %cst_79 = arith.constant dense<0xFF800000> : vector<24xf32>
    %199 = vector.multi_reduction <maximumf>, %198, %cst_79 [1] : vector<24x24xf32> to vector<24xf32>
    %200 = vector.shape_cast %199 : vector<24xf32> to vector<24x1xf32>
    %201 = vector.broadcast %200 : vector<24x1xf32> to vector<24x24xf32>
    %202 = arith.subf %198, %201 : vector<24x24xf32>
    %203 = math.exp %202 : vector<24x24xf32>
    %cst_80 = arith.constant dense<0.000000e+00> : vector<24xf32>
    %204 = vector.multi_reduction <add>, %203, %cst_80 [1] : vector<24x24xf32> to vector<24xf32>
    %205 = vector.shape_cast %204 : vector<24xf32> to vector<24x1xf32>
    %206 = tpu.reciprocal %205 {approx = true} : vector<24x1xf32> -> vector<24x1xf32>
    %207 = vector.broadcast %206 : vector<24x1xf32> to vector<24x24xf32>
    %208 = arith.mulf %203, %207 : vector<24x24xf32>
    %c0_81 = arith.constant 0 : index
    %c0_82 = arith.constant 0 : index
    %c0_83 = arith.constant 0 : index
    %209 = vector.load %arg3[%c0_81, %c0_82, %c0_83] : memref<4x24x24xf32, #tpu.memory_space<vmem>>, vector<1x24x24xf32>
    %210 = vector.shape_cast %209 : vector<1x24x24xf32> to vector<24x24xf32>
    %211 = arith.mulf %208, %210 : vector<24x24xf32>
    %c1_84 = arith.constant 1 : index
    %c0_85 = arith.constant 0 : index
    %c0_86 = arith.constant 0 : index
    %212 = vector.load %arg3[%c1_84, %c0_85, %c0_86] : memref<4x24x24xf32, #tpu.memory_space<vmem>>, vector<1x24x24xf32>
    %213 = vector.shape_cast %212 : vector<1x24x24xf32> to vector<24x24xf32>
    %214 = arith.mulf %208, %213 : vector<24x24xf32>
    %c2_87 = arith.constant 2 : index
    %c0_88 = arith.constant 0 : index
    %c0_89 = arith.constant 0 : index
    %215 = vector.load %arg3[%c2_87, %c0_88, %c0_89] : memref<4x24x24xf32, #tpu.memory_space<vmem>>, vector<1x24x24xf32>
    %216 = vector.shape_cast %215 : vector<1x24x24xf32> to vector<24x24xf32>
    %217 = arith.mulf %208, %216 : vector<24x24xf32>
    %c3_90 = arith.constant 3 : index
    %c0_91 = arith.constant 0 : index
    %c0_92 = arith.constant 0 : index
    %218 = vector.load %arg3[%c3_90, %c0_91, %c0_92] : memref<4x24x24xf32, #tpu.memory_space<vmem>>, vector<1x24x24xf32>
    %219 = vector.shape_cast %218 : vector<1x24x24xf32> to vector<24x24xf32>
    %220 = arith.mulf %208, %219 : vector<24x24xf32>
    %221 = tpu.concatenate %211, %214, %217, %220 in 1 : vector<24x24xf32>, vector<24x24xf32>, vector<24x24xf32>, vector<24x24xf32> -> vector<24x96xf32>
    %222 = vector.extract_strided_slice %21 {offsets = [0, 24], sizes = [24, 8], strides = [1, 1]} : vector<24x128xf32> to vector<24x8xf32>
    %223 = vector.extract_strided_slice %21 {offsets = [0, 56], sizes = [24, 8], strides = [1, 1]} : vector<24x128xf32> to vector<24x8xf32>
    %224 = vector.extract_strided_slice %21 {offsets = [0, 88], sizes = [24, 8], strides = [1, 1]} : vector<24x128xf32> to vector<24x8xf32>
    %225 = vector.extract_strided_slice %21 {offsets = [0, 120], sizes = [24, 8], strides = [1, 1]} : vector<24x128xf32> to vector<24x8xf32>
    %226 = tpu.concatenate %222, %223, %224, %225 in 0 : vector<24x8xf32>, vector<24x8xf32>, vector<24x8xf32>, vector<24x8xf32> -> vector<96x8xf32>
    %227 = arith.truncf %221 : vector<24x96xf32> to vector<24x96xbf16>
    %228 = arith.truncf %226 : vector<96x8xf32> to vector<96x8xbf16>
    %cst_93 = arith.constant dense<0.000000e+00> : vector<24x8xf32>
    %229 = tpu.matmul %227, %228, %cst_93 {dimension_numbers = #tpu.dot_dimension_numbers<[1], [0], [0], [1], [0, 0, 1, 1], [], []>} : vector<24x96xbf16>, vector<96x8xbf16>, vector<24x8xf32> -> vector<24x8xf32>
    %230 = tpu.concatenate %73, %125, %177, %229 in 1 : vector<24x8xf32>, vector<24x8xf32>, vector<24x8xf32>, vector<24x8xf32> -> vector<24x32xf32>
    %231 = vector.extract_strided_slice %9 {offsets = [24, 0], sizes = [24, 32], strides = [1, 1]} : vector<48x32xf32> to vector<24x32xf32>
    %232 = vector.extract_strided_slice %13 {offsets = [24, 0], sizes = [24, 32], strides = [1, 1]} : vector<48x32xf32> to vector<24x32xf32>
    %233 = tpu.transpose %232, [1, 0] : vector<24x32xf32> -> vector<32x24xf32>
    %234 = vector.extract_strided_slice %17 {offsets = [24, 0], sizes = [24, 128], strides = [1, 1]} : vector<48x128xf32> to vector<24x128xf32>
    %235 = vector.extract_strided_slice %231 {offsets = [0, 0], sizes = [24, 8], strides = [1, 1]} : vector<24x32xf32> to vector<24x8xf32>
    %236 = vector.extract_strided_slice %233 {offsets = [0, 0], sizes = [8, 24], strides = [1, 1]} : vector<32x24xf32> to vector<8x24xf32>
    %237 = arith.truncf %235 : vector<24x8xf32> to vector<24x8xbf16>
    %238 = arith.truncf %236 : vector<8x24xf32> to vector<8x24xbf16>
    %cst_94 = arith.constant dense<0.000000e+00> : vector<24x24xf32>
    %239 = tpu.matmul %237, %238, %cst_94 {dimension_numbers = #tpu.dot_dimension_numbers<[1], [0], [0], [1], [0, 0, 1, 1], [], []>} : vector<24x8xbf16>, vector<8x24xbf16>, vector<24x24xf32> -> vector<24x24xf32>
    %c0_95 = arith.constant 0 : index
    %c0_96 = arith.constant 0 : index
    %c0_97 = arith.constant 0 : index
    %240 = vector.load %arg2[%c0_95, %c0_96, %c0_97] : memref<4x24x24xf32, #tpu.memory_space<vmem>>, vector<1x24x24xf32>
    %241 = vector.shape_cast %240 : vector<1x24x24xf32> to vector<24x24xf32>
    %242 = arith.subf %239, %241 : vector<24x24xf32>
    %243 = arith.subf %242, %5 : vector<24x24xf32>
    %cst_98 = arith.constant dense<0xFF800000> : vector<24xf32>
    %244 = vector.multi_reduction <maximumf>, %243, %cst_98 [1] : vector<24x24xf32> to vector<24xf32>
    %245 = vector.shape_cast %244 : vector<24xf32> to vector<24x1xf32>
    %246 = vector.broadcast %245 : vector<24x1xf32> to vector<24x24xf32>
    %247 = arith.subf %243, %246 : vector<24x24xf32>
    %248 = math.exp %247 : vector<24x24xf32>
    %cst_99 = arith.constant dense<0.000000e+00> : vector<24xf32>
    %249 = vector.multi_reduction <add>, %248, %cst_99 [1] : vector<24x24xf32> to vector<24xf32>
    %250 = vector.shape_cast %249 : vector<24xf32> to vector<24x1xf32>
    %251 = math.log %250 : vector<24x1xf32>
    %252 = arith.addf %251, %245 : vector<24x1xf32>
    %253 = vector.broadcast %252 : vector<24x1xf32> to vector<24x24xf32>
    %254 = arith.subf %243, %253 : vector<24x24xf32>
    %255 = arith.subf %254, %5 : vector<24x24xf32>
    %cst_100 = arith.constant dense<0xFF800000> : vector<24xf32>
    %256 = vector.multi_reduction <maximumf>, %255, %cst_100 [1] : vector<24x24xf32> to vector<24xf32>
    %257 = vector.shape_cast %256 : vector<24xf32> to vector<24x1xf32>
    %258 = vector.broadcast %257 : vector<24x1xf32> to vector<24x24xf32>
    %259 = arith.subf %255, %258 : vector<24x24xf32>
    %260 = math.exp %259 : vector<24x24xf32>
    %cst_101 = arith.constant dense<0.000000e+00> : vector<24xf32>
    %261 = vector.multi_reduction <add>, %260, %cst_101 [1] : vector<24x24xf32> to vector<24xf32>
    %262 = vector.shape_cast %261 : vector<24xf32> to vector<24x1xf32>
    %263 = tpu.reciprocal %262 {approx = true} : vector<24x1xf32> -> vector<24x1xf32>
    %264 = vector.broadcast %263 : vector<24x1xf32> to vector<24x24xf32>
    %265 = arith.mulf %260, %264 : vector<24x24xf32>
    %c0_102 = arith.constant 0 : index
    %c0_103 = arith.constant 0 : index
    %c0_104 = arith.constant 0 : index
    %266 = vector.load %arg3[%c0_102, %c0_103, %c0_104] : memref<4x24x24xf32, #tpu.memory_space<vmem>>, vector<1x24x24xf32>
    %267 = vector.shape_cast %266 : vector<1x24x24xf32> to vector<24x24xf32>
    %268 = arith.mulf %265, %267 : vector<24x24xf32>
    %c1_105 = arith.constant 1 : index
    %c0_106 = arith.constant 0 : index
    %c0_107 = arith.constant 0 : index
    %269 = vector.load %arg3[%c1_105, %c0_106, %c0_107] : memref<4x24x24xf32, #tpu.memory_space<vmem>>, vector<1x24x24xf32>
    %270 = vector.shape_cast %269 : vector<1x24x24xf32> to vector<24x24xf32>
    %271 = arith.mulf %265, %270 : vector<24x24xf32>
    %c2_108 = arith.constant 2 : index
    %c0_109 = arith.constant 0 : index
    %c0_110 = arith.constant 0 : index
    %272 = vector.load %arg3[%c2_108, %c0_109, %c0_110] : memref<4x24x24xf32, #tpu.memory_space<vmem>>, vector<1x24x24xf32>
    %273 = vector.shape_cast %272 : vector<1x24x24xf32> to vector<24x24xf32>
    %274 = arith.mulf %265, %273 : vector<24x24xf32>
    %c3_111 = arith.constant 3 : index
    %c0_112 = arith.constant 0 : index
    %c0_113 = arith.constant 0 : index
    %275 = vector.load %arg3[%c3_111, %c0_112, %c0_113] : memref<4x24x24xf32, #tpu.memory_space<vmem>>, vector<1x24x24xf32>
    %276 = vector.shape_cast %275 : vector<1x24x24xf32> to vector<24x24xf32>
    %277 = arith.mulf %265, %276 : vector<24x24xf32>
    %278 = tpu.concatenate %268, %271, %274, %277 in 1 : vector<24x24xf32>, vector<24x24xf32>, vector<24x24xf32>, vector<24x24xf32> -> vector<24x96xf32>
    %279 = vector.extract_strided_slice %234 {offsets = [0, 0], sizes = [24, 8], strides = [1, 1]} : vector<24x128xf32> to vector<24x8xf32>
    %280 = vector.extract_strided_slice %234 {offsets = [0, 32], sizes = [24, 8], strides = [1, 1]} : vector<24x128xf32> to vector<24x8xf32>
    %281 = vector.extract_strided_slice %234 {offsets = [0, 64], sizes = [24, 8], strides = [1, 1]} : vector<24x128xf32> to vector<24x8xf32>
    %282 = vector.extract_strided_slice %234 {offsets = [0, 96], sizes = [24, 8], strides = [1, 1]} : vector<24x128xf32> to vector<24x8xf32>
    %283 = tpu.concatenate %279, %280, %281, %282 in 0 : vector<24x8xf32>, vector<24x8xf32>, vector<24x8xf32>, vector<24x8xf32> -> vector<96x8xf32>
    %284 = arith.truncf %278 : vector<24x96xf32> to vector<24x96xbf16>
    %285 = arith.truncf %283 : vector<96x8xf32> to vector<96x8xbf16>
    %cst_114 = arith.constant dense<0.000000e+00> : vector<24x8xf32>
    %286 = tpu.matmul %284, %285, %cst_114 {dimension_numbers = #tpu.dot_dimension_numbers<[1], [0], [0], [1], [0, 0, 1, 1], [], []>} : vector<24x96xbf16>, vector<96x8xbf16>, vector<24x8xf32> -> vector<24x8xf32>
    %287 = vector.extract_strided_slice %231 {offsets = [0, 8], sizes = [24, 8], strides = [1, 1]} : vector<24x32xf32> to vector<24x8xf32>
    %288 = vector.extract_strided_slice %233 {offsets = [8, 0], sizes = [8, 24], strides = [1, 1]} : vector<32x24xf32> to vector<8x24xf32>
    %289 = arith.truncf %287 : vector<24x8xf32> to vector<24x8xbf16>
    %290 = arith.truncf %288 : vector<8x24xf32> to vector<8x24xbf16>
    %cst_115 = arith.constant dense<0.000000e+00> : vector<24x24xf32>
    %291 = tpu.matmul %289, %290, %cst_115 {dimension_numbers = #tpu.dot_dimension_numbers<[1], [0], [0], [1], [0, 0, 1, 1], [], []>} : vector<24x8xbf16>, vector<8x24xbf16>, vector<24x24xf32> -> vector<24x24xf32>
    %c1_116 = arith.constant 1 : index
    %c0_117 = arith.constant 0 : index
    %c0_118 = arith.constant 0 : index
    %292 = vector.load %arg2[%c1_116, %c0_117, %c0_118] : memref<4x24x24xf32, #tpu.memory_space<vmem>>, vector<1x24x24xf32>
    %293 = vector.shape_cast %292 : vector<1x24x24xf32> to vector<24x24xf32>
    %294 = arith.subf %291, %293 : vector<24x24xf32>
    %295 = arith.subf %294, %5 : vector<24x24xf32>
    %cst_119 = arith.constant dense<0xFF800000> : vector<24xf32>
    %296 = vector.multi_reduction <maximumf>, %295, %cst_119 [1] : vector<24x24xf32> to vector<24xf32>
    %297 = vector.shape_cast %296 : vector<24xf32> to vector<24x1xf32>
    %298 = vector.broadcast %297 : vector<24x1xf32> to vector<24x24xf32>
    %299 = arith.subf %295, %298 : vector<24x24xf32>
    %300 = math.exp %299 : vector<24x24xf32>
    %cst_120 = arith.constant dense<0.000000e+00> : vector<24xf32>
    %301 = vector.multi_reduction <add>, %300, %cst_120 [1] : vector<24x24xf32> to vector<24xf32>
    %302 = vector.shape_cast %301 : vector<24xf32> to vector<24x1xf32>
    %303 = math.log %302 : vector<24x1xf32>
    %304 = arith.addf %303, %297 : vector<24x1xf32>
    %305 = vector.broadcast %304 : vector<24x1xf32> to vector<24x24xf32>
    %306 = arith.subf %295, %305 : vector<24x24xf32>
    %307 = arith.subf %306, %5 : vector<24x24xf32>
    %cst_121 = arith.constant dense<0xFF800000> : vector<24xf32>
    %308 = vector.multi_reduction <maximumf>, %307, %cst_121 [1] : vector<24x24xf32> to vector<24xf32>
    %309 = vector.shape_cast %308 : vector<24xf32> to vector<24x1xf32>
    %310 = vector.broadcast %309 : vector<24x1xf32> to vector<24x24xf32>
    %311 = arith.subf %307, %310 : vector<24x24xf32>
    %312 = math.exp %311 : vector<24x24xf32>
    %cst_122 = arith.constant dense<0.000000e+00> : vector<24xf32>
    %313 = vector.multi_reduction <add>, %312, %cst_122 [1] : vector<24x24xf32> to vector<24xf32>
    %314 = vector.shape_cast %313 : vector<24xf32> to vector<24x1xf32>
    %315 = tpu.reciprocal %314 {approx = true} : vector<24x1xf32> -> vector<24x1xf32>
    %316 = vector.broadcast %315 : vector<24x1xf32> to vector<24x24xf32>
    %317 = arith.mulf %312, %316 : vector<24x24xf32>
    %c0_123 = arith.constant 0 : index
    %c0_124 = arith.constant 0 : index
    %c0_125 = arith.constant 0 : index
    %318 = vector.load %arg3[%c0_123, %c0_124, %c0_125] : memref<4x24x24xf32, #tpu.memory_space<vmem>>, vector<1x24x24xf32>
    %319 = vector.shape_cast %318 : vector<1x24x24xf32> to vector<24x24xf32>
    %320 = arith.mulf %317, %319 : vector<24x24xf32>
    %c1_126 = arith.constant 1 : index
    %c0_127 = arith.constant 0 : index
    %c0_128 = arith.constant 0 : index
    %321 = vector.load %arg3[%c1_126, %c0_127, %c0_128] : memref<4x24x24xf32, #tpu.memory_space<vmem>>, vector<1x24x24xf32>
    %322 = vector.shape_cast %321 : vector<1x24x24xf32> to vector<24x24xf32>
    %323 = arith.mulf %317, %322 : vector<24x24xf32>
    %c2_129 = arith.constant 2 : index
    %c0_130 = arith.constant 0 : index
    %c0_131 = arith.constant 0 : index
    %324 = vector.load %arg3[%c2_129, %c0_130, %c0_131] : memref<4x24x24xf32, #tpu.memory_space<vmem>>, vector<1x24x24xf32>
    %325 = vector.shape_cast %324 : vector<1x24x24xf32> to vector<24x24xf32>
    %326 = arith.mulf %317, %325 : vector<24x24xf32>
    %c3_132 = arith.constant 3 : index
    %c0_133 = arith.constant 0 : index
    %c0_134 = arith.constant 0 : index
    %327 = vector.load %arg3[%c3_132, %c0_133, %c0_134] : memref<4x24x24xf32, #tpu.memory_space<vmem>>, vector<1x24x24xf32>
    %328 = vector.shape_cast %327 : vector<1x24x24xf32> to vector<24x24xf32>
    %329 = arith.mulf %317, %328 : vector<24x24xf32>
    %330 = tpu.concatenate %320, %323, %326, %329 in 1 : vector<24x24xf32>, vector<24x24xf32>, vector<24x24xf32>, vector<24x24xf32> -> vector<24x96xf32>
    %331 = vector.extract_strided_slice %234 {offsets = [0, 8], sizes = [24, 8], strides = [1, 1]} : vector<24x128xf32> to vector<24x8xf32>
    %332 = vector.extract_strided_slice %234 {offsets = [0, 40], sizes = [24, 8], strides = [1, 1]} : vector<24x128xf32> to vector<24x8xf32>
    %333 = vector.extract_strided_slice %234 {offsets = [0, 72], sizes = [24, 8], strides = [1, 1]} : vector<24x128xf32> to vector<24x8xf32>
    %334 = vector.extract_strided_slice %234 {offsets = [0, 104], sizes = [24, 8], strides = [1, 1]} : vector<24x128xf32> to vector<24x8xf32>
    %335 = tpu.concatenate %331, %332, %333, %334 in 0 : vector<24x8xf32>, vector<24x8xf32>, vector<24x8xf32>, vector<24x8xf32> -> vector<96x8xf32>
    %336 = arith.truncf %330 : vector<24x96xf32> to vector<24x96xbf16>
    %337 = arith.truncf %335 : vector<96x8xf32> to vector<96x8xbf16>
    %cst_135 = arith.constant dense<0.000000e+00> : vector<24x8xf32>
    %338 = tpu.matmul %336, %337, %cst_135 {dimension_numbers = #tpu.dot_dimension_numbers<[1], [0], [0], [1], [0, 0, 1, 1], [], []>} : vector<24x96xbf16>, vector<96x8xbf16>, vector<24x8xf32> -> vector<24x8xf32>
    %339 = vector.extract_strided_slice %231 {offsets = [0, 16], sizes = [24, 8], strides = [1, 1]} : vector<24x32xf32> to vector<24x8xf32>
    %340 = vector.extract_strided_slice %233 {offsets = [16, 0], sizes = [8, 24], strides = [1, 1]} : vector<32x24xf32> to vector<8x24xf32>
    %341 = arith.truncf %339 : vector<24x8xf32> to vector<24x8xbf16>
    %342 = arith.truncf %340 : vector<8x24xf32> to vector<8x24xbf16>
    %cst_136 = arith.constant dense<0.000000e+00> : vector<24x24xf32>
    %343 = tpu.matmul %341, %342, %cst_136 {dimension_numbers = #tpu.dot_dimension_numbers<[1], [0], [0], [1], [0, 0, 1, 1], [], []>} : vector<24x8xbf16>, vector<8x24xbf16>, vector<24x24xf32> -> vector<24x24xf32>
    %c2_137 = arith.constant 2 : index
    %c0_138 = arith.constant 0 : index
    %c0_139 = arith.constant 0 : index
    %344 = vector.load %arg2[%c2_137, %c0_138, %c0_139] : memref<4x24x24xf32, #tpu.memory_space<vmem>>, vector<1x24x24xf32>
    %345 = vector.shape_cast %344 : vector<1x24x24xf32> to vector<24x24xf32>
    %346 = arith.subf %343, %345 : vector<24x24xf32>
    %347 = arith.subf %346, %5 : vector<24x24xf32>
    %cst_140 = arith.constant dense<0xFF800000> : vector<24xf32>
    %348 = vector.multi_reduction <maximumf>, %347, %cst_140 [1] : vector<24x24xf32> to vector<24xf32>
    %349 = vector.shape_cast %348 : vector<24xf32> to vector<24x1xf32>
    %350 = vector.broadcast %349 : vector<24x1xf32> to vector<24x24xf32>
    %351 = arith.subf %347, %350 : vector<24x24xf32>
    %352 = math.exp %351 : vector<24x24xf32>
    %cst_141 = arith.constant dense<0.000000e+00> : vector<24xf32>
    %353 = vector.multi_reduction <add>, %352, %cst_141 [1] : vector<24x24xf32> to vector<24xf32>
    %354 = vector.shape_cast %353 : vector<24xf32> to vector<24x1xf32>
    %355 = math.log %354 : vector<24x1xf32>
    %356 = arith.addf %355, %349 : vector<24x1xf32>
    %357 = vector.broadcast %356 : vector<24x1xf32> to vector<24x24xf32>
    %358 = arith.subf %347, %357 : vector<24x24xf32>
    %359 = arith.subf %358, %5 : vector<24x24xf32>
    %cst_142 = arith.constant dense<0xFF800000> : vector<24xf32>
    %360 = vector.multi_reduction <maximumf>, %359, %cst_142 [1] : vector<24x24xf32> to vector<24xf32>
    %361 = vector.shape_cast %360 : vector<24xf32> to vector<24x1xf32>
    %362 = vector.broadcast %361 : vector<24x1xf32> to vector<24x24xf32>
    %363 = arith.subf %359, %362 : vector<24x24xf32>
    %364 = math.exp %363 : vector<24x24xf32>
    %cst_143 = arith.constant dense<0.000000e+00> : vector<24xf32>
    %365 = vector.multi_reduction <add>, %364, %cst_143 [1] : vector<24x24xf32> to vector<24xf32>
    %366 = vector.shape_cast %365 : vector<24xf32> to vector<24x1xf32>
    %367 = tpu.reciprocal %366 {approx = true} : vector<24x1xf32> -> vector<24x1xf32>
    %368 = vector.broadcast %367 : vector<24x1xf32> to vector<24x24xf32>
    %369 = arith.mulf %364, %368 : vector<24x24xf32>
    %c0_144 = arith.constant 0 : index
    %c0_145 = arith.constant 0 : index
    %c0_146 = arith.constant 0 : index
    %370 = vector.load %arg3[%c0_144, %c0_145, %c0_146] : memref<4x24x24xf32, #tpu.memory_space<vmem>>, vector<1x24x24xf32>
    %371 = vector.shape_cast %370 : vector<1x24x24xf32> to vector<24x24xf32>
    %372 = arith.mulf %369, %371 : vector<24x24xf32>
    %c1_147 = arith.constant 1 : index
    %c0_148 = arith.constant 0 : index
    %c0_149 = arith.constant 0 : index
    %373 = vector.load %arg3[%c1_147, %c0_148, %c0_149] : memref<4x24x24xf32, #tpu.memory_space<vmem>>, vector<1x24x24xf32>
    %374 = vector.shape_cast %373 : vector<1x24x24xf32> to vector<24x24xf32>
    %375 = arith.mulf %369, %374 : vector<24x24xf32>
    %c2_150 = arith.constant 2 : index
    %c0_151 = arith.constant 0 : index
    %c0_152 = arith.constant 0 : index
    %376 = vector.load %arg3[%c2_150, %c0_151, %c0_152] : memref<4x24x24xf32, #tpu.memory_space<vmem>>, vector<1x24x24xf32>
    %377 = vector.shape_cast %376 : vector<1x24x24xf32> to vector<24x24xf32>
    %378 = arith.mulf %369, %377 : vector<24x24xf32>
    %c3_153 = arith.constant 3 : index
    %c0_154 = arith.constant 0 : index
    %c0_155 = arith.constant 0 : index
    %379 = vector.load %arg3[%c3_153, %c0_154, %c0_155] : memref<4x24x24xf32, #tpu.memory_space<vmem>>, vector<1x24x24xf32>
    %380 = vector.shape_cast %379 : vector<1x24x24xf32> to vector<24x24xf32>
    %381 = arith.mulf %369, %380 : vector<24x24xf32>
    %382 = tpu.concatenate %372, %375, %378, %381 in 1 : vector<24x24xf32>, vector<24x24xf32>, vector<24x24xf32>, vector<24x24xf32> -> vector<24x96xf32>
    %383 = vector.extract_strided_slice %234 {offsets = [0, 16], sizes = [24, 8], strides = [1, 1]} : vector<24x128xf32> to vector<24x8xf32>
    %384 = vector.extract_strided_slice %234 {offsets = [0, 48], sizes = [24, 8], strides = [1, 1]} : vector<24x128xf32> to vector<24x8xf32>
    %385 = vector.extract_strided_slice %234 {offsets = [0, 80], sizes = [24, 8], strides = [1, 1]} : vector<24x128xf32> to vector<24x8xf32>
    %386 = vector.extract_strided_slice %234 {offsets = [0, 112], sizes = [24, 8], strides = [1, 1]} : vector<24x128xf32> to vector<24x8xf32>
    %387 = tpu.concatenate %383, %384, %385, %386 in 0 : vector<24x8xf32>, vector<24x8xf32>, vector<24x8xf32>, vector<24x8xf32> -> vector<96x8xf32>
    %388 = arith.truncf %382 : vector<24x96xf32> to vector<24x96xbf16>
    %389 = arith.truncf %387 : vector<96x8xf32> to vector<96x8xbf16>
    %cst_156 = arith.constant dense<0.000000e+00> : vector<24x8xf32>
    %390 = tpu.matmul %388, %389, %cst_156 {dimension_numbers = #tpu.dot_dimension_numbers<[1], [0], [0], [1], [0, 0, 1, 1], [], []>} : vector<24x96xbf16>, vector<96x8xbf16>, vector<24x8xf32> -> vector<24x8xf32>
    %391 = vector.extract_strided_slice %231 {offsets = [0, 24], sizes = [24, 8], strides = [1, 1]} : vector<24x32xf32> to vector<24x8xf32>
    %392 = vector.extract_strided_slice %233 {offsets = [24, 0], sizes = [8, 24], strides = [1, 1]} : vector<32x24xf32> to vector<8x24xf32>
    %393 = arith.truncf %391 : vector<24x8xf32> to vector<24x8xbf16>
    %394 = arith.truncf %392 : vector<8x24xf32> to vector<8x24xbf16>
    %cst_157 = arith.constant dense<0.000000e+00> : vector<24x24xf32>
    %395 = tpu.matmul %393, %394, %cst_157 {dimension_numbers = #tpu.dot_dimension_numbers<[1], [0], [0], [1], [0, 0, 1, 1], [], []>} : vector<24x8xbf16>, vector<8x24xbf16>, vector<24x24xf32> -> vector<24x24xf32>
    %c3_158 = arith.constant 3 : index
    %c0_159 = arith.constant 0 : index
    %c0_160 = arith.constant 0 : index
    %396 = vector.load %arg2[%c3_158, %c0_159, %c0_160] : memref<4x24x24xf32, #tpu.memory_space<vmem>>, vector<1x24x24xf32>
    %397 = vector.shape_cast %396 : vector<1x24x24xf32> to vector<24x24xf32>
    %398 = arith.subf %395, %397 : vector<24x24xf32>
    %399 = arith.subf %398, %5 : vector<24x24xf32>
    %cst_161 = arith.constant dense<0xFF800000> : vector<24xf32>
    %400 = vector.multi_reduction <maximumf>, %399, %cst_161 [1] : vector<24x24xf32> to vector<24xf32>
    %401 = vector.shape_cast %400 : vector<24xf32> to vector<24x1xf32>
    %402 = vector.broadcast %401 : vector<24x1xf32> to vector<24x24xf32>
    %403 = arith.subf %399, %402 : vector<24x24xf32>
    %404 = math.exp %403 : vector<24x24xf32>
    %cst_162 = arith.constant dense<0.000000e+00> : vector<24xf32>
    %405 = vector.multi_reduction <add>, %404, %cst_162 [1] : vector<24x24xf32> to vector<24xf32>
    %406 = vector.shape_cast %405 : vector<24xf32> to vector<24x1xf32>
    %407 = math.log %406 : vector<24x1xf32>
    %408 = arith.addf %407, %401 : vector<24x1xf32>
    %409 = vector.broadcast %408 : vector<24x1xf32> to vector<24x24xf32>
    %410 = arith.subf %399, %409 : vector<24x24xf32>
    %411 = arith.subf %410, %5 : vector<24x24xf32>
    %cst_163 = arith.constant dense<0xFF800000> : vector<24xf32>
    %412 = vector.multi_reduction <maximumf>, %411, %cst_163 [1] : vector<24x24xf32> to vector<24xf32>
    %413 = vector.shape_cast %412 : vector<24xf32> to vector<24x1xf32>
    %414 = vector.broadcast %413 : vector<24x1xf32> to vector<24x24xf32>
    %415 = arith.subf %411, %414 : vector<24x24xf32>
    %416 = math.exp %415 : vector<24x24xf32>
    %cst_164 = arith.constant dense<0.000000e+00> : vector<24xf32>
    %417 = vector.multi_reduction <add>, %416, %cst_164 [1] : vector<24x24xf32> to vector<24xf32>
    %418 = vector.shape_cast %417 : vector<24xf32> to vector<24x1xf32>
    %419 = tpu.reciprocal %418 {approx = true} : vector<24x1xf32> -> vector<24x1xf32>
    %420 = vector.broadcast %419 : vector<24x1xf32> to vector<24x24xf32>
    %421 = arith.mulf %416, %420 : vector<24x24xf32>
    %c0_165 = arith.constant 0 : index
    %c0_166 = arith.constant 0 : index
    %c0_167 = arith.constant 0 : index
    %422 = vector.load %arg3[%c0_165, %c0_166, %c0_167] : memref<4x24x24xf32, #tpu.memory_space<vmem>>, vector<1x24x24xf32>
    %423 = vector.shape_cast %422 : vector<1x24x24xf32> to vector<24x24xf32>
    %424 = arith.mulf %421, %423 : vector<24x24xf32>
    %c1_168 = arith.constant 1 : index
    %c0_169 = arith.constant 0 : index
    %c0_170 = arith.constant 0 : index
    %425 = vector.load %arg3[%c1_168, %c0_169, %c0_170] : memref<4x24x24xf32, #tpu.memory_space<vmem>>, vector<1x24x24xf32>
    %426 = vector.shape_cast %425 : vector<1x24x24xf32> to vector<24x24xf32>
    %427 = arith.mulf %421, %426 : vector<24x24xf32>
    %c2_171 = arith.constant 2 : index
    %c0_172 = arith.constant 0 : index
    %c0_173 = arith.constant 0 : index
    %428 = vector.load %arg3[%c2_171, %c0_172, %c0_173] : memref<4x24x24xf32, #tpu.memory_space<vmem>>, vector<1x24x24xf32>
    %429 = vector.shape_cast %428 : vector<1x24x24xf32> to vector<24x24xf32>
    %430 = arith.mulf %421, %429 : vector<24x24xf32>
    %c3_174 = arith.constant 3 : index
    %c0_175 = arith.constant 0 : index
    %c0_176 = arith.constant 0 : index
    %431 = vector.load %arg3[%c3_174, %c0_175, %c0_176] : memref<4x24x24xf32, #tpu.memory_space<vmem>>, vector<1x24x24xf32>
    %432 = vector.shape_cast %431 : vector<1x24x24xf32> to vector<24x24xf32>
    %433 = arith.mulf %421, %432 : vector<24x24xf32>
    %434 = tpu.concatenate %424, %427, %430, %433 in 1 : vector<24x24xf32>, vector<24x24xf32>, vector<24x24xf32>, vector<24x24xf32> -> vector<24x96xf32>
    %435 = vector.extract_strided_slice %234 {offsets = [0, 24], sizes = [24, 8], strides = [1, 1]} : vector<24x128xf32> to vector<24x8xf32>
    %436 = vector.extract_strided_slice %234 {offsets = [0, 56], sizes = [24, 8], strides = [1, 1]} : vector<24x128xf32> to vector<24x8xf32>
    %437 = vector.extract_strided_slice %234 {offsets = [0, 88], sizes = [24, 8], strides = [1, 1]} : vector<24x128xf32> to vector<24x8xf32>
    %438 = vector.extract_strided_slice %234 {offsets = [0, 120], sizes = [24, 8], strides = [1, 1]} : vector<24x128xf32> to vector<24x8xf32>
    %439 = tpu.concatenate %435, %436, %437, %438 in 0 : vector<24x8xf32>, vector<24x8xf32>, vector<24x8xf32>, vector<24x8xf32> -> vector<96x8xf32>
    %440 = arith.truncf %434 : vector<24x96xf32> to vector<24x96xbf16>
    %441 = arith.truncf %439 : vector<96x8xf32> to vector<96x8xbf16>
    %cst_177 = arith.constant dense<0.000000e+00> : vector<24x8xf32>
    %442 = tpu.matmul %440, %441, %cst_177 {dimension_numbers = #tpu.dot_dimension_numbers<[1], [0], [0], [1], [0, 0, 1, 1], [], []>} : vector<24x96xbf16>, vector<96x8xbf16>, vector<24x8xf32> -> vector<24x8xf32>
    %443 = tpu.concatenate %286, %338, %390, %442 in 1 : vector<24x8xf32>, vector<24x8xf32>, vector<24x8xf32>, vector<24x8xf32> -> vector<24x32xf32>
    %444 = tpu.concatenate %230, %443 in 0 : vector<24x32xf32>, vector<24x32xf32> -> vector<48x32xf32>
    %c0_178 = arith.constant 0 : index
    %c0_179 = arith.constant 0 : index
    %445 = vector.load %arg8[%c0_178, %c0_179] : memref<32x32xf32, #tpu.memory_space<vmem>>, vector<32x32xf32>
    %446 = arith.truncf %444 : vector<48x32xf32> to vector<48x32xbf16>
    %447 = arith.truncf %445 : vector<32x32xf32> to vector<32x32xbf16>
    %cst_180 = arith.constant dense<0.000000e+00> : vector<48x32xf32>
    %448 = tpu.matmul %446, %447, %cst_180 {dimension_numbers = #tpu.dot_dimension_numbers<[1], [0], [0], [1], [0, 0, 1, 1], [], []>} : vector<48x32xbf16>, vector<32x32xbf16>, vector<48x32xf32> -> vector<48x32xf32>
    %449 = arith.addf %448, %0 : vector<48x32xf32>
    %c0_181 = arith.constant 0 : index
    %c0_182 = arith.constant 0 : index
    %450 = vector.load %arg9[%c0_181, %c0_182] : memref<1x32xf32, #tpu.memory_space<vmem>>, vector<1x32xf32>
    %c0_183 = arith.constant 0 : index
    %c0_184 = arith.constant 0 : index
    %451 = vector.load %arg10[%c0_183, %c0_184] : memref<1x32xf32, #tpu.memory_space<vmem>>, vector<1x32xf32>
    %cst_185 = arith.constant dense<0.000000e+00> : vector<48xf32>
    %452 = vector.multi_reduction <add>, %449, %cst_185 [1] : vector<48x32xf32> to vector<48xf32>
    %453 = vector.shape_cast %452 : vector<48xf32> to vector<48x1xf32>
    %cst_186 = arith.constant 3.200000e+01 : f32
    %454 = vector.broadcast %cst_186 : f32 to vector<48x1xf32>
    %455 = arith.divf %453, %454 : vector<48x1xf32>
    %456 = vector.broadcast %455 : vector<48x1xf32> to vector<48x32xf32>
    %457 = arith.subf %449, %456 : vector<48x32xf32>
    %458 = arith.mulf %457, %457 : vector<48x32xf32>
    %cst_187 = arith.constant dense<0.000000e+00> : vector<48xf32>
    %459 = vector.multi_reduction <add>, %458, %cst_187 [1] : vector<48x32xf32> to vector<48xf32>
    %460 = vector.shape_cast %459 : vector<48xf32> to vector<48x1xf32>
    %cst_188 = arith.constant 3.200000e+01 : f32
    %461 = vector.broadcast %cst_188 : f32 to vector<48x1xf32>
    %462 = arith.divf %460, %461 : vector<48x1xf32>
    %463 = vector.broadcast %455 : vector<48x1xf32> to vector<48x32xf32>
    %464 = arith.subf %449, %463 : vector<48x32xf32>
    %cst_189 = arith.constant 9.99999996E-13 : f32
    %465 = vector.broadcast %cst_189 : f32 to vector<48x1xf32>
    %466 = arith.addf %462, %465 : vector<48x1xf32>
    %467 = math.rsqrt %466 : vector<48x1xf32>
    %468 = vector.broadcast %467 : vector<48x1xf32> to vector<48x32xf32>
    %469 = arith.mulf %464, %468 : vector<48x32xf32>
    %470 = vector.broadcast %450 : vector<1x32xf32> to vector<48x32xf32>
    %471 = arith.mulf %469, %470 : vector<48x32xf32>
    %472 = vector.broadcast %451 : vector<1x32xf32> to vector<48x32xf32>
    %473 = arith.addf %471, %472 : vector<48x32xf32>
    %c0_190 = arith.constant 0 : index
    %c0_191 = arith.constant 0 : index
    %474 = vector.load %arg11[%c0_190, %c0_191] : memref<32x64xf32, #tpu.memory_space<vmem>>, vector<32x64xf32>
    %475 = arith.truncf %473 : vector<48x32xf32> to vector<48x32xbf16>
    %476 = arith.truncf %474 : vector<32x64xf32> to vector<32x64xbf16>
    %cst_192 = arith.constant dense<0.000000e+00> : vector<48x64xf32>
    %477 = tpu.matmul %475, %476, %cst_192 {dimension_numbers = #tpu.dot_dimension_numbers<[1], [0], [0], [1], [0, 0, 1, 1], [], []>} : vector<48x32xbf16>, vector<32x64xbf16>, vector<48x64xf32> -> vector<48x64xf32>
    %c0_193 = arith.constant 0 : index
    %c0_194 = arith.constant 0 : index
    %478 = vector.load %arg12[%c0_193, %c0_194] : memref<1x64xf32, #tpu.memory_space<vmem>>, vector<1x64xf32>
    %479 = vector.broadcast %478 : vector<1x64xf32> to vector<48x64xf32>
    %480 = arith.addf %477, %479 : vector<48x64xf32>
    %481 = arith.mulf %480, %480 : vector<48x64xf32>
    %482 = arith.mulf %480, %481 : vector<48x64xf32>
    %cst_195 = arith.constant 4.471500e-02 : f32
    %483 = vector.broadcast %cst_195 : f32 to vector<48x64xf32>
    %484 = arith.mulf %483, %482 : vector<48x64xf32>
    %485 = arith.addf %480, %484 : vector<48x64xf32>
    %cst_196 = arith.constant 0.797884583 : f32
    %486 = vector.broadcast %cst_196 : f32 to vector<48x64xf32>
    %487 = arith.mulf %486, %485 : vector<48x64xf32>
    %488 = math.tanh %487 : vector<48x64xf32>
    %cst_197 = arith.constant 1.000000e+00 : f32
    %489 = vector.broadcast %cst_197 : f32 to vector<48x64xf32>
    %490 = arith.addf %489, %488 : vector<48x64xf32>
    %cst_198 = arith.constant 5.000000e-01 : f32
    %491 = vector.broadcast %cst_198 : f32 to vector<48x64xf32>
    %492 = arith.mulf %491, %490 : vector<48x64xf32>
    %493 = arith.mulf %480, %492 : vector<48x64xf32>
    %c0_199 = arith.constant 0 : index
    %c0_200 = arith.constant 0 : index
    %494 = vector.load %arg13[%c0_199, %c0_200] : memref<64x32xf32, #tpu.memory_space<vmem>>, vector<64x32xf32>
    %495 = arith.truncf %493 : vector<48x64xf32> to vector<48x64xbf16>
    %496 = arith.truncf %494 : vector<64x32xf32> to vector<64x32xbf16>
    %cst_201 = arith.constant dense<0.000000e+00> : vector<48x32xf32>
    %497 = tpu.matmul %495, %496, %cst_201 {dimension_numbers = #tpu.dot_dimension_numbers<[1], [0], [0], [1], [0, 0, 1, 1], [], []>} : vector<48x64xbf16>, vector<64x32xbf16>, vector<48x32xf32> -> vector<48x32xf32>
    %c0_202 = arith.constant 0 : index
    %c0_203 = arith.constant 0 : index
    %498 = vector.load %arg14[%c0_202, %c0_203] : memref<1x32xf32, #tpu.memory_space<vmem>>, vector<1x32xf32>
    %499 = vector.broadcast %498 : vector<1x32xf32> to vector<48x32xf32>
    %500 = arith.addf %497, %499 : vector<48x32xf32>
    %501 = arith.addf %500, %473 : vector<48x32xf32>
    %c0_204 = arith.constant 0 : index
    %c0_205 = arith.constant 0 : index
    %502 = vector.load %arg15[%c0_204, %c0_205] : memref<1x32xf32, #tpu.memory_space<vmem>>, vector<1x32xf32>
    %c0_206 = arith.constant 0 : index
    %c0_207 = arith.constant 0 : index
    %503 = vector.load %arg16[%c0_206, %c0_207] : memref<1x32xf32, #tpu.memory_space<vmem>>, vector<1x32xf32>
    %cst_208 = arith.constant dense<0.000000e+00> : vector<48xf32>
    %504 = vector.multi_reduction <add>, %501, %cst_208 [1] : vector<48x32xf32> to vector<48xf32>
    %505 = vector.shape_cast %504 : vector<48xf32> to vector<48x1xf32>
    %cst_209 = arith.constant 3.200000e+01 : f32
    %506 = vector.broadcast %cst_209 : f32 to vector<48x1xf32>
    %507 = arith.divf %505, %506 : vector<48x1xf32>
    %508 = vector.broadcast %507 : vector<48x1xf32> to vector<48x32xf32>
    %509 = arith.subf %501, %508 : vector<48x32xf32>
    %510 = arith.mulf %509, %509 : vector<48x32xf32>
    %cst_210 = arith.constant dense<0.000000e+00> : vector<48xf32>
    %511 = vector.multi_reduction <add>, %510, %cst_210 [1] : vector<48x32xf32> to vector<48xf32>
    %512 = vector.shape_cast %511 : vector<48xf32> to vector<48x1xf32>
    %cst_211 = arith.constant 3.200000e+01 : f32
    %513 = vector.broadcast %cst_211 : f32 to vector<48x1xf32>
    %514 = arith.divf %512, %513 : vector<48x1xf32>
    %515 = vector.broadcast %507 : vector<48x1xf32> to vector<48x32xf32>
    %516 = arith.subf %501, %515 : vector<48x32xf32>
    %cst_212 = arith.constant 9.99999996E-13 : f32
    %517 = vector.broadcast %cst_212 : f32 to vector<48x1xf32>
    %518 = arith.addf %514, %517 : vector<48x1xf32>
    %519 = math.rsqrt %518 : vector<48x1xf32>
    %520 = vector.broadcast %519 : vector<48x1xf32> to vector<48x32xf32>
    %521 = arith.mulf %516, %520 : vector<48x32xf32>
    %522 = vector.broadcast %502 : vector<1x32xf32> to vector<48x32xf32>
    %523 = arith.mulf %521, %522 : vector<48x32xf32>
    %524 = vector.broadcast %503 : vector<1x32xf32> to vector<48x32xf32>
    %525 = arith.addf %523, %524 : vector<48x32xf32>
    %c0_213 = arith.constant 0 : index
    %c0_214 = arith.constant 0 : index
    %526 = vector.load %arg19[%c0_213, %c0_214] : memref<48x32xf32, #tpu.memory_space<vmem>>, vector<48x32xf32>
    tpu.vector_store %arg19[%c0_213, %c0_214], %525 {strides = array<i32>} : memref<48x32xf32, #tpu.memory_space<vmem>>, vector<48x32xf32>,
    %c0_215 = arith.constant 0 : index
    %c0_216 = arith.constant 0 : index
    %c0_217 = arith.constant 0 : index
    %527 = vector.load %arg4[%c0_215, %c0_216, %c0_217] : memref<4x8x48xf32, #tpu.memory_space<vmem>>, vector<1x8x48xf32>
    %528 = vector.shape_cast %527 : vector<1x8x48xf32> to vector<8x48xf32>
    %529 = arith.truncf %528 : vector<8x48xf32> to vector<8x48xbf16>
    %530 = arith.truncf %525 : vector<48x32xf32> to vector<48x32xbf16>
    %cst_218 = arith.constant dense<0.000000e+00> : vector<8x32xf32>
    %531 = tpu.matmul %529, %530, %cst_218 {dimension_numbers = #tpu.dot_dimension_numbers<[1], [0], [0], [1], [0, 0, 1, 1], [], []>} : vector<8x48xbf16>, vector<48x32xbf16>, vector<8x32xf32> -> vector<8x32xf32>
    %c1_219 = arith.constant 1 : index
    %c0_220 = arith.constant 0 : index
    %c0_221 = arith.constant 0 : index
    %532 = vector.load %arg4[%c1_219, %c0_220, %c0_221] : memref<4x8x48xf32, #tpu.memory_space<vmem>>, vector<1x8x48xf32>
    %533 = vector.shape_cast %532 : vector<1x8x48xf32> to vector<8x48xf32>
    %534 = arith.truncf %533 : vector<8x48xf32> to vector<8x48xbf16>
    %535 = arith.truncf %525 : vector<48x32xf32> to vector<48x32xbf16>
    %cst_222 = arith.constant dense<0.000000e+00> : vector<8x32xf32>
    %536 = tpu.matmul %534, %535, %cst_222 {dimension_numbers = #tpu.dot_dimension_numbers<[1], [0], [0], [1], [0, 0, 1, 1], [], []>} : vector<8x48xbf16>, vector<48x32xbf16>, vector<8x32xf32> -> vector<8x32xf32>
    %c2_223 = arith.constant 2 : index
    %c0_224 = arith.constant 0 : index
    %c0_225 = arith.constant 0 : index
    %537 = vector.load %arg4[%c2_223, %c0_224, %c0_225] : memref<4x8x48xf32, #tpu.memory_space<vmem>>, vector<1x8x48xf32>
    %538 = vector.shape_cast %537 : vector<1x8x48xf32> to vector<8x48xf32>
    %539 = arith.truncf %538 : vector<8x48xf32> to vector<8x48xbf16>
    %540 = arith.truncf %525 : vector<48x32xf32> to vector<48x32xbf16>
    %cst_226 = arith.constant dense<0.000000e+00> : vector<8x32xf32>
    %541 = tpu.matmul %539, %540, %cst_226 {dimension_numbers = #tpu.dot_dimension_numbers<[1], [0], [0], [1], [0, 0, 1, 1], [], []>} : vector<8x48xbf16>, vector<48x32xbf16>, vector<8x32xf32> -> vector<8x32xf32>
    %c3_227 = arith.constant 3 : index
    %c0_228 = arith.constant 0 : index
    %c0_229 = arith.constant 0 : index
    %542 = vector.load %arg4[%c3_227, %c0_228, %c0_229] : memref<4x8x48xf32, #tpu.memory_space<vmem>>, vector<1x8x48xf32>
    %543 = vector.shape_cast %542 : vector<1x8x48xf32> to vector<8x48xf32>
    %544 = arith.truncf %543 : vector<8x48xf32> to vector<8x48xbf16>
    %545 = arith.truncf %525 : vector<48x32xf32> to vector<48x32xbf16>
    %cst_230 = arith.constant dense<0.000000e+00> : vector<8x32xf32>
    %546 = tpu.matmul %544, %545, %cst_230 {dimension_numbers = #tpu.dot_dimension_numbers<[1], [0], [0], [1], [0, 0, 1, 1], [], []>} : vector<8x48xbf16>, vector<48x32xbf16>, vector<8x32xf32> -> vector<8x32xf32>
    %547 = tpu.concatenate %531, %536, %541, %546 in 1 : vector<8x32xf32>, vector<8x32xf32>, vector<8x32xf32>, vector<8x32xf32> -> vector<8x128xf32>
    %c0_231 = arith.constant 0 : index
    %c0_232 = arith.constant 0 : index
    %548 = vector.load %arg17[%c0_231, %c0_232] : memref<128x32xf32, #tpu.memory_space<vmem>>, vector<128x32xf32>
    %549 = arith.truncf %547 : vector<8x128xf32> to vector<8x128xbf16>
    %550 = arith.truncf %548 : vector<128x32xf32> to vector<128x32xbf16>
    %cst_233 = arith.constant dense<0.000000e+00> : vector<8x32xf32>
    %551 = tpu.matmul %549, %550, %cst_233 {dimension_numbers = #tpu.dot_dimension_numbers<[1], [0], [0], [1], [0, 0, 1, 1], [], []>} : vector<8x128xbf16>, vector<128x32xbf16>, vector<8x32xf32> -> vector<8x32xf32>
    %c0_234 = arith.constant 0 : index
    %c0_235 = arith.constant 0 : index
    %552 = vector.load %arg18[%c0_234, %c0_235] : memref<1x32xf32, #tpu.memory_space<vmem>>, vector<1x32xf32>
    %553 = vector.broadcast %552 : vector<1x32xf32> to vector<8x32xf32>
    %554 = arith.addf %551, %553 : vector<8x32xf32>
    %c0_236 = arith.constant 0 : index
    %c0_237 = arith.constant 0 : index
    %555 = vector.load %arg20[%c0_236, %c0_237] : memref<8x32xf32, #tpu.memory_space<vmem>>, vector<8x32xf32>
    tpu.vector_store %arg20[%c0_236, %c0_237], %554 {strides = array<i32>} : memref<8x32xf32, #tpu.memory_space<vmem>>, vector<8x32xf32>,
    return
  }
}

</mosaic_0001>

<bundles_post_ra>
// kernel: euclidean_transformer_layer.1
= control target key start
LH: loop header
LB: loop body
LE: loop exit
PB: predicated region body
PF: predicated region fallthrough
CT: control target
= control target key end

     0   :  { %s6865_s0 = inlined_call_operand.vmem [shape: f32[48,32], index: 0, kind: input, shape index: {}]   ;;  %s6866_s1 = inlined_call_operand.vmem [shape: f32[24,24], index: 1, kind: input, shape index: {}]   ;;  %s6867_s2 = inlined_call_operand.vmem [shape: f32[4,24,24], index: 2, kind: input, shape index: {}]   ;;  %s6868_s3 = inlined_call_operand.vmem [shape: f32[4,24,24], index: 3, kind: input, shape index: {}]   ;;  %s6869_s4 = inlined_call_operand.vmem [shape: f32[4,8,48], index: 4, kind: input, shape index: {}]   ;;  %s6870_s5 = inlined_call_operand.vmem [shape: f32[32,32], index: 5, kind: input, shape index: {}]   ;;  %s6871_s6 = inlined_call_operand.vmem [shape: f32[32,32], index: 6, kind: input, shape index: {}]   ;;  %s6872_s7 = inlined_call_operand.vmem [shape: f32[32,128], index: 7, kind: input, shape index: {}]   ;;  %s6873_s8 = inlined_call_operand.hbm [shape: f32[32,32], index: 8, kind: input, shape index: {}]   ;;  %s6874_s9 = inlined_call_operand.hbm [shape: f32[1,32], index: 9, kind: input, shape index: {}]   ;;  %s6875_s10 = inlined_call_operand.hbm [shape: f32[1,32], index: 10, kind: input, shape index: {}]   ;;  %s6876_s11 = inlined_call_operand.hbm [shape: f32[32,64], index: 11, kind: input, shape index: {}]   ;;  %s6877_s12 = inlined_call_operand.hbm [shape: f32[1,64], index: 12, kind: input, shape index: {}]   ;;  %s6878_s13 = inlined_call_operand.vmem [shape: f32[64,32], index: 13, kind: input, shape index: {}]   ;;  %s6879_s14 = inlined_call_operand.hbm [shape: f32[1,32], index: 14, kind: input, shape index: {}]   ;;  %s6880_s15 = inlined_call_operand.hbm [shape: f32[1,32], index: 15, kind: input, shape index: {}]   ;;  %s6881_s16 = inlined_call_operand.hbm [shape: f32[1,32], index: 16, kind: input, shape index: {}]   ;;  %s6882_s17 = inlined_call_operand.vmem [shape: f32[128,32], index: 17, kind: input, shape index: {}]   ;;  %s6883_s18 = inlined_call_operand.hbm [shape: f32[1,32], index: 18, kind: input, shape index: {}]   ;;  %s6884_s19 = inlined_call_operand.vmem [shape: f32[48,32], index: 19, kind: output, shape index: {0}]   ;;  %s6885_s20 = inlined_call_operand.hbm [shape: f32[8,32], index: 20, kind: output, shape index: {1}]  }
   0x1   :  { %6893 = sst [smem:[#allocation24_spill]] %s6865_s0 }
   0x2   :  { %6894 = sst [smem:[#allocation25_spill]] %s6866_s1 }
   0x3   :  { %6895 = sst [smem:[#allocation26_spill]] %s6867_s2 }
   0x4   :  { %6896 = sst [smem:[#allocation27_spill]] %s6868_s3 }
   0x5   :  { %6897 = sst [smem:[#allocation28_spill]] %s6869_s4 }
   0x6   :  { %26 = vsyncpa [#allocation3], 0 }
   0x7   :  { %27 = vsyncpa [#allocation6], 0 }
   0x8   :  { %28 = vsyncpa [#allocation9], 0 }
   0x9   :  { %29 = vsyncpa [#allocation12], 0 }
   0xa   :  { %30 = vsyncpa [#allocation15], 0 }
   0xb   :  { %31 = vsyncpa [#allocation4], 0  ;;  %s4976_s1 = smov [#allocation5]   ;;  %s4744_s2 = scalar_lea.hbm %s6874_s9, 16 }
   0xc   :  { %s66_s22 = sshll.u32 %s4976_s1, 4  ;;  %p4745_p0 = scmp.ne.s32.totalorder %s6874_s9, %s4744_s2  ;;  %s67_s22 = int_to_ptr.vmem [resolvable:$true] %s66_s22 }
   0xd   :  { %p4748_p1 = scmp.lt.u32.totalorder %s4744_s2, %s6874_s9 }
   0xf   :  { %p4750_p2 = pnand %p4748_p1, %p4745_p0 }
  0x11   :  { %4753 = shalt.err (!%p4750_p2)
}
  0x12   :  { %s4754_s28 = scalar_lea.vmem %s67_s22, 16  ;;  %s4758_s4 = scalar_lea.vmem %s67_s22, 32 }
  0x13   :  { %p4755_p3 = scmp.ne.s32.totalorder %s67_s22, %s4754_s28  ;;  %p4759_p4 = scmp.lt.s32.totalorder %s67_s22, %s67_s22 }
  0x14   :  { %p4760_p5 = scmp.lt.s32.totalorder %s4758_s4, %s4754_s28 }
  0x16   :  { %p4761_p6 = por %p4760_p5, %p4759_p4 }
  0x18   :  { %p4762_p7 = pnand %p4761_p6, %p4755_p3 }
  0x1a   :  { %4765 = shalt.err (!%p4762_p7)
}
  0x1b   :  { %69 = dma.hbm_to_vmem [thread:$0]  %s6874_s9, 16, %s67_s22, [#allocation6]  }
  0x1c   :  { %s4977_s0 = smov [#allocation8]   ;;  %s4978_s1 = smov [#allocation11]  }
  0x1d   :  { %s85_s21 = sshll.u32 %s4977_s0, 4  ;;  %s110_s23 = sshll.u32 %s4978_s1, 4  ;;  %s86_s21 = int_to_ptr.vmem [resolvable:$true] %s85_s21  ;;  %s111_s23 = int_to_ptr.vmem [resolvable:$true] %s110_s23 }
  0x1e   :  { %s4766_s25 = scalar_lea.hbm %s6876_s11, 512 }
  0x1f   :  { %p4767_p8 = scmp.ne.s32.totalorder %s6876_s11, %s4766_s25  ;;  %p4770_p9 = scmp.lt.u32.totalorder %s4766_s25, %s6876_s11 }
  0x21   :  { %p4772_p10 = pnand %p4770_p9, %p4767_p8 }
  0x23   :  { %4775 = shalt.err (!%p4772_p10)
}
  0x24   :  { %s4776_s9 = scalar_lea.vmem %s86_s21, 512  ;;  %p4781_p12 = scmp.lt.s32.totalorder %s86_s21, %s86_s21 }
  0x25   :  { %p4777_p11 = scmp.ne.s32.totalorder %s86_s21, %s4776_s9  ;;  %p4782_p13 = scmp.lt.s32.totalorder %s4776_s9, %s4776_s9 }
  0x27   :  { %p4783_p0 = por %p4782_p13, %p4781_p12 }
  0x29   :  { %p4784_p1 = pnand %p4783_p0, %p4777_p11 }
  0x2b   :  { %4787 = shalt.err (!%p4784_p1)
}
  0x2c   :  { %s4979_s22 = smov 128   ;;  %s4980_s4 = smov 8  }
  0x2d   :  { %91 = dma.hbm_to_vmem [thread:$0]  %s6876_s11, 512, %s86_s21, [#allocation9], %s4979_s22, %s4979_s22, %s4980_s4  }
  0x2e   :  { %s4788_s24 = scalar_lea.hbm %s6879_s14, 16 }
  0x2f   :  { %p4789_p2 = scmp.ne.s32.totalorder %s6879_s14, %s4788_s24  ;;  %p4792_p3 = scmp.lt.u32.totalorder %s4788_s24, %s6879_s14 }
  0x31   :  { %p4794_p4 = pnand %p4792_p3, %p4789_p2 }
  0x33   :  { %4797 = shalt.err (!%p4794_p4)
}
  0x34   :  { %s4798_s27 = scalar_lea.vmem %s111_s23, 16  ;;  %s4802_s28 = scalar_lea.vmem %s111_s23, 32 }
  0x35   :  { %p4799_p5 = scmp.ne.s32.totalorder %s111_s23, %s4798_s27  ;;  %p4803_p6 = scmp.lt.s32.totalorder %s111_s23, %s111_s23 }
  0x36   :  { %p4804_p7 = scmp.lt.s32.totalorder %s4802_s28, %s4798_s27 }
  0x38   :  { %p4805_p8 = por %p4804_p7, %p4803_p6 }
  0x3a   :  { %p4806_p9 = pnand %p4805_p8, %p4799_p5 }
  0x3c   :  { %4809 = shalt.err (!%p4806_p9)
}
  0x3d   :  { %113 = dma.hbm_to_vmem [thread:$0]  %s6879_s14, 16, %s111_s23, [#allocation12]  }
  0x3e   :  { %s4981_s9 = smov [#allocation14]   ;;  %s4982_s30 = smov [#allocation2]  }
  0x3f   :  { %s130_s29 = sshll.u32 %s4981_s9, 4  ;;  %s53_s0 = sshll.u32 %s4982_s30, 4  ;;  %s131_s29 = int_to_ptr.vmem [resolvable:$true] %s130_s29  ;;  %s54_s0 = int_to_ptr.vmem [resolvable:$true] %s53_s0 }
  0x40   :  { %s4810_s2 = scalar_lea.hbm %s6881_s16, 16 }
  0x41   :  { %p4811_p10 = scmp.ne.s32.totalorder %s6881_s16, %s4810_s2  ;;  %p4814_p11 = scmp.lt.u32.totalorder %s4810_s2, %s6881_s16 }
  0x43   :  { %p4816_p12 = pnand %p4814_p11, %p4811_p10 }
  0x45   :  { %4819 = shalt.err (!%p4816_p12)
}
  0x46   :  { %s4820_s14 = scalar_lea.vmem %s131_s29, 16  ;;  %s4824_s23 = scalar_lea.vmem %s131_s29, 32 }
  0x47   :  { %p4821_p13 = scmp.ne.s32.totalorder %s131_s29, %s4820_s14  ;;  %p4825_p0 = scmp.lt.s32.totalorder %s131_s29, %s131_s29 }
  0x48   :  { %p4826_p1 = scmp.lt.s32.totalorder %s4824_s23, %s4820_s14 }
  0x4a   :  { %p4827_p2 = por %p4826_p1, %p4825_p0 }
  0x4c   :  { %p4828_p3 = pnand %p4827_p2, %p4821_p13 }
  0x4e   :  { %4831 = shalt.err (!%p4828_p3)
}
  0x4f   :  { %133 = dma.hbm_to_vmem [thread:$0]  %s6881_s16, 16, %s131_s29, [#allocation15]  }
  0x50   :  { %s4832_s30 = scalar_lea.hbm %s6873_s8, 512 }
  0x51   :  { %p4833_p4 = scmp.ne.s32.totalorder %s6873_s8, %s4832_s30  ;;  %p4836_p5 = scmp.lt.u32.totalorder %s4832_s30, %s6873_s8 }
  0x53   :  { %p4838_p6 = pnand %p4836_p5, %p4833_p4 }
  0x55   :  { %4841 = shalt.err (!%p4838_p6)
}
  0x56   :  { %s4842_s3 = scalar_lea.vmem %s54_s0, 512  ;;  %p4847_p8 = scmp.lt.s32.totalorder %s54_s0, %s54_s0 }
  0x57   :  { %p4843_p7 = scmp.ne.s32.totalorder %s54_s0, %s4842_s3  ;;  %p4848_p9 = scmp.lt.s32.totalorder %s4842_s3, %s4842_s3 }
  0x59   :  { %p4849_p10 = por %p4848_p9, %p4847_p8 }
  0x5b   :  { %p4850_p11 = pnand %p4849_p10, %p4843_p7 }
  0x5d   :  { %4853 = shalt.err (!%p4850_p11)
}
  0x5e   :  { %59 = dma.hbm_to_vmem [thread:$0]  %s6873_s8, 512, %s54_s0, [#allocation3], %s4979_s22, %s4979_s22, %s4980_s4  }
  0x5f   :  { %s4983_s26 = smov [#allocation7]   ;;  %s4984_s14 = smov [#allocation10]  }
  0x60   :  { %s76_s27 = sshll.u32 %s4983_s26, 4  ;;  %s98_s23 = sshll.u32 %s4984_s14, 4  ;;  %s77_s27 = int_to_ptr.vmem [resolvable:$true] %s76_s27  ;;  %s99_s23 = int_to_ptr.vmem [resolvable:$true] %s98_s23 }
  0x61   :  { %s4854_s21 = scalar_lea.hbm %s6875_s10, 16 }
  0x62   :  { %p4855_p12 = scmp.ne.s32.totalorder %s6875_s10, %s4854_s21  ;;  %p4858_p13 = scmp.lt.u32.totalorder %s4854_s21, %s6875_s10 }
  0x64   :  { %p4860_p0 = pnand %p4858_p13, %p4855_p12 }
  0x66   :  { %4863 = shalt.err (!%p4860_p0)
}
  0x67   :  { %s4864_s8 = scalar_lea.vmem %s77_s27, 16  ;;  %s4868_s22 = scalar_lea.vmem %s77_s27, 32 }
  0x68   :  { %p4865_p1 = scmp.ne.s32.totalorder %s77_s27, %s4864_s8  ;;  %p4869_p2 = scmp.lt.s32.totalorder %s77_s27, %s77_s27 }
  0x69   :  { %p4870_p3 = scmp.lt.s32.totalorder %s4868_s22, %s4864_s8 }
  0x6b   :  { %p4871_p4 = por %p4870_p3, %p4869_p2 }
  0x6d   :  { %p4872_p5 = pnand %p4871_p4, %p4865_p1 }
  0x6f   :  { %4875 = shalt.err (!%p4872_p5)
}
  0x70   :  { %79 = dma.hbm_to_vmem [thread:$0]  %s6875_s10, 16, %s77_s27, [#allocation6]  }
  0x71   :  { %s4876_s16 = scalar_lea.hbm %s6877_s12, 16 }
  0x72   :  { %p4877_p6 = scmp.ne.s32.totalorder %s6877_s12, %s4876_s16  ;;  %p4880_p7 = scmp.lt.u32.totalorder %s4876_s16, %s6877_s12 }
  0x74   :  { %p4882_p8 = pnand %p4880_p7, %p4877_p6 }
  0x76   :  { %4885 = shalt.err (!%p4882_p8)
}
  0x77   :  { %s4886_s11 = scalar_lea.vmem %s99_s23, 16  ;;  %s4890_s21 = scalar_lea.vmem %s99_s23, 32 }
  0x78   :  { %p4887_p9 = scmp.ne.s32.totalorder %s99_s23, %s4886_s11  ;;  %p4891_p10 = scmp.lt.s32.totalorder %s99_s23, %s99_s23 }
  0x79   :  { %p4892_p11 = scmp.lt.s32.totalorder %s4890_s21, %s4886_s11 }
  0x7b   :  { %p4893_p12 = por %p4892_p11, %p4891_p10 }
  0x7d   :  { %p4894_p13 = pnand %p4893_p12, %p4887_p9 }
  0x7f   :  { %4897 = shalt.err (!%p4894_p13)
}
  0x80   :  { %101 = dma.hbm_to_vmem [thread:$0]  %s6877_s12, 16, %s99_s23, [#allocation9]  }
  0x81   :  { %s4985_s9 = smov [#allocation13]   ;;  %s4986_s1 = smov [#allocation16]  }
  0x82   :  { %s120_s30 = sshll.u32 %s4985_s9, 4  ;;  %s142_s24 = sshll.u32 %s4986_s1, 4  ;;  %s121_s30 = int_to_ptr.vmem [resolvable:$true] %s120_s30  ;;  %s143_s24 = int_to_ptr.vmem [resolvable:$true] %s142_s24 }
  0x83   :  { %s4898_s0 = scalar_lea.hbm %s6880_s15, 16 }
  0x84   :  { %p4899_p0 = scmp.ne.s32.totalorder %s6880_s15, %s4898_s0  ;;  %p4902_p1 = scmp.lt.u32.totalorder %s4898_s0, %s6880_s15 }
  0x86   :  { %p4904_p2 = pnand %p4902_p1, %p4899_p0 }
  0x88   :  { %4907 = shalt.err (!%p4904_p2)
}
  0x89   :  { %s4908_s12 = scalar_lea.vmem %s121_s30, 16  ;;  %s4912_s23 = scalar_lea.vmem %s121_s30, 32 }
  0x8a   :  { %p4909_p3 = scmp.ne.s32.totalorder %s121_s30, %s4908_s12  ;;  %p4913_p4 = scmp.lt.s32.totalorder %s121_s30, %s121_s30 }
  0x8b   :  { %p4914_p5 = scmp.lt.s32.totalorder %s4912_s23, %s4908_s12 }
  0x8d   :  { %p4915_p6 = por %p4914_p5, %p4913_p4 }
  0x8f   :  { %p4916_p7 = pnand %p4915_p6, %p4909_p3 }
  0x91   :  { %4919 = shalt.err (!%p4916_p7)
}
  0x92   :  { %123 = dma.hbm_to_vmem [thread:$0]  %s6880_s15, 16, %s121_s30, [#allocation12]  }
  0x93   :  { %s4920_s11 = scalar_lea.hbm %s6883_s18, 16 }
  0x94   :  { %p4921_p8 = scmp.ne.s32.totalorder %s6883_s18, %s4920_s11  ;;  %p4924_p9 = scmp.lt.u32.totalorder %s4920_s11, %s6883_s18 }
  0x96   :  { %p4926_p10 = pnand %p4924_p9, %p4921_p8 }
  0x98   :  { %4929 = shalt.err (!%p4926_p10)
}
  0x99   :  { %s4930_s1 = scalar_lea.vmem %s143_s24, 16  ;;  %s4934_s8 = scalar_lea.vmem %s143_s24, 32 }
  0x9a   :  { %p4931_p11 = scmp.ne.s32.totalorder %s143_s24, %s4930_s1  ;;  %p4935_p12 = scmp.lt.s32.totalorder %s143_s24, %s143_s24 }
  0x9b   :  { %p4936_p13 = scmp.lt.s32.totalorder %s4934_s8, %s4930_s1 }
  0x9d   :  { %p4937_p0 = por %p4936_p13, %p4935_p12 }
  0x9f   :  { %p4938_p1 = pnand %p4937_p0, %p4931_p11 }
  0xa1   :  { %4941 = shalt.err (!%p4938_p1)
}
  0xa2   :  { %145 = dma.hbm_to_vmem [thread:$0]  %s6883_s18, 16, %s143_s24, [#allocation15]  }
  0xa3   :  { %4964 = dma.done.wait [#allocation3], 512  }
  0xa4   :  { %4965 = vsyncadd [#allocation3], 4294966784 }
  0xa5   :  { %4966 = dma.done.wait [#allocation6], 32  }
  0xa6   :  { %4967 = vsyncadd [#allocation6], 4294967264 }
  0xa7   :  { %4968 = dma.done.wait [#allocation9], 528  }
  0xa8   :  { %4969 = vsyncadd [#allocation9], 4294966768 }
  0xa9   :  { %4970 = dma.done.wait [#allocation12], 32  }
  0xaa   :  { %4971 = vsyncadd [#allocation12], 4294967264 }
  0xab   :  { %4972 = dma.done.wait [#allocation15], 32  }
  0xac   :  { %4973 = vsyncadd [#allocation15], 4294967264  ;;  %v6891_v0 = vmov 0.0   ;;  %vm4988_vm0 = vmmov 0   ;;  %v265_v1 = vld [vmem:[%s6871_s6] sm:$0xff]  ;;  %v266_v2 = vld [vmem:[%s6871_s6 + $0x8] sm:$0xff] }
  0xad   :  { %3883 = vmatprep.subr.bf16.mxu1 %v6891_v0  ;;  %3887 = vmatprep.mubr.msk.bf16.mxu1 %vm4988_vm0, %v6891_v0  ;;  %v267_v3 = vld [vmem:[%s6871_s6 + $0x10] sm:$0xff]  ;;  %v269_v4 = vpack.c.bf16 %v266_v2, %v265_v1  ;;  %v268_v5 = vld [vmem:[%s6871_s6 + $0x18] sm:$0xff]  ;;  %s6898_s29 = sld [smem:[#allocation24_spill]]  ;;  %v189_v8 = vld [vmem:[%s6870_s5] sm:$0xff]  ;;  %vm198_vm1 = vcmask 261120   ;;  %vm426_vm2 = vcmask 64512  }
  0xae   :  { %3867 = vmatprep.subr.bf16.mxu0 %v6891_v0  ;;  %3871 = vmatprep.mubr.msk.bf16.mxu0 %vm4988_vm0, %v6891_v0  ;;  %v270_v9 = vpack.c.bf16 %v268_v5, %v267_v3  ;;  %v190_v10 = vld [vmem:[%s6870_s5 + $0x8] sm:$0xff]  ;;  %v191_v11 = vld [vmem:[%s6870_s5 + $0x10] sm:$0xff]  ;;  %v192_v12 = vld [vmem:[%s6870_s5 + $0x18] sm:$0xff]  ;;  %vm433_vm3 = vcmask 1043456   ;;  %s6899_s3 = sld [smem:[#allocation25_spill]]  ;;  %s6900_s11 = sld [smem:[#allocation26_spill]] }
  0xaf   :  { %3884 = vmatpush3.bf16.msra.mxu1 %v269_v4  ;;  %v196_v13 = vpack.c.bf16 %v190_v10, %v189_v8  ;;  %v197_v15 = vpack.c.bf16 %v192_v12, %v191_v11  ;;  %vm494_vm4 = vcmask 195584   ;;  %v328_v12 = vld [vmem:[%s6872_s7] sm:$0xff]  ;;  %s4990_s22 = smov 64   ;;  %s4991_s0 = smov 32   ;;  %vm636_vm5 = vcmask 392192  }
  0xb0   :  { %3885 = vmatprep.subr.bf16.mxu1 %v6891_v0  ;;  %s4992_s27 = smov 48   ;;  %s4993_s5 = smov 24   ;;  %vm640_vm6 = vcmask 588800   ;;  %vm682_vm7 = vcmask 785408   ;;  %vm1618_vm8 = vcmask 130048   ;;  %vm3160_vm9 = vcmask 523264  }
  0xb1   :  { %3868 = vmatpush3.bf16.msra.mxu0 %v196_v13  ;;  %v329_v13 = vld [vmem:[%s6872_s7 + $0x8] sm:$0xff]  ;;  %s4994_s18 = smov 72   ;;  %s4995_s24 = smov 120  }
  0xb2   :  { %3869 = vmatprep.subr.bf16.mxu0 %v6891_v0  ;;  %s4996_s15 = smov 112   ;;  %s4997_s30 = smov 104  }
  0xb3   :  { %v174_v6 = vld [vmem:[%s6898_s29] sm:$0xff]  ;;  %v175_v7 = vld [vmem:[%s6898_s29 + $0x8] sm:$0xff]  ;;  %3886 = vmatpush3.bf16.msra.mxu1 %v270_v9  ;;  %v176_v16 = vld [vmem:[%s6898_s29 + $0x10] sm:$0xff] }
  0xb4   :  { %v5256_v14 = vpack.c.bf16 %v175_v7, %v174_v6  ;;  %v177_v17 = vld [vmem:[%s6898_s29 + $0x18] sm:$0xff]  ;;  %v178_v19 = vld [vmem:[%s6898_s29 + $0x20] sm:$0xff]  ;;  %v179_v20 = vld [vmem:[%s6898_s29 + $0x28] sm:$0xff] }
  0xb5   :  { %3870 = vmatpush3.bf16.msra.mxu0 %v197_v15  ;;  %v5272_v18 = vpack.c.bf16 %v177_v17, %v176_v16  ;;  %v5290_v21 = vpack.c.bf16 %v179_v20, %v178_v19  ;;  %v180_v50 = vld [vmem:[%s6899_s3] sm:$0xff]  ;;  %v181_v51 = vld [vmem:[%s6899_s3 + $0x8] sm:$0xff]  ;;  %v182_v54 = vld [vmem:[%s6899_s3 + $0x10] sm:$0xff]  ;;  %v332_v16 = vpack.c.bf16 %v329_v13, %v328_v12  ;;  %s6901_s3 = sld [smem:[#allocation27_spill]] }
  0xb6   :  { %3888 = vmatmul.mubr.msk.bf16.vlgmr.msra.gmra.mrb[0].mxu1 %vm198_vm1, %v5256_v14  ;;  %3899 = vmatprep.subr.bf16.mxu0 %v6891_v0  ;;  %v183_v52 = vsub.f32 1.0, %v180_v50  ;;  %v184_v53 = vsub.f32 1.0, %v181_v51  ;;  %v485_v55 = vld [vmem:[%s6900_s11] sm:$0xff]  ;;  %v486_v59 = vld [vmem:[%s6900_s11 + $0x8] sm:$0xff]  ;;  %v185_v60 = vsub.f32 1.0, %v182_v54  ;;  %v487_v1 = vld [vmem:[%s6900_s11 + $0x10] sm:$0xff] }
  0xb7   :  { %3891 = vmatprep.mubr.msk.bf16.mxu1 %vm4988_vm0, %v6891_v0  ;;  %v330_v15 = vld [vmem:[%s6872_s7 + $0x10] sm:$0xff]  ;;  %v331_v17 = vld [vmem:[%s6872_s7 + $0x18] sm:$0xff]  ;;  %s4989_s7 = smov 96  }
  0xb8   :  { %3872 = vmatmul.mubr.msk.bf16.vlgmr.msra.gmra.mrb[0].mxu0 %vm198_vm1, %v5256_v14  ;;  %v5328_v57 = vmul.f32 1e+30, %v183_v52  ;;  %v5333_v63 = vmul.f32 1e+30, %v184_v53  ;;  %v5341_v5 = vmul.f32 1e+30, %v185_v60  ;;  %v333_v19 = vpack.c.bf16 %v331_v17, %v330_v15 }
  0xb9   :  { %3875 = vmatprep.mubr.msk.bf16.mxu0 %vm4988_vm0, %v6891_v0  ;;  %3900 = vmatpush3.bf16.msra.mxu0 %v332_v16 }
  0xba   :  { %3901 = vmatprep.subr.bf16.mxu0 %v6891_v0 }
  0xbd   :  { %3902 = vmatpush3.bf16.msra.mxu0 %v333_v19 }
  0xbe   :  { %3892 = vmatmul.mubr.msk.bf16.gmra.mrb[4].mxu1 %vm198_vm1, %v5272_v18 }
  0xbf   :  { %3895 = vmatprep.mubr.msk.bf16.mxu1 %vm4988_vm0, %v6891_v0 }
  0xc0   :  { %3876 = vmatmul.mubr.msk.bf16.gmra.mrb[4].mxu0 %vm198_vm1, %v5272_v18 }
  0xc1   :  { %3879 = vmatprep.mubr.msk.bf16.mxu0 %vm4988_vm0, %v6891_v0 }
  0xc6   :  { %3896 = vmatmul.mubr.msk.bf16.gmra.mrb[8].mxu1 %vm198_vm1, %v5290_v21 }
  0xc8   :  { %3880 = vmatmul.mubr.msk.bf16.gmra.mrb[8].mxu0 %vm198_vm1, %v5290_v21 }
  0xc9   :  { %3903 = vmatprep.mubr.msk.bf16.mxu0 %vm4988_vm0, %v6891_v0 }
  0xd0   :  { %3904 = vmatmul.mubr.msk.bf16.vlgmr.msra.gmra.mrb[12].mxu0 %vm198_vm1, %v5256_v14 }
  0xd1   :  { %3907 = vmatprep.mubr.msk.bf16.mxu0 %vm4988_vm0, %v6891_v0 }
  0xd8   :  { %3908 = vmatmul.mubr.msk.bf16.gmra.mrb[16].mxu0 %vm198_vm1, %v5272_v18 }
  0xd9   :  { %3911 = vmatprep.mubr.msk.bf16.mxu0 %vm4988_vm0, %v6891_v0 }
  0xe0   :  { %3912 = vmatmul.mubr.msk.bf16.gmra.mrb[20].mxu0 %vm198_vm1, %v5290_v21 }
 0x189   :  { %v305_v22 = vpop.f32.mrb[0].mxu1 }
 0x18a   :  { %391 = vxpose.xlu0.b32.start [1/3] (short) (narrow) %v305_v22, 32  ;;  %v3889_v23 = vpop.f32.mrb[1].mxu1 }
 0x18b   :  { %v308_v24 = vpop.f32.mrb[2].mxu1  ;;  %v242_v26 = vpop.f32.mrb[0].mxu0 }
 0x18c   :  { %v3890_v25 = vpop.f32.mrb[3].mxu1  ;;  %v3873_v27 = vpop.f32.mrb[1].mxu0 }
 0x18d   :  { %v245_v28 = vpop.f32.mrb[2].mxu0 }
 0x18e   :  { %392 = vxpose.xlu0.b32.cont [2/3] (short) (narrow) %v308_v24, 32  ;;  %v5298_v29 = vpack.c.bf16 %v245_v28, %v242_v26  ;;  %v3874_v30 = vpop.f32.mrb[3].mxu0 }
 0x190   :  { %3917 = vmatprep.mubr.msk.bf16.mxu1 %vm426_vm2, %v5298_v29 }
 0x191   :  { %v313_v31 = vpop.f32.mrb[4].mxu1 }
 0x192   :  { %393 = vxpose.xlu0.b32.end [3/3] (short) (narrow) %v313_v31, 32  ;;  %v3893_v32 = vpop.f32.mrb[5].mxu1 }
 0x193   :  { %v5302_v33 = vpop.f32.mrb[6].mxu1  ;;  %v250_v35 = vpop.f32.mrb[4].mxu0 }
 0x194   :  { %v3894_v34 = vpop.f32.mrb[7].mxu1  ;;  %v3877_v36 = vpop.f32.mrb[5].mxu0  ;;  %v5311_v48 = vpack.c.bf16 %v250_v35, %v250_v35 }
 0x195   :  { %v253_v37 = vpop.f32.mrb[6].mxu0 }
 0x196   :  { %v3878_v38 = vpop.f32.mrb[7].mxu0 }
 0x199   :  { %v5304_v39 = vpop.f32.mrb[8].mxu1 }
 0x19a   :  { %v3897_v40 = vpop.f32.mrb[9].mxu1 }
 0x19b   :  { %v5306_v41 = vpop.f32.mrb[10].mxu1  ;;  %v258_v42 = vpop.f32.mrb[8].mxu0 }
 0x19c   :  { %v3898_v43 = vpop.f32.mrb[11].mxu1  ;;  %v5308_v44 = vpack.c.bf16 %v258_v42, %v253_v37  ;;  %v3881_v45 = vpop.f32.mrb[9].mxu0 }
 0x20a   :  { %v407_v46 = vpop.trf.xlu0 }
 0x20b   :  { %v425_v47 = vpack.c.bf16 %v407_v46, %v407_v46 }
 0x20d   :  { %4203 = vmatprep.subr.msk.bf16.mxu1 %vm433_vm3, %v425_v47  ;;  %v435_v49 = vsel %vm433_vm3, %v425_v47, 0 }
 0x20e   :  { %3916 = vmatpush3.bf16.msra.mxu1 %v435_v49  ;;  %v5384_v35 = vpop.trf.xlu0 }
 0x211   :  { %3918 = vmatmul.mubr.msk.bf16.vlgmr.msra.gmra.mrb[12].mxu1 %vm426_vm2, %v5311_v48 }
 0x212   :  { %v5386_v36 = vpop.trf.xlu0 }
 0x216   :  { %v5388_v37 = vpop.trf.xlu0 }
 0x2e4   :  { %v3919_v56 = vpop.f32.mrb[12].mxu1 }
 0x2e5   :  { %v471_v58 = vpop.f32.mrb[13].mxu1  ;;  %v490_v6 = vsub.f32 %v3919_v56, %v487_v1 }
 0x2e6   :  { %v488_v61 = vsub.f32 %v471_v58, %v485_v55  ;;  %v3920_v62 = vpop.f32.mrb[14].mxu1 }
 0x2e7   :  { %v474_v2 = vpop.f32.mrb[15].mxu1  ;;  %v5349_v9 = vsub.f32 %v490_v6, %v5341_v5 }
 0x2e8   :  { %v5339_v3 = vsub.f32 %v488_v61, %v5328_v57  ;;  %v489_v4 = vsub.f32 %v474_v2, %v486_v59  ;;  %v5399_v2 = vpop.f32.mrb[10].mxu0 }
 0x2e9   :  { %v501_v11 = vsel %vm494_vm4, %v5349_v9, -inf }
 0x2ea   :  { %v5344_v7 = vsub.f32 %v489_v4, %v5333_v63  ;;  %v495_v8 = vsel %vm494_vm4, %v5339_v3, -inf }
 0x2eb   :  { %496 = vmax.xlane.f32.xlu1 %v495_v8 }
 0x2ec   :  { %v498_v10 = vsel %vm494_vm4, %v5344_v7, -inf }
 0x2ef   :  { %499 = vmax.xlane.f32.xlu1 %v498_v10 }
 0x2f3   :  { %502 = vmax.xlane.f32.xlu1 %v501_v11 }
 0x378   :  { %v497_v20 = vpop.xlane.xlu1 %496 }
 0x379   :  { %v504_v22 = vsub.f32 %v5339_v3, %v497_v20 }
 0x37b   :  { %v507_v23 = vmul.f32 1.442695, %v504_v22 }
 0x37c   :  { %v500_v24 = vpop.xlane.xlu1 %499 }
 0x37d   :  { %4475 = vpow2.f32 %v507_v23  ;;  %v505_v14 = vsub.f32 %v5344_v7, %v500_v24 }
 0x37f   :  { %v509_v25 = vmul.f32 1.442695, %v505_v14 }
 0x380   :  { %v503_v26 = vpop.xlane.xlu1 %502 }
 0x381   :  { %4477 = vpow2.f32 %v509_v25  ;;  %v506_v27 = vsub.f32 %v5349_v9, %v503_v26 }
 0x383   :  { %v511_v18 = vmul.f32 1.442695, %v506_v27 }
 0x385   :  { %4479 = vpow2.f32 %v511_v18 }
 0x387   :  { %v4476_v28 = vpop.eup %4475 }
 0x388   :  { %v513_v30 = vsel %vm494_vm4, %v4476_v28, 0.0 }
 0x389   :  { %514 = vadd.xlane.f32.xlu0 %v513_v30 }
 0x38b   :  { %v4478_v21 = vpop.eup %4477 }
 0x38c   :  { %v516_v31 = vsel %vm494_vm4, %v4478_v21, 0.0 }
 0x38d   :  { %517 = vadd.xlane.f32.xlu1 %v516_v31 }
 0x38f   :  { %v4480_v32 = vpop.eup %4479 }
 0x390   :  { %v519_v34 = vsel %vm494_vm4, %v4480_v32, 0.0 }
 0x391   :  { %520 = vadd.xlane.f32.xlu1 %v519_v34 }
 0x416   :  { %v515_v38 = vpop.xlane.xlu0 %514 }
 0x417   :  { %4481 = vlog2.f32 %v515_v38 }
 0x41a   :  { %v518_v40 = vpop.xlane.xlu1 %517 }
 0x41b   :  { %4483 = vlog2.f32 %v518_v40 }
 0x41e   :  { %v521_v42 = vpop.xlane.xlu1 %520 }
 0x41f   :  { %4485 = vlog2.f32 %v521_v42 }
 0x421   :  { %v4482_v43 = vpop.eup %4481 }
 0x422   :  { %v523_v45 = vmul.f32 0.6931472, %v4482_v43 }
 0x424   :  { %v528_v46 = vadd.f32 %v523_v45, %v497_v20 }
 0x425   :  { %v4484_v47 = vpop.eup %4483 }
 0x426   :  { %v525_v49 = vmul.f32 0.6931472, %v4484_v47  ;;  %v531_v50 = vsub.f32 %v5339_v3, %v528_v46  ;;  %v3882_v3 = vpop.f32.mrb[11].mxu0 }
 0x427   :  { %v368_v4 = vpop.f32.mrb[12].mxu0 }
 0x428   :  { %v534_v51 = vsub.f32 %v531_v50, %v5328_v57  ;;  %v529_v52 = vadd.f32 %v525_v49, %v500_v24  ;;  %v3905_v6 = vpop.f32.mrb[13].mxu0 }
 0x429   :  { %v4486_v53 = vpop.eup %4485 }
 0x42a   :  { %v527_v54 = vmul.f32 0.6931472, %v4486_v53  ;;  %v537_v55 = vsel %vm494_vm4, %v534_v51, -inf  ;;  %v532_v56 = vsub.f32 %v5344_v7, %v529_v52  ;;  %v371_v7 = vpop.f32.mrb[14].mxu0 }
 0x42b   :  { %538 = vmax.xlane.f32.xlu1 %v537_v55  ;;  %v5401_v8 = vpack.c.bf16 %v371_v7, %v368_v4  ;;  %v4235_v10 = vpack.i.bf16 %v371_v7, %v368_v4  ;;  %v3906_v11 = vpop.f32.mrb[15].mxu0  ;;  %v5433_v55 = vld [vmem:[%s6901_s3 + $0x30] sm:$0xff]  ;;  %v5459_v7 = vld [vmem:[%s6901_s3 + $0x28] sm:$0xff] }
 0x42c   :  { %v535_v58 = vsub.f32 %v532_v56, %v5333_v63  ;;  %v530_v59 = vadd.f32 %v527_v54, %v503_v26  ;;  %v5438_v56 = vld [vmem:[%s6901_s3 + $0x38] sm:$0xff] }
 0x42d   :  { %3921 = vmatprep.subr.bf16.mxu0 %v5401_v8 }
 0x42e   :  { %v540_v60 = vsel %vm494_vm4, %v535_v58, -inf  ;;  %v533_v61 = vsub.f32 %v5349_v9, %v530_v59  ;;  %3922 = vmatpush3.bf16.msra.mxu0 %v5401_v8  ;;  %v376_v9 = vpop.f32.mrb[16].mxu0 }
 0x42f   :  { %541 = vmax.xlane.f32.xlu1 %v540_v60  ;;  %651 = vrot.lane.b32.xlu0 %v376_v9, %s4989_s7  ;;  %v3909_v12 = vpop.f32.mrb[17].mxu0 }
 0x430   :  { %v536_v62 = vsub.f32 %v533_v61, %v5341_v5  ;;  %v5409_v30 = vpop.f32.mrb[18].mxu0 }
 0x431   :  { %v3910_v21 = vpop.f32.mrb[19].mxu0 }
 0x432   :  { %v543_v1 = vsel %vm494_vm4, %v536_v62, -inf  ;;  %v5411_v31 = vpop.f32.mrb[20].mxu0 }
 0x433   :  { %544 = vmax.xlane.f32.xlu1 %v543_v1  ;;  %v4330_v32 = vpack.i.bf16 %v5411_v31, %v5409_v30  ;;  %v5418_v34 = vpack.c.bf16 %v5411_v31, %v5409_v30  ;;  %v3913_v38 = vpop.f32.mrb[21].mxu0 }
 0x4a1   :  { %v652_v47 = vpop.permute.xlu0 %651 }
 0x4b8   :  { %v539_v13 = vpop.xlane.xlu1 %538 }
 0x4b9   :  { %v546_v15 = vsub.f32 %v534_v51, %v539_v13 }
 0x4bb   :  { %v549_v16 = vmul.f32 1.442695, %v546_v15 }
 0x4bc   :  { %v542_v17 = vpop.xlane.xlu1 %541 }
 0x4bd   :  { %4487 = vpow2.f32 %v549_v16  ;;  %v547_v19 = vsub.f32 %v535_v58, %v542_v17  ;;  %v5477_v17 = vld [vmem:[%s6901_s3 + $0x40] sm:$0xff] }
 0x4bf   :  { %v551_v20 = vmul.f32 1.442695, %v547_v19  ;;  %v5482_v19 = vld [vmem:[%s6901_s3 + $0x20] sm:$0xff] }
 0x4c0   :  { %v545_v22 = vpop.xlane.xlu1 %544 }
 0x4c1   :  { %4489 = vpow2.f32 %v551_v20  ;;  %v548_v23 = vsub.f32 %v536_v62, %v545_v22  ;;  %v5446_v62 = vld [vmem:[%s6901_s3 + $0x50] sm:$0xff] }
 0x4c3   :  { %v553_v24 = vmul.f32 1.442695, %v548_v23 }
 0x4c5   :  { %4491 = vpow2.f32 %v553_v24 }
 0x4c7   :  { %v4488_v14 = vpop.eup %4487 }
 0x4c8   :  { %v555_v25 = vsel %vm494_vm4, %v4488_v14, 0.0 }
 0x4c9   :  { %556 = vadd.xlane.f32.xlu1 %v555_v25 }
 0x4cb   :  { %v4490_v26 = vpop.eup %4489 }
 0x4cc   :  { %v558_v27 = vsel %vm494_vm4, %v4490_v26, 0.0 }
 0x4cd   :  { %559 = vadd.xlane.f32.xlu1 %v558_v27 }
 0x4cf   :  { %v4492_v18 = vpop.eup %4491 }
 0x4d0   :  { %v561_v28 = vsel %vm494_vm4, %v4492_v18, 0.0 }
 0x4d1   :  { %562 = vadd.xlane.f32.xlu1 %v561_v28 }
 0x4e2   :  { %4236 = vrot.lane.b32.xlu1 %v4235_v10, %s4989_s7 }
 0x4e6   :  { %4241 = vrot.lane.b32.xlu1 %v4235_v10, %s4990_s22 }
 0x4ea   :  { %660 = vrot.lane.b32.xlu1 %v376_v9, %s4990_s22 }
 0x4ee   :  { %4246 = vrot.lane.b32.xlu1 %v4235_v10, %s4991_s0  ;;  %v5464_v10 = vld [vmem:[%s6901_s3 + $0x48] sm:$0xff] }
 0x4f2   :  { %669 = vrot.lane.b32.xlu1 %v376_v9, %s4991_s0 }
 0x556   :  { %v557_v40 = vpop.xlane.xlu1 %556 }
 0x557   :  { %4493 = vrcp.f32 %v557_v40  ;;  %v5510_v40 = vld [vmem:[%s6901_s3 + $0x58] sm:$0xff] }
 0x55a   :  { %v560_v42 = vpop.xlane.xlu1 %559 }
 0x55b   :  { %4495 = vrcp.f32 %v560_v42  ;;  %v737_v42 = vpack.c.bf16 %v5384_v35, %v5384_v35 }
 0x55e   :  { %v563_v43 = vpop.xlane.xlu1 %562 }
 0x55f   :  { %4497 = vrcp.f32 %v563_v43 }
 0x561   :  { %v4494_v45 = vpop.eup %4493 }
 0x562   :  { %v4237_v46 = vpop.permute.xlu1 %4236  ;;  %v5424_v51 = vmul.f32 %v4494_v45, %v4488_v14  ;;  %v5488_v14 = vld [vmem:[%s6901_s3 + $0x18] sm:$0xff]  ;;  %v5519_v45 = vpop.f32.mrb[22].mxu0 }
 0x563   :  { %v4239_v49 = vunpack.i.h.bf16 %v4237_v46  ;;  %v4238_v50 = vunpack.i.l.bf16 %v4237_v46  ;;  %v5523_v46 = vpack.i.bf16 %v5519_v45, %v5411_v31 }
 0x564   :  { %v587_v1 = vmul.f32 %v5433_v55, %v5424_v51  ;;  %v594_v16 = vmul.f32 %v5464_v10, %v5424_v51  ;;  %v580_v28 = vmul.f32 %v5488_v14, %v5424_v51 }
 0x565   :  { %v4496_v52 = vpop.eup %4495  ;;  %v5426_v53 = vpack.c.bf16 %v4238_v50, %v376_v9  ;;  %v5428_v54 = vpack.c.bf16 %v652_v47, %v4239_v49  ;;  %v3914_v47 = vpop.f32.mrb[23].mxu0 }
 0x566   :  { %v5440_v58 = vmul.f32 %v4496_v52, %v4490_v26  ;;  %v4242_v59 = vpop.permute.xlu1 %4241  ;;  %v5530_v52 = vld [vmem:[%s6901_s3 + $0x10] sm:$0xff] }
 0x567   :  { %v4244_v60 = vunpack.i.h.bf16 %v4242_v59  ;;  %v4243_v61 = vunpack.i.l.bf16 %v4242_v59  ;;  %3923 = vmatprep.subr.bf16.mxu0 %v5426_v53  ;;  %v5535_v59 = vld [vmem:[%s6901_s3] sm:$0xff] }
 0x568   :  { %3924 = vmatpush3.bf16.msra.mxu0 %v5426_v53  ;;  %v588_v3 = vmul.f32 %v5438_v56, %v5440_v58  ;;  %v595_v13 = vmul.f32 %v5446_v62, %v5440_v58  ;;  %v581_v26 = vmul.f32 %v5482_v19, %v5440_v58 }
 0x569   :  { %v4498_v4 = vpop.eup %4497  ;;  %v5453_v6 = vpack.c.bf16 %v4244_v60, %v4243_v61  ;;  %3925 = vmatprep.subr.bf16.mxu0 %v5428_v54  ;;  %v5540_v60 = vld [vmem:[%s6901_s3 + $0x8] sm:$0xff] }
 0x56a   :  { %v569_v11 = vmul.f32 %v4498_v4, %v4492_v18  ;;  %v661_v9 = vpop.permute.xlu1 %660  ;;  %v4255_v12 = vpack.i.bf16 %v588_v3, %v587_v1  ;;  %v4260_v22 = vpack.i.bf16 %v595_v13, %v594_v16  ;;  %v4250_v38 = vpack.i.bf16 %v581_v26, %v580_v28 }
 0x56b   :  { %v573_v4 = vmul.f32 %v5535_v59, %v5424_v51 }
 0x56c   :  { %4256 = vrot.lane.b32.xlu0 %v4255_v12, %s4992_s27  ;;  %3926 = vmatpush3.bf16.msra.mxu0 %v5428_v54  ;;  %v582_v15 = vmul.f32 %v5459_v7, %v569_v11  ;;  %v589_v25 = vmul.f32 %v5477_v17, %v569_v11  ;;  %v596_v43 = vmul.f32 %v5510_v40, %v569_v11 }
 0x56d   :  { %3927 = vmatprep.subr.bf16.mxu0 %v5453_v6  ;;  %v575_v61 = vmul.f32 %v5530_v52, %v569_v11 }
 0x56e   :  { %604 = vrot.lane.b32.xlu1 %v582_v15, %s4993_s5  ;;  %v4247_v20 = vpop.permute.xlu1 %4246 }
 0x56f   :  { %v4249_v23 = vunpack.i.h.bf16 %v4247_v20  ;;  %v4248_v24 = vunpack.i.l.bf16 %v4247_v20 }
 0x570   :  { %4261 = vrot.lane.b32.xlu0 %v4260_v22, %s4994_s18  ;;  %3928 = vmatpush3.bf16.msra.mxu0 %v5453_v6 }
 0x571   :  { %v5495_v27 = vpack.c.bf16 %v4248_v24, %v661_v9  ;;  %v574_v9 = vmul.f32 %v5540_v60, %v5440_v58 }
 0x572   :  { %616 = vrot.lane.b32.xlu1 %v589_v25, %s4992_s27  ;;  %v670_v18 = vpop.permute.xlu1 %669 }
 0x573   :  { %3929 = vmatprep.subr.bf16.mxu0 %v5495_v27  ;;  %v5501_v21 = vpack.c.bf16 %v670_v18, %v4249_v23 }
 0x574   :  { %740 = vrot.lane.b32.xlu0 %v5298_v29, %s4995_s24  ;;  %3930 = vmatpush3.bf16.msra.mxu0 %v5495_v27 }
 0x575   :  { %3931 = vmatprep.subr.bf16.mxu0 %v5501_v21 }
 0x576   :  { %4251 = vrot.lane.b32.xlu1 %v4250_v38, %s4993_s5 }
 0x578   :  { %3932 = vmatpush3.bf16.msra.mxu0 %v5501_v21 }
 0x579   :  { %4204 = vmatprep.subr.msk.bf16.mxu0 %vm433_vm3, %v737_v42 }
 0x57a   :  { %628 = vrot.lane.b32.xlu1 %v596_v43, %s4994_s18 }
 0x57e   :  { %742 = vrot.lane.b32.xlu1 %v5311_v48, %s4995_s24 }
 0x5de   :  { %v4257_v35 = vpop.permute.xlu0 %4256 }
 0x5df   :  { %v4259_v15 = vunpack.i.h.bf16 %v4257_v35  ;;  %v4258_v16 = vunpack.i.l.bf16 %v4257_v35 }
 0x5e0   :  { %v605_v49 = vpop.permute.xlu1 %604 }
 0x5e1   :  { %v635_v20 = vsel %vm494_vm4, %v575_v61, %v605_v49  ;;  %v1023_v49 = vpack.c.bf16 %v5386_v36, %v5386_v36 }
 0x5e2   :  { %v4262_v1 = vpop.permute.xlu0 %4261 }
 0x5e3   :  { %v4264_v22 = vunpack.i.h.bf16 %v4262_v1  ;;  %v4263_v23 = vunpack.i.l.bf16 %v4262_v1  ;;  %v1035_v1 = vsel %vm433_vm3, %v1023_v49, 0 }
 0x5e4   :  { %v617_v50 = vpop.permute.xlu1 %616 }
 0x5e5   :  { %v639_v25 = vsel %vm636_vm5, %v635_v20, %v617_v50  ;;  %v751_v50 = vsel %vm433_vm3, %v737_v42, 0  ;;  %v3666_v42 = vld [vmem:[%s6900_s11 + $0x28] sm:$0xff] }
 0x5e6   :  { %v741_v35 = vpop.permute.xlu0 %740 }
 0x5e8   :  { %v4252_v3 = vpop.permute.xlu1 %4251 }
 0x5e9   :  { %v4254_v12 = vunpack.i.h.bf16 %v4252_v3  ;;  %v4253_v13 = vunpack.i.l.bf16 %v4252_v3 }
 0x5eb   :  { %v634_v11 = vsel %vm494_vm4, %v574_v9, %v4254_v12  ;;  %v633_v24 = vsel %vm494_vm4, %v573_v4, %v4253_v13  ;;  %v3664_v12 = vld [vmem:[%s6900_s11 + $0x18] sm:$0xff] }
 0x5ec   :  { %v637_v51 = vsel %vm636_vm5, %v633_v24, %v4258_v16  ;;  %v638_v26 = vsel %vm636_vm5, %v634_v11, %v4259_v15  ;;  %v629_v58 = vpop.permute.xlu1 %628  ;;  %v3665_v16 = vld [vmem:[%s6900_s11 + $0x20] sm:$0xff] }
 0x5ed   :  { %v643_v18 = vsel %vm640_vm6, %v639_v25, %v629_v58  ;;  %v641_v28 = vsel %vm640_vm6, %v637_v51, %v4263_v23  ;;  %v642_v38 = vsel %vm640_vm6, %v638_v26, %v4264_v22 }
 0x5ee   :  { %v675_v43 = vpack.c.bf16 %v643_v18, %v643_v18  ;;  %v674_v47 = vpack.c.bf16 %v642_v38, %v641_v28 }
 0x5f0   :  { %3933 = vmatprep.mubr.msk.bf16.mxu0 %vm682_vm7, %v674_v47  ;;  %v743_v61 = vpop.permute.xlu1 %742 }
 0x5f1   :  { %3934 = vmatmul.mubr.msk.bf16.vlgmr.msra.gmra.mrb[24].mxu0 %vm682_vm7, %v675_v43 }
 0x5f2   :  { %3938 = vmatpush3.bf16.msra.mxu0 %v751_v50  ;;  %3939 = vmatprep.mubr.msk.bf16.mxu0 %vm426_vm2, %v741_v35 }
 0x5f3   :  { %4205 = vmatprep.subr.msk.bf16.mxu0 %vm433_vm3, %v1023_v49 }
 0x5f9   :  { %3940 = vmatmul.mubr.msk.bf16.vlgmr.msra.gmra.mrb[28].mxu0 %vm426_vm2, %v743_v61 }
 0x5fa   :  { %3960 = vmatpush3.bf16.msra.mxu0 %v1035_v1 }
 0x6c4   :  { %v5565_v3 = vpop.f32.mrb[24].mxu0 }
 0x6c5   :  { %v5567_v4 = vpop.f32.mrb[25].mxu0 }
 0x6c6   :  { %v3936_v36 = vpop.f32.mrb[26].mxu0 }
 0x6c7   :  { %v5569_v9 = vpop.f32.mrb[27].mxu0 }
 0x6cc   :  { %v3941_v13 = vpop.f32.mrb[28].mxu0 }
 0x6cd   :  { %v787_v15 = vpop.f32.mrb[29].mxu0  ;;  %v807_v20 = vsub.f32 %v3941_v13, %v3666_v42 }
 0x6ce   :  { %v805_v22 = vsub.f32 %v787_v15, %v3664_v12  ;;  %v3942_v23 = vpop.f32.mrb[30].mxu0 }
 0x6cf   :  { %v790_v11 = vpop.f32.mrb[31].mxu0  ;;  %v810_v51 = vsub.f32 %v807_v20, %v5341_v5 }
 0x6d0   :  { %v808_v24 = vsub.f32 %v805_v22, %v5328_v57  ;;  %v806_v25 = vsub.f32 %v790_v11, %v3665_v16 }
 0x6d1   :  { %v817_v28 = vsel %vm494_vm4, %v810_v51, -inf }
 0x6d2   :  { %v809_v26 = vsub.f32 %v806_v25, %v5333_v63  ;;  %v811_v58 = vsel %vm494_vm4, %v808_v24, -inf }
 0x6d3   :  { %812 = vmax.xlane.f32.xlu0 %v811_v58 }
 0x6d4   :  { %v814_v18 = vsel %vm494_vm4, %v809_v26, -inf }
 0x6d5   :  { %815 = vmax.xlane.f32.xlu1 %v814_v18 }
 0x6d7   :  { %818 = vmax.xlane.f32.xlu0 %v817_v28 }
 0x760   :  { %v813_v38 = vpop.xlane.xlu0 %812 }
 0x761   :  { %v820_v43 = vsub.f32 %v808_v24, %v813_v38 }
 0x762   :  { %v816_v47 = vpop.xlane.xlu1 %815 }
 0x763   :  { %v823_v49 = vmul.f32 1.442695, %v820_v43  ;;  %v821_v35 = vsub.f32 %v809_v26, %v816_v47 }
 0x764   :  { %v819_v50 = vpop.xlane.xlu0 %818 }
 0x765   :  { %4499 = vpow2.f32 %v823_v49  ;;  %v825_v61 = vmul.f32 1.442695, %v821_v35  ;;  %v822_v1 = vsub.f32 %v810_v51, %v819_v50 }
 0x767   :  { %4501 = vpow2.f32 %v825_v61  ;;  %v827_v36 = vmul.f32 1.442695, %v822_v1 }
 0x769   :  { %4503 = vpow2.f32 %v827_v36 }
 0x76f   :  { %v4500_v42 = vpop.eup %4499 }
 0x770   :  { %v829_v12 = vsel %vm494_vm4, %v4500_v42, 0.0 }
 0x771   :  { %v4502_v13 = vpop.eup %4501  ;;  %830 = vadd.xlane.f32.xlu0 %v829_v12 }
 0x772   :  { %v832_v15 = vsel %vm494_vm4, %v4502_v13, 0.0 }
 0x773   :  { %v4504_v16 = vpop.eup %4503  ;;  %833 = vadd.xlane.f32.xlu1 %v832_v15 }
 0x774   :  { %v835_v20 = vsel %vm494_vm4, %v4504_v16, 0.0 }
 0x775   :  { %836 = vadd.xlane.f32.xlu0 %v835_v20 }
 0x7fe   :  { %v831_v22 = vpop.xlane.xlu0 %830 }
 0x7ff   :  { %4505 = vlog2.f32 %v831_v22 }
 0x800   :  { %v834_v23 = vpop.xlane.xlu1 %833 }
 0x801   :  { %4507 = vlog2.f32 %v834_v23 }
 0x802   :  { %v837_v11 = vpop.xlane.xlu0 %836 }
 0x803   :  { %4509 = vlog2.f32 %v837_v11 }
 0x809   :  { %v4506_v25 = vpop.eup %4505 }
 0x80a   :  { %v839_v58 = vmul.f32 0.6931472, %v4506_v25 }
 0x80b   :  { %v4508_v18 = vpop.eup %4507 }
 0x80c   :  { %v841_v28 = vmul.f32 0.6931472, %v4508_v18  ;;  %v844_v43 = vadd.f32 %v839_v58, %v813_v38 }
 0x80d   :  { %v4510_v49 = vpop.eup %4509 }
 0x80e   :  { %v843_v35 = vmul.f32 0.6931472, %v4510_v49  ;;  %v847_v61 = vsub.f32 %v808_v24, %v844_v43  ;;  %v845_v1 = vadd.f32 %v841_v28, %v816_v47 }
 0x810   :  { %v850_v36 = vsub.f32 %v847_v61, %v5328_v57  ;;  %v848_v42 = vsub.f32 %v809_v26, %v845_v1  ;;  %v846_v12 = vadd.f32 %v843_v35, %v819_v50 }
 0x812   :  { %v853_v13 = vsel %vm494_vm4, %v850_v36, -inf  ;;  %v851_v15 = vsub.f32 %v848_v42, %v5333_v63  ;;  %v849_v16 = vsub.f32 %v810_v51, %v846_v12 }
 0x813   :  { %854 = vmax.xlane.f32.xlu1 %v853_v13 }
 0x814   :  { %v856_v20 = vsel %vm494_vm4, %v851_v15, -inf  ;;  %v852_v22 = vsub.f32 %v849_v16, %v5341_v5 }
 0x815   :  { %857 = vmax.xlane.f32.xlu0 %v856_v20 }
 0x816   :  { %v859_v38 = vsel %vm494_vm4, %v852_v22, -inf }
 0x817   :  { %860 = vmax.xlane.f32.xlu1 %v859_v38 }
 0x8a0   :  { %v855_v24 = vpop.xlane.xlu1 %854 }
 0x8a1   :  { %v862_v47 = vsub.f32 %v850_v36, %v855_v24 }
 0x8a2   :  { %v858_v23 = vpop.xlane.xlu0 %857 }
 0x8a3   :  { %v865_v11 = vmul.f32 1.442695, %v862_v47  ;;  %v863_v26 = vsub.f32 %v851_v15, %v858_v23 }
 0x8a4   :  { %v861_v50 = vpop.xlane.xlu1 %860 }
 0x8a5   :  { %4511 = vpow2.f32 %v865_v11  ;;  %v867_v25 = vmul.f32 1.442695, %v863_v26  ;;  %v864_v58 = vsub.f32 %v852_v22, %v861_v50 }
 0x8a7   :  { %4513 = vpow2.f32 %v867_v25  ;;  %v869_v51 = vmul.f32 1.442695, %v864_v58 }
 0x8a9   :  { %4515 = vpow2.f32 %v869_v51 }
 0x8af   :  { %v4512_v18 = vpop.eup %4511 }
 0x8b0   :  { %v871_v28 = vsel %vm494_vm4, %v4512_v18, 0.0 }
 0x8b1   :  { %v4514_v43 = vpop.eup %4513  ;;  %872 = vadd.xlane.f32.xlu0 %v871_v28 }
 0x8b2   :  { %v874_v49 = vsel %vm494_vm4, %v4514_v43, 0.0 }
 0x8b3   :  { %v4516_v35 = vpop.eup %4515  ;;  %875 = vadd.xlane.f32.xlu1 %v874_v49 }
 0x8b4   :  { %v877_v61 = vsel %vm494_vm4, %v4516_v35, 0.0 }
 0x8b5   :  { %878 = vadd.xlane.f32.xlu0 %v877_v61 }
 0x8c4   :  { %951 = vrot.lane.b32.xlu1 %v5401_v8, %s4995_s24 }
 0x8c8   :  { %955 = vrot.lane.b32.xlu1 %v5428_v54, %s4995_s24 }
 0x8cb   :  { %953 = vrot.lane.b32.xlu0 %v5426_v53, %s4995_s24 }
 0x8cc   :  { %957 = vrot.lane.b32.xlu1 %v5453_v6, %s4995_s24 }
 0x8cf   :  { %959 = vrot.lane.b32.xlu0 %v5495_v27, %s4995_s24 }
 0x93e   :  { %v873_v1 = vpop.xlane.xlu0 %872 }
 0x93f   :  { %4517 = vrcp.f32 %v873_v1 }
 0x940   :  { %v876_v36 = vpop.xlane.xlu1 %875 }
 0x941   :  { %4519 = vrcp.f32 %v876_v36 }
 0x942   :  { %v879_v42 = vpop.xlane.xlu0 %878 }
 0x943   :  { %4521 = vrcp.f32 %v879_v42 }
 0x944   :  { %v952_v12 = vpop.permute.xlu1 %951 }
 0x945   :  { %3943 = vmatprep.subr.bf16.mxu1 %v952_v12 }
 0x946   :  { %v954_v13 = vpop.permute.xlu0 %953  ;;  %3944 = vmatpush3.bf16.msra.mxu1 %v952_v12 }
 0x947   :  { %3945 = vmatprep.subr.bf16.mxu1 %v954_v13 }
 0x948   :  { %v956_v15 = vpop.permute.xlu1 %955 }
 0x949   :  { %v4518_v16 = vpop.eup %4517 }
 0x94a   :  { %v883_v20 = vmul.f32 %v4518_v16, %v4512_v18  ;;  %3946 = vmatpush3.bf16.msra.mxu1 %v954_v13  ;;  %v960_v18 = vpop.permute.xlu0 %959 }
 0x94b   :  { %v4520_v22 = vpop.eup %4519  ;;  %3947 = vmatprep.subr.bf16.mxu1 %v956_v15 }
 0x94c   :  { %v884_v38 = vmul.f32 %v4520_v22, %v4514_v43  ;;  %v958_v47 = vpop.permute.xlu1 %957  ;;  %v889_v11 = vmul.f32 %v5488_v14, %v883_v20  ;;  %v892_v51 = vmul.f32 %v5433_v55, %v883_v20 }
 0x94d   :  { %v4522_v24 = vpop.eup %4521 }
 0x94e   :  { %3948 = vmatpush3.bf16.msra.mxu1 %v956_v15  ;;  %v885_v23 = vmul.f32 %v4522_v24, %v4516_v35  ;;  %v890_v26 = vmul.f32 %v5482_v19, %v884_v38  ;;  %v893_v58 = vmul.f32 %v5438_v56, %v884_v38  ;;  %v896_v49 = vmul.f32 %v5446_v62, %v884_v38 }
 0x94f   :  { %3949 = vmatprep.subr.bf16.mxu1 %v958_v47  ;;  %v895_v56 = vmul.f32 %v5464_v10, %v883_v20  ;;  %v886_v15 = vmul.f32 %v883_v20, %v5535_v59  ;;  %v887_v16 = vmul.f32 %v884_v38, %v5540_v60 }
 0x950   :  { %v891_v50 = vmul.f32 %v5459_v7, %v885_v23  ;;  %v4265_v25 = vpack.i.bf16 %v890_v26, %v889_v11  ;;  %v894_v28 = vmul.f32 %v5477_v17, %v885_v23  ;;  %v4270_v43 = vpack.i.bf16 %v893_v58, %v892_v51 }
 0x951   :  { %v4275_v7 = vpack.i.bf16 %v896_v49, %v895_v56  ;;  %v897_v55 = vmul.f32 %v5510_v40, %v885_v23  ;;  %v888_v22 = vmul.f32 %v885_v23, %v5530_v52 }
 0x952   :  { %905 = vrot.lane.b32.xlu0 %v891_v50, %s4993_s5  ;;  %4266 = vrot.lane.b32.xlu1 %v4265_v25, %s4993_s5 }
 0x953   :  { %3950 = vmatpush3.bf16.msra.mxu1 %v958_v47 }
 0x954   :  { %3951 = vmatprep.subr.bf16.mxu1 %v960_v18 }
 0x956   :  { %917 = vrot.lane.b32.xlu0 %v894_v28, %s4992_s27  ;;  %4271 = vrot.lane.b32.xlu1 %v4270_v43, %s4992_s27 }
 0x957   :  { %3952 = vmatpush3.bf16.msra.mxu1 %v960_v18 }
 0x95a   :  { %961 = vrot.lane.b32.xlu0 %v5501_v21, %s4995_s24  ;;  %4276 = vrot.lane.b32.xlu1 %v4275_v7, %s4994_s18 }
 0x95e   :  { %1024 = vrot.lane.b32.xlu0 %v5298_v29, %s4996_s15  ;;  %929 = vrot.lane.b32.xlu1 %v897_v55, %s4994_s18  ;;  %v3673_v55 = vld [vmem:[%s6900_s11 + $0x40] sm:$0xff] }
 0x962   :  { %1302 = vrot.lane.b32.xlu0 %v5298_v29, %s4997_s30  ;;  %1026 = vrot.lane.b32.xlu1 %v5311_v48, %s4996_s15  ;;  %v1301_v29 = vpack.c.bf16 %v5388_v37, %v5388_v37 }
 0x964   :  { %v1313_v49 = vsel %vm433_vm3, %v1301_v29, 0 }
 0x966   :  { %1304 = vrot.lane.b32.xlu1 %v5311_v48, %s4997_s30 }
 0x9c4   :  { %v906_v17 = vpop.permute.xlu0 %905  ;;  %v4267_v35 = vpop.permute.xlu1 %4266 }
 0x9c5   :  { %v4269_v36 = vunpack.i.h.bf16 %v4267_v35  ;;  %v4268_v42 = vunpack.i.l.bf16 %v4267_v35  ;;  %v936_v60 = vsel %vm494_vm4, %v888_v22, %v906_v17  ;;  %v3671_v17 = vld [vmem:[%s6900_s11 + $0x30] sm:$0xff] }
 0x9c7   :  { %v935_v48 = vsel %vm494_vm4, %v887_v16, %v4269_v36  ;;  %v934_v11 = vsel %vm494_vm4, %v886_v15, %v4268_v42  ;;  %v3672_v42 = vld [vmem:[%s6900_s11 + $0x38] sm:$0xff] }
 0x9c8   :  { %v918_v61 = vpop.permute.xlu0 %917  ;;  %v4272_v1 = vpop.permute.xlu1 %4271 }
 0x9c9   :  { %v4274_v12 = vunpack.i.h.bf16 %v4272_v1  ;;  %v4273_v13 = vunpack.i.l.bf16 %v4272_v1  ;;  %v939_v20 = vsel %vm636_vm5, %v936_v60, %v918_v61 }
 0x9cb   :  { %v937_v25 = vsel %vm636_vm5, %v934_v11, %v4273_v13  ;;  %v938_v59 = vsel %vm636_vm5, %v935_v48, %v4274_v12 }
 0x9cc   :  { %v962_v24 = vpop.permute.xlu0 %961  ;;  %v4277_v47 = vpop.permute.xlu1 %4276 }
 0x9cd   :  { %v4279_v26 = vunpack.i.h.bf16 %v4277_v47  ;;  %v4278_v50 = vunpack.i.l.bf16 %v4277_v47  ;;  %3953 = vmatprep.subr.bf16.mxu1 %v962_v24 }
 0x9ce   :  { %3954 = vmatpush3.bf16.msra.mxu1 %v962_v24 }
 0x9cf   :  { %v940_v37 = vsel %vm640_vm6, %v937_v25, %v4278_v50  ;;  %v941_v52 = vsel %vm640_vm6, %v938_v59, %v4279_v26  ;;  %4206 = vmatprep.subr.msk.bf16.mxu1 %vm433_vm3, %v1301_v29  ;;  %v3678_v50 = vld [vmem:[%s6900_s11 + $0x48] sm:$0xff]  ;;  %v3680_v59 = vld [vmem:[%s6900_s11 + $0x58] sm:$0xff] }
 0x9d0   :  { %v1025_v38 = vpop.permute.xlu0 %1024  ;;  %v930_v23 = vpop.permute.xlu1 %929  ;;  %v943_v58 = vpack.c.bf16 %v941_v52, %v940_v37  ;;  %v3679_v52 = vld [vmem:[%s6900_s11 + $0x50] sm:$0xff] }
 0x9d1   :  { %v942_v51 = vsel %vm640_vm6, %v939_v20, %v930_v23  ;;  %3961 = vmatprep.mubr.msk.bf16.mxu0 %vm426_vm2, %v1025_v38 }
 0x9d2   :  { %v944_v18 = vpack.c.bf16 %v942_v51, %v942_v51  ;;  %3955 = vmatprep.mubr.msk.bf16.mxu1 %vm682_vm7, %v943_v58 }
 0x9d4   :  { %v1303_v28 = vpop.permute.xlu0 %1302  ;;  %v1027_v43 = vpop.permute.xlu1 %1026  ;;  %3956 = vmatmul.mubr.msk.bf16.vlgmr.msra.gmra.mrb[16].mxu1 %vm682_vm7, %v944_v18 }
 0x9d5   :  { %3982 = vmatpush3.bf16.msra.mxu1 %v1313_v49  ;;  %3962 = vmatmul.mubr.msk.bf16.vlgmr.msra.gmra.mrb[32].mxu0 %vm426_vm2, %v1027_v43 }
 0x9d6   :  { %3983 = vmatprep.mubr.msk.bf16.mxu1 %vm426_vm2, %v1303_v28 }
 0x9d8   :  { %v1305_v56 = vpop.permute.xlu1 %1304 }
 0x9dc   :  { %3984 = vmatmul.mubr.msk.bf16.vlgmr.msra.gmra.mrb[20].mxu1 %vm426_vm2, %v1305_v56 }
 0xaa7   :  { %v5655_v7 = vpop.f32.mrb[16].mxu1 }
 0xaa8   :  { %v5663_v35 = vpop.f32.mrb[17].mxu1  ;;  %v3963_v61 = vpop.f32.mrb[32].mxu0 }
 0xaa9   :  { %v3958_v1 = vpop.f32.mrb[18].mxu1  ;;  %v1071_v36 = vpop.f32.mrb[33].mxu0  ;;  %v1091_v12 = vsub.f32 %v3963_v61, %v3673_v55 }
 0xaaa   :  { %v1089_v13 = vsub.f32 %v1071_v36, %v3671_v17  ;;  %v5668_v15 = vpop.f32.mrb[19].mxu1  ;;  %v3964_v16 = vpop.f32.mrb[34].mxu0 }
 0xaab   :  { %v4430_v29 = vpack.i.bf16 %v5668_v15, %v5663_v35  ;;  %v1074_v22 = vpop.f32.mrb[35].mxu0  ;;  %v5676_v48 = vsub.f32 %v1091_v12, %v5341_v5 }
 0xaac   :  { %v5673_v24 = vsub.f32 %v1089_v13, %v5328_v57  ;;  %v1090_v47 = vsub.f32 %v1074_v22, %v3672_v42 }
 0xaad   :  { %v1101_v51 = vsel %vm494_vm4, %v5676_v48, -inf }
 0xaae   :  { %v5679_v11 = vsub.f32 %v1090_v47, %v5333_v63  ;;  %v1095_v26 = vsel %vm494_vm4, %v5673_v24, -inf }
 0xaaf   :  { %1096 = vmax.xlane.f32.xlu0 %v1095_v26  ;;  %v3985_v25 = vpop.f32.mrb[20].mxu1 }
 0xab0   :  { %v1349_v60 = vpop.f32.mrb[21].mxu1  ;;  %v1098_v37 = vsel %vm494_vm4, %v5679_v11, -inf  ;;  %v1369_v23 = vsub.f32 %v3985_v25, %v3680_v59 }
 0xab1   :  { %v1367_v20 = vsub.f32 %v1349_v60, %v3678_v50  ;;  %1099 = vmax.xlane.f32.xlu1 %v1098_v37  ;;  %v3986_v38 = vpop.f32.mrb[22].mxu1 }
 0xab2   :  { %v1352_v58 = vpop.f32.mrb[23].mxu1  ;;  %v5705_v56 = vsub.f32 %v1369_v23, %v5341_v5 }
 0xab3   :  { %v5697_v18 = vsub.f32 %v1367_v20, %v5328_v57  ;;  %v1368_v28 = vsub.f32 %v1352_v58, %v3679_v52  ;;  %1102 = vmax.xlane.f32.xlu0 %v1101_v51 }
 0xab4   :  { %v1379_v17 = vsel %vm494_vm4, %v5705_v56, -inf }
 0xab5   :  { %v5700_v43 = vsub.f32 %v1368_v28, %v5333_v63  ;;  %v1373_v49 = vsel %vm494_vm4, %v5697_v18, -inf }
 0xab7   :  { %1374 = vmax.xlane.f32.xlu0 %v1373_v49  ;;  %v1376_v55 = vsel %vm494_vm4, %v5700_v43, -inf }
 0xab8   :  { %1377 = vmax.xlane.f32.xlu1 %v1376_v55 }
 0xabb   :  { %1380 = vmax.xlane.f32.xlu0 %v1379_v17 }
 0xb3c   :  { %v1097_v61 = vpop.xlane.xlu0 %1096 }
 0xb3d   :  { %v1104_v1 = vsub.f32 %v5673_v24, %v1097_v61 }
 0xb3e   :  { %v1100_v36 = vpop.xlane.xlu1 %1099 }
 0xb3f   :  { %v1107_v42 = vmul.f32 1.442695, %v1104_v1  ;;  %v1105_v12 = vsub.f32 %v5679_v11, %v1100_v36 }
 0xb40   :  { %v1103_v13 = vpop.xlane.xlu0 %1102 }
 0xb41   :  { %4523 = vpow2.f32 %v1107_v42  ;;  %v1109_v16 = vmul.f32 1.442695, %v1105_v12  ;;  %v1106_v22 = vsub.f32 %v5676_v48, %v1103_v13 }
 0xb43   :  { %4525 = vpow2.f32 %v1109_v16  ;;  %v1111_v47 = vmul.f32 1.442695, %v1106_v22 }
 0xb44   :  { %v5714_v26 = vpop.xlane.xlu0 %1374 }
 0xb45   :  { %4527 = vpow2.f32 %v1111_v47  ;;  %v1382_v50 = vsub.f32 %v5697_v18, %v5714_v26  ;;  %v5718_v25 = vpop.xlane.xlu1 %1377 }
 0xb46   :  { %v1383_v59 = vsub.f32 %v5700_v43, %v5718_v25 }
 0xb47   :  { %v1385_v60 = vmul.f32 1.442695, %v1382_v50 }
 0xb48   :  { %v1387_v37 = vmul.f32 1.442695, %v1383_v59  ;;  %v5722_v52 = vpop.xlane.xlu0 %1380 }
 0xb49   :  { %4529 = vpow2.f32 %v1385_v60  ;;  %v1384_v20 = vsub.f32 %v5705_v56, %v5722_v52 }
 0xb4a   :  { %4531 = vpow2.f32 %v1387_v37 }
 0xb4b   :  { %v4524_v38 = vpop.eup %4523  ;;  %v1389_v23 = vmul.f32 1.442695, %v1384_v20 }
 0xb4c   :  { %v1113_v58 = vsel %vm494_vm4, %v4524_v38, 0.0 }
 0xb4d   :  { %v4526_v51 = vpop.eup %4525  ;;  %4533 = vpow2.f32 %v1389_v23  ;;  %1114 = vadd.xlane.f32.xlu1 %v1113_v58 }
 0xb4e   :  { %v1116_v28 = vsel %vm494_vm4, %v4526_v51, 0.0 }
 0xb4f   :  { %v4528_v49 = vpop.eup %4527  ;;  %1117 = vadd.xlane.f32.xlu0 %v1116_v28 }
 0xb50   :  { %v1119_v55 = vsel %vm494_vm4, %v4528_v49, 0.0 }
 0xb51   :  { %1120 = vadd.xlane.f32.xlu1 %v1119_v55 }
 0xb53   :  { %v4530_v17 = vpop.eup %4529 }
 0xb54   :  { %v4532_v1 = vpop.eup %4531  ;;  %v1391_v42 = vsel %vm494_vm4, %v4530_v17, 0.0 }
 0xb55   :  { %1392 = vadd.xlane.f32.xlu0 %v1391_v42  ;;  %v1394_v12 = vsel %vm494_vm4, %v4532_v1, 0.0 }
 0xb56   :  { %1395 = vadd.xlane.f32.xlu1 %v1394_v12 }
 0xb57   :  { %v4534_v16 = vpop.eup %4533 }
 0xb58   :  { %v1397_v22 = vsel %vm494_vm4, %v4534_v16, 0.0 }
 0xb59   :  { %1398 = vadd.xlane.f32.xlu0 %v1397_v22 }
 0xbda   :  { %v1115_v47 = vpop.xlane.xlu1 %1114 }
 0xbdb   :  { %4535 = vlog2.f32 %v1115_v47 }
 0xbdc   :  { %v1118_v50 = vpop.xlane.xlu0 %1117 }
 0xbdd   :  { %4537 = vlog2.f32 %v1118_v50 }
 0xbde   :  { %v1121_v59 = vpop.xlane.xlu1 %1120 }
 0xbdf   :  { %4539 = vlog2.f32 %v1121_v59 }
 0xbe2   :  { %v1393_v60 = vpop.xlane.xlu0 %1392 }
 0xbe3   :  { %4541 = vlog2.f32 %v1393_v60  ;;  %v1396_v37 = vpop.xlane.xlu1 %1395 }
 0xbe4   :  { %4543 = vlog2.f32 %v1396_v37 }
 0xbe5   :  { %v4536_v20 = vpop.eup %4535 }
 0xbe6   :  { %v1123_v38 = vmul.f32 0.6931472, %v4536_v20  ;;  %v1399_v23 = vpop.xlane.xlu0 %1398 }
 0xbe7   :  { %v4538_v58 = vpop.eup %4537  ;;  %4545 = vlog2.f32 %v1399_v23 }
 0xbe8   :  { %v1125_v51 = vmul.f32 0.6931472, %v4538_v58  ;;  %v1128_v28 = vadd.f32 %v1123_v38, %v1097_v61 }
 0xbe9   :  { %v4540_v49 = vpop.eup %4539 }
 0xbea   :  { %v1127_v55 = vmul.f32 0.6931472, %v4540_v49  ;;  %v1131_v17 = vsub.f32 %v5673_v24, %v1128_v28  ;;  %v1129_v1 = vadd.f32 %v1125_v51, %v1100_v36 }
 0xbec   :  { %v1134_v42 = vsub.f32 %v1131_v17, %v5328_v57  ;;  %v1132_v12 = vsub.f32 %v5679_v11, %v1129_v1  ;;  %v1130_v16 = vadd.f32 %v1127_v55, %v1103_v13 }
 0xbed   :  { %v4542_v22 = vpop.eup %4541 }
 0xbee   :  { %v4544_v47 = vpop.eup %4543  ;;  %v1401_v50 = vmul.f32 0.6931472, %v4542_v22  ;;  %v1137_v59 = vsel %vm494_vm4, %v1134_v42, -inf  ;;  %v1135_v60 = vsub.f32 %v1132_v12, %v5333_v63  ;;  %v1133_v37 = vsub.f32 %v5676_v48, %v1130_v16 }
 0xbef   :  { %v1403_v61 = vmul.f32 0.6931472, %v4544_v47  ;;  %1138 = vmax.xlane.f32.xlu1 %v1137_v59 }
 0xbf0   :  { %v1140_v20 = vsel %vm494_vm4, %v1135_v60, -inf  ;;  %v1136_v24 = vsub.f32 %v1133_v37, %v5341_v5  ;;  %v1406_v36 = vadd.f32 %v1401_v50, %v5714_v26 }
 0xbf1   :  { %v4546_v38 = vpop.eup %4545  ;;  %1141 = vmax.xlane.f32.xlu0 %v1140_v20  ;;  %v1407_v11 = vadd.f32 %v1403_v61, %v5718_v25 }
 0xbf2   :  { %v1405_v13 = vmul.f32 0.6931472, %v4546_v38  ;;  %v1143_v23 = vsel %vm494_vm4, %v1136_v24, -inf  ;;  %v1409_v58 = vsub.f32 %v5697_v18, %v1406_v36 }
 0xbf3   :  { %1144 = vmax.xlane.f32.xlu1 %v1143_v23  ;;  %v1410_v48 = vsub.f32 %v5700_v43, %v1407_v11 }
 0xbf4   :  { %v1412_v51 = vsub.f32 %v1409_v58, %v5328_v57  ;;  %v1408_v28 = vadd.f32 %v1405_v13, %v5722_v52 }
 0xbf5   :  { %v1413_v49 = vsub.f32 %v1410_v48, %v5333_v63 }
 0xbf6   :  { %v1415_v26 = vsel %vm494_vm4, %v1412_v51, -inf  ;;  %v1411_v55 = vsub.f32 %v5705_v56, %v1408_v28 }
 0xbf7   :  { %1416 = vmax.xlane.f32.xlu0 %v1415_v26  ;;  %v1418_v25 = vsel %vm494_vm4, %v1413_v49, -inf }
 0xbf8   :  { %1419 = vmax.xlane.f32.xlu1 %v1418_v25  ;;  %v1414_v17 = vsub.f32 %v1411_v55, %v5341_v5 }
 0xbfa   :  { %v1421_v18 = vsel %vm494_vm4, %v1414_v17, -inf }
 0xbfb   :  { %1422 = vmax.xlane.f32.xlu0 %v1421_v18 }
 0xc7c   :  { %v1139_v43 = vpop.xlane.xlu1 %1138 }
 0xc7d   :  { %v1146_v1 = vsub.f32 %v1134_v42, %v1139_v43 }
 0xc7e   :  { %v1142_v12 = vpop.xlane.xlu0 %1141 }
 0xc7f   :  { %v1149_v16 = vmul.f32 1.442695, %v1146_v1  ;;  %v1147_v52 = vsub.f32 %v1135_v60, %v1142_v12 }
 0xc80   :  { %v1145_v22 = vpop.xlane.xlu1 %1144 }
 0xc81   :  { %4547 = vpow2.f32 %v1149_v16  ;;  %v1151_v47 = vmul.f32 1.442695, %v1147_v52  ;;  %v1148_v50 = vsub.f32 %v1136_v24, %v1145_v22 }
 0xc83   :  { %4549 = vpow2.f32 %v1151_v47  ;;  %v1153_v56 = vmul.f32 1.442695, %v1148_v50 }
 0xc84   :  { %v1417_v59 = vpop.xlane.xlu0 %1416 }
 0xc85   :  { %4551 = vpow2.f32 %v1153_v56  ;;  %v1424_v37 = vsub.f32 %v1412_v51, %v1417_v59  ;;  %v1420_v26 = vpop.xlane.xlu1 %1419 }
 0xc86   :  { %v1425_v55 = vsub.f32 %v1413_v49, %v1420_v26 }
 0xc87   :  { %v1427_v61 = vmul.f32 1.442695, %v1424_v37 }
 0xc88   :  { %v1423_v20 = vpop.xlane.xlu0 %1422  ;;  %v1429_v25 = vmul.f32 1.442695, %v1425_v55 }
 0xc89   :  { %4553 = vpow2.f32 %v1427_v61  ;;  %v1426_v36 = vsub.f32 %v1414_v17, %v1423_v20 }
 0xc8b   :  { %v4548_v38 = vpop.eup %4547  ;;  %v1431_v11 = vmul.f32 1.442695, %v1426_v36 }
 0xc8c   :  { %v1155_v42 = vsel %vm494_vm4, %v4548_v38, 0.0 }
 0xc8d   :  { %v4550_v13 = vpop.eup %4549  ;;  %4555 = vpow2.f32 %v1431_v11  ;;  %1156 = vadd.xlane.f32.xlu1 %v1155_v42 }
 0xc8e   :  { %v1158_v60 = vsel %vm494_vm4, %v4550_v13, 0.0  ;;  %4557 = vpow2.f32 %v1429_v25 }
 0xc8f   :  { %v4552_v23 = vpop.eup %4551  ;;  %1159 = vadd.xlane.f32.xlu0 %v1158_v60 }
 0xc90   :  { %v1161_v24 = vsel %vm494_vm4, %v4552_v23, 0.0 }
 0xc91   :  { %1162 = vadd.xlane.f32.xlu1 %v1161_v24  ;;  %v5820_v24 = vld [vmem:[%s6901_s3 + $0x28] sm:$0xff] }
 0xc93   :  { %v4554_v58 = vpop.eup %4553 }
 0xc94   :  { %v1433_v48 = vsel %vm494_vm4, %v4554_v58, 0.0 }
 0xc95   :  { %1434 = vadd.xlane.f32.xlu0 %v1433_v48 }
 0xc97   :  { %v5757_v51 = vpop.eup %4555 }
 0xc98   :  { %v1439_v28 = vsel %vm494_vm4, %v5757_v51, 0.0  ;;  %v5775_v17 = vpop.eup %4557 }
 0xc99   :  { %1440 = vadd.xlane.f32.xlu0 %v1439_v28 }
 0xca2   :  { %1229 = vrot.lane.b32.xlu1 %v5401_v8, %s4996_s15 }
 0xca6   :  { %1231 = vrot.lane.b32.xlu1 %v5426_v53, %s4996_s15 }
 0xcaa   :  { %1509 = vrot.lane.b32.xlu1 %v5426_v53, %s4997_s30  ;;  %v1436_v53 = vsel %vm494_vm4, %v5775_v17, 0.0 }
 0xcaf   :  { %1507 = vrot.lane.b32.xlu0 %v5401_v8, %s4997_s30 }
 0xcb3   :  { %1233 = vrot.lane.b32.xlu0 %v5428_v54, %s4996_s15 }
 0xcb7   :  { %1235 = vrot.lane.b32.xlu0 %v5453_v6, %s4996_s15 }
 0xcbb   :  { %1237 = vrot.lane.b32.xlu0 %v5495_v27, %s4996_s15 }
 0xcce   :  { %1437 = vadd.xlane.f32.xlu1 %v1436_v53  ;;  %v5835_v53 = vld [vmem:[%s6901_s3 + $0x40] sm:$0xff] }
 0xcdf   :  { %1511 = vrot.lane.b32.xlu1 %v5428_v54, %s4997_s30 }
 0xce3   :  { %1513 = vrot.lane.b32.xlu1 %v5453_v6, %s4997_s30 }
 0xce7   :  { %1515 = vrot.lane.b32.xlu1 %v5495_v27, %s4997_s30 }
 0xd1a   :  { %v1157_v8 = vpop.xlane.xlu1 %1156 }
 0xd1b   :  { %4559 = vrcp.f32 %v1157_v8 }
 0xd1c   :  { %v1160_v49 = vpop.xlane.xlu0 %1159 }
 0xd1d   :  { %4561 = vrcp.f32 %v1160_v49  ;;  %v5844_v49 = vld [vmem:[%s6901_s3 + $0x48] sm:$0xff] }
 0xd1e   :  { %v1163_v18 = vpop.xlane.xlu1 %1162 }
 0xd1f   :  { %4563 = vrcp.f32 %v1163_v18 }
 0xd22   :  { %v1435_v43 = vpop.xlane.xlu0 %1434  ;;  %v1230_v1 = vpop.permute.xlu1 %1229 }
 0xd23   :  { %4565 = vrcp.f32 %v1435_v43  ;;  %3965 = vmatprep.subr.bf16.mxu0 %v1230_v1 }
 0xd24   :  { %3966 = vmatpush3.bf16.msra.mxu0 %v1230_v1 }
 0xd25   :  { %v4560_v12 = vpop.eup %4559 }
 0xd26   :  { %v5785_v16 = vmul.f32 %v4560_v12, %v4548_v38  ;;  %v1441_v54 = vpop.xlane.xlu0 %1440  ;;  %v1232_v52 = vpop.permute.xlu1 %1231  ;;  %v5856_v12 = vpack.c.bf16 %v5399_v2, %v5399_v2 }
 0xd27   :  { %v4562_v6 = vpop.eup %4561  ;;  %3967 = vmatprep.subr.bf16.mxu0 %v1232_v52  ;;  %4567 = vrcp.f32 %v1441_v54  ;;  %v5869_v54 = vld [vmem:[%s6901_s3 + $0x20] sm:$0xff] }
 0xd28   :  { %v5787_v22 = vmul.f32 %v4562_v6, %v4550_v13  ;;  %3968 = vmatpush3.bf16.msra.mxu0 %v1232_v52  ;;  %v1179_v50 = vmul.f32 %v5464_v10, %v5785_v16  ;;  %v1173_v59 = vmul.f32 %v5488_v14, %v5785_v16  ;;  %v5802_v10 = vld [vmem:[%s6901_s3 + $0x38] sm:$0xff]  ;;  %v5813_v13 = vld [vmem:[%s6901_s3 + $0x30] sm:$0xff] }
 0xd29   :  { %v4564_v27 = vpop.eup %4563  ;;  %v1176_v60 = vmul.f32 %v5813_v13, %v5785_v16 }
 0xd2a   :  { %v1508_v47 = vpop.permute.xlu0 %1507  ;;  %v1180_v56 = vmul.f32 %v5446_v62, %v5787_v22  ;;  %v1174_v37 = vmul.f32 %v5482_v19, %v5787_v22  ;;  %v5797_v61 = vmul.f32 %v4564_v27, %v4552_v23  ;;  %v1510_v20 = vpop.permute.xlu1 %1509  ;;  %v1177_v62 = vmul.f32 %v5802_v10, %v5787_v22 }
 0xd2b   :  { %3987 = vmatprep.subr.bf16.mxu1 %v1508_v47 }
 0xd2c   :  { %3988 = vmatpush3.bf16.msra.mxu1 %v1508_v47  ;;  %v4290_v36 = vpack.i.bf16 %v1180_v56, %v1179_v50  ;;  %v4280_v38 = vpack.i.bf16 %v1174_v37, %v1173_v59  ;;  %v4285_v23 = vpack.i.bf16 %v1177_v62, %v1176_v60  ;;  %v1181_v43 = vmul.f32 %v5510_v40, %v5797_v61  ;;  %v5891_v62 = vld [vmem:[%s6901_s3 + $0x58] sm:$0xff] }
 0xd2d   :  { %v4566_v11 = vpop.eup %4565  ;;  %3989 = vmatprep.subr.bf16.mxu1 %v1510_v20 }
 0xd2e   :  { %v5806_v42 = vmul.f32 %v4566_v11, %v4554_v58  ;;  %v1234_v19 = vpop.permute.xlu0 %1233  ;;  %4291 = vrot.lane.b32.xlu1 %v4290_v36, %s4994_s18  ;;  %4281 = vrot.lane.b32.xlu0 %v4280_v38, %s4993_s5  ;;  %v1175_v58 = vmul.f32 %v5820_v24, %v5797_v61  ;;  %v5883_v36 = vld [vmem:[%s6901_s3 + $0x50] sm:$0xff] }
 0xd2f   :  { %3969 = vmatprep.subr.bf16.mxu0 %v1234_v19 }
 0xd30   :  { %3970 = vmatpush3.bf16.msra.mxu0 %v1234_v19  ;;  %3990 = vmatpush3.bf16.msra.mxu1 %v1510_v20  ;;  %v1451_v48 = vmul.f32 %v5488_v14, %v5806_v42  ;;  %v1454_v55 = vmul.f32 %v5813_v13, %v5806_v42  ;;  %v1178_v14 = vmul.f32 %v5835_v53, %v5797_v61 }
 0xd31   :  { %v1457_v18 = vmul.f32 %v5844_v49, %v5806_v42  ;;  %v4568_v40 = vpop.eup %4567 }
 0xd32   :  { %v1236_v28 = vpop.permute.xlu0 %1235  ;;  %4286 = vrot.lane.b32.xlu0 %v4285_v23, %s4992_s27  ;;  %v4295_v26 = vpack.i.bf16 %v1451_v48, %v1175_v58  ;;  %v4300_v8 = vpack.i.bf16 %v1454_v55, %v1178_v14  ;;  %v5861_v47 = vmul.f32 %v4568_v40, %v5757_v51  ;;  %v5908_v55 = vld [vmem:[%s6901_s3] sm:$0xff] }
 0xd33   :  { %3971 = vmatprep.subr.bf16.mxu0 %v1236_v28  ;;  %v4305_v1 = vpack.i.bf16 %v1457_v18, %v1181_v43 }
 0xd34   :  { %4296 = vrot.lane.b32.xlu1 %v4295_v26, %s4993_s5  ;;  %3972 = vmatpush3.bf16.msra.mxu0 %v1236_v28  ;;  %v1453_v51 = vmul.f32 %v5820_v24, %v5861_v47  ;;  %v1459_v11 = vmul.f32 %v5891_v62, %v5861_v47  ;;  %v5901_v28 = vld [vmem:[%s6901_s3 + $0x8] sm:$0xff] }
 0xd35   :  { %v1171_v26 = vmul.f32 %v5901_v28, %v5787_v22 }
 0xd36   :  { %v1238_v25 = vpop.permute.xlu0 %1237  ;;  %1239 = vrot.lane.b32.xlu0 %v5501_v21, %s4996_s15 }
 0xd37   :  { %3973 = vmatprep.subr.bf16.mxu0 %v1238_v25 }
 0xd38   :  { %1950 = vrot.lane.b32.xlu1 %v5308_v44, %s4995_s24  ;;  %3974 = vmatpush3.bf16.msra.mxu0 %v1238_v25 }
 0xd3a   :  { %4301 = vrot.lane.b32.xlu0 %v4300_v8, %s4992_s27 }
 0xd3e   :  { %4306 = vrot.lane.b32.xlu0 %v4305_v1, %s4994_s18 }
 0xd42   :  { %1517 = vrot.lane.b32.xlu0 %v5501_v21, %s4997_s30 }
 0xd46   :  { %1952 = vrot.lane.b32.xlu0 %v5856_v12, %s4995_s24 }
 0xd5b   :  { %v1438_v52 = vpop.xlane.xlu1 %1437 }
 0xd5c   :  { %4569 = vrcp.f32 %v1438_v52 }
 0xd5f   :  { %v1512_v6 = vpop.permute.xlu1 %1511 }
 0xd60   :  { %3991 = vmatprep.subr.bf16.mxu1 %v1512_v6 }
 0xd61   :  { %3992 = vmatpush3.bf16.msra.mxu1 %v1512_v6 }
 0xd63   :  { %v1514_v27 = vpop.permute.xlu1 %1513 }
 0xd64   :  { %3993 = vmatprep.subr.bf16.mxu1 %v1514_v27 }
 0xd65   :  { %3994 = vmatpush3.bf16.msra.mxu1 %v1514_v27 }
 0xd66   :  { %v4570_v21 = vpop.eup %4569 }
 0xd67   :  { %v5864_v2 = vmul.f32 %v4570_v21, %v5775_v17  ;;  %v1516_v50 = vpop.permute.xlu1 %1515  ;;  %v1456_v17 = vmul.f32 %v5835_v53, %v5861_v47 }
 0xd68   :  { %3995 = vmatprep.subr.bf16.mxu1 %v1516_v50 }
 0xd69   :  { %3996 = vmatpush3.bf16.msra.mxu1 %v1516_v50  ;;  %v1452_v56 = vmul.f32 %v5869_v54, %v5864_v2  ;;  %v1455_v37 = vmul.f32 %v5802_v10, %v5864_v2  ;;  %v1458_v38 = vmul.f32 %v5883_v36, %v5864_v2 }
 0xd6b   :  { %v4310_v59 = vpack.i.bf16 %v1453_v51, %v1452_v56  ;;  %v4315_v20 = vpack.i.bf16 %v1456_v17, %v1455_v37  ;;  %v4320_v19 = vpack.i.bf16 %v1459_v11, %v1458_v38 }
 0xd6d   :  { %4311 = vrot.lane.b32.xlu1 %v4310_v59, %s4993_s5 }
 0xd71   :  { %4316 = vrot.lane.b32.xlu1 %v4315_v20, %s4992_s27 }
 0xd75   :  { %4321 = vrot.lane.b32.xlu1 %v4320_v19, %s4994_s18 }
 0xd9e   :  { %1625 = vxpose.xlu1.b32.start [1/3] (short) (narrow) %v5302_v33, 32  ;;  %v1170_v33 = vmul.f32 %v5908_v55, %v5785_v16 }
 0xda0   :  { %v4282_v60 = vpop.permute.xlu0 %4281  ;;  %v4292_v48 = vpop.permute.xlu1 %4291 }
 0xda1   :  { %v4284_v23 = vunpack.i.h.bf16 %v4282_v60  ;;  %v4283_v58 = vunpack.i.l.bf16 %v4282_v60  ;;  %v4294_v43 = vunpack.i.h.bf16 %v4292_v48  ;;  %v4293_v1 = vunpack.i.l.bf16 %v4292_v48 }
 0xda2   :  { %1626 = vxpose.xlu1.b32.cont [2/3] (short) (narrow) %v5304_v39, 32 }
 0xda3   :  { %v1219_v8 = vsel %vm494_vm4, %v1171_v26, %v4284_v23  ;;  %v1218_v18 = vsel %vm494_vm4, %v1170_v33, %v4283_v58 }
 0xda4   :  { %v4287_v25 = vpop.permute.xlu0 %4286 }
 0xda5   :  { %v4289_v14 = vunpack.i.h.bf16 %v4287_v25  ;;  %v4288_v39 = vunpack.i.l.bf16 %v4287_v25  ;;  %v1448_v25 = vmul.f32 %v5908_v55, %v5806_v42 }
 0xda6   :  { %1627 = vxpose.xlu1.b32.end [3/3] (short) (narrow) %v5306_v41, 32  ;;  %v4297_v21 = vpop.permute.xlu1 %4296  ;;  %v5923_v41 = vld [vmem:[%s6901_s3 + $0x10] sm:$0xff] }
 0xda7   :  { %v1221_v22 = vsel %vm636_vm5, %v1218_v18, %v4288_v39  ;;  %v1222_v52 = vsel %vm636_vm5, %v1219_v8, %v4289_v14  ;;  %v4298_v56 = vunpack.i.l.bf16 %v4297_v21  ;;  %v1172_v59 = vmul.f32 %v5923_v41, %v5797_v61 }
 0xda8   :  { %v1240_v6 = vpop.permute.xlu0 %1239  ;;  %v1224_v40 = vsel %vm640_vm6, %v1221_v22, %v4293_v1  ;;  %v1225_v16 = vsel %vm640_vm6, %v1222_v52, %v4294_v43  ;;  %v4299_v61 = vunpack.i.h.bf16 %v4297_v21  ;;  %v1449_v43 = vmul.f32 %v5901_v28, %v5864_v2 }
 0xda9   :  { %3975 = vmatprep.subr.bf16.mxu0 %v1240_v6  ;;  %v1227_v27 = vpack.c.bf16 %v1225_v16, %v1224_v40  ;;  %v1220_v17 = vsel %vm494_vm4, %v1172_v59, %v4298_v56  ;;  %v1450_v1 = vmul.f32 %v5923_v41, %v5861_v47 }
 0xdaa   :  { %3976 = vmatpush3.bf16.msra.mxu0 %v1240_v6  ;;  %v1951_v23 = vpop.permute.xlu1 %1950  ;;  %v1496_v22 = vsel %vm494_vm4, %v1448_v25, %v4299_v61 }
 0xdab   :  { %3977 = vmatprep.mubr.msk.bf16.mxu0 %vm682_vm7, %v1227_v27 }
 0xdac   :  { %v4302_v50 = vpop.permute.xlu0 %4301 }
 0xdad   :  { %v4303_v51 = vunpack.i.l.bf16 %v4302_v50  ;;  %v4304_v14 = vunpack.i.h.bf16 %v4302_v50 }
 0xdaf   :  { %v1223_v38 = vsel %vm636_vm5, %v1220_v17, %v4303_v51  ;;  %v1499_v42 = vsel %vm636_vm5, %v1496_v22, %v4304_v14 }
 0xdb0   :  { %v4307_v37 = vpop.permute.xlu0 %4306 }
 0xdb1   :  { %v4308_v20 = vunpack.i.l.bf16 %v4307_v37  ;;  %v4309_v18 = vunpack.i.h.bf16 %v4307_v37 }
 0xdb3   :  { %v1226_v11 = vsel %vm640_vm6, %v1223_v38, %v4308_v20  ;;  %v1502_v2 = vsel %vm640_vm6, %v1499_v42, %v4309_v18 }
 0xdb4   :  { %v1228_v19 = vpack.c.bf16 %v1226_v11, %v1226_v11  ;;  %v1518_v60 = vpop.permute.xlu0 %1517 }
 0xdb5   :  { %3997 = vmatprep.subr.bf16.mxu1 %v1518_v60 }
 0xdb6   :  { %3978 = vmatmul.mubr.msk.bf16.vlgmr.msra.gmra.mrb[36].mxu0 %vm682_vm7, %v1228_v19  ;;  %3998 = vmatpush3.bf16.msra.mxu1 %v1518_v60 }
 0xdb7   :  { %4005 = vmatprep.mubr.msk.bf16.mxu0 %vm426_vm2, %v5308_v44 }
 0xdb8   :  { %v1953_v60 = vpop.permute.xlu0 %1952 }
 0xddf   :  { %v4312_v58 = vpop.permute.xlu1 %4311 }
 0xde0   :  { %v4314_v26 = vunpack.i.h.bf16 %v4312_v58  ;;  %v4313_v33 = vunpack.i.l.bf16 %v4312_v58 }
 0xde2   :  { %v1498_v6 = vsel %vm494_vm4, %v1450_v1, %v4314_v26  ;;  %v1497_v40 = vsel %vm494_vm4, %v1449_v43, %v4313_v33  ;;  %v4714_v1 = vld [vmem:[%s6900_s11] sm:$0xff] }
 0xde3   :  { %v4317_v48 = vpop.permute.xlu1 %4316 }
 0xde4   :  { %v4319_v39 = vunpack.i.h.bf16 %v4317_v48  ;;  %v4318_v8 = vunpack.i.l.bf16 %v4317_v48 }
 0xde6   :  { %v1500_v21 = vsel %vm636_vm5, %v1497_v40, %v4318_v8  ;;  %v1501_v50 = vsel %vm636_vm5, %v1498_v6, %v4319_v39 }
 0xde7   :  { %v4322_v52 = vpop.permute.xlu1 %4321 }
 0xde8   :  { %v4324_v16 = vunpack.i.h.bf16 %v4322_v52  ;;  %v4323_v27 = vunpack.i.l.bf16 %v4322_v52 }
 0xdea   :  { %v1503_v56 = vsel %vm640_vm6, %v1500_v21, %v4323_v27  ;;  %v1504_v47 = vsel %vm640_vm6, %v1501_v50, %v4324_v16  ;;  %v4715_v16 = vld [vmem:[%s6900_s11 + $0x8] sm:$0xff]  ;;  %v4716_v50 = vld [vmem:[%s6900_s11 + $0x10] sm:$0xff] }
 0xdeb   :  { %v1506_v51 = vpack.c.bf16 %v1504_v47, %v1504_v47  ;;  %v1505_v59 = vpack.c.bf16 %v1503_v56, %v1502_v2 }
 0xded   :  { %3999 = vmatprep.mubr.msk.bf16.mxu1 %vm682_vm7, %v1505_v59 }
 0xdee   :  { %4000 = vmatmul.mubr.msk.bf16.vlgmr.msra.gmra.mrb[24].mxu1 %vm682_vm7, %v1506_v51 }
 0xdef   :  { %4027 = vmatprep.mubr.msk.bf16.mxu1 %vm426_vm2, %v1951_v23 }
 0xe1e   :  { %v1641_v37 = vpop.trf.xlu1 }
 0xe1f   :  { %v1659_v17 = vpack.c.bf16 %v1641_v37, %v1641_v37 }
 0xe21   :  { %4207 = vmatprep.subr.msk.bf16.mxu0 %vm433_vm3, %v1659_v17  ;;  %v1667_v20 = vsel %vm433_vm3, %v1659_v17, 0  ;;  %v4717_v17 = vld [vmem:[%s6900_s11 + $0x18] sm:$0xff] }
 0xe22   :  { %v1642_v38 = vpop.trf.xlu1  ;;  %4004 = vmatpush3.bf16.msra.mxu0 %v1667_v20 }
 0xe23   :  { %v1947_v11 = vpack.c.bf16 %v1642_v38, %v1642_v38  ;;  %4009 = vmatprep.subr.bf16.mxu0 %v5418_v34 }
 0xe25   :  { %4006 = vmatmul.mubr.msk.bf16.vlgmr.msra.gmra.mrb[40].mxu0 %vm426_vm2, %v5856_v12  ;;  %4208 = vmatprep.subr.msk.bf16.mxu1 %vm433_vm3, %v1947_v11  ;;  %v1961_v19 = vsel %vm433_vm3, %v1947_v11, 0 }
 0xe26   :  { %4010 = vmatpush3.bf16.msra.mxu0 %v5418_v34  ;;  %4026 = vmatpush3.bf16.msra.mxu1 %v1961_v19  ;;  %v4718_v19 = vld [vmem:[%s6900_s11 + $0x20] sm:$0xff] }
 0xe29   :  { %4028 = vmatmul.mubr.msk.bf16.vlgmr.msra.gmra.mrb[28].mxu1 %vm426_vm2, %v1953_v60 }
 0xe89   :  { %v5960_v23 = vpop.f32.mrb[36].mxu0 }
 0xe8a   :  { %v5962_v58 = vpop.f32.mrb[37].mxu0 }
 0xe8b   :  { %v3980_v61 = vpop.f32.mrb[38].mxu0 }
 0xe8c   :  { %v5964_v48 = vpop.f32.mrb[39].mxu0 }
 0xec1   :  { %v5968_v33 = vpop.f32.mrb[24].mxu1 }
 0xec2   :  { %v5970_v25 = vpop.f32.mrb[25].mxu1 }
 0xec3   :  { %v4002_v14 = vpop.f32.mrb[26].mxu1 }
 0xec4   :  { %v5972_v39 = vpop.f32.mrb[27].mxu1  ;;  %v4719_v14 = vld [vmem:[%s6900_s11 + $0x28] sm:$0xff] }
 0xef8   :  { %v4007_v18 = vpop.f32.mrb[40].mxu0 }
 0xef9   :  { %v1703_v43 = vpop.f32.mrb[41].mxu0  ;;  %v1719_v2 = vsub.f32 %v4007_v18, %v4716_v50 }
 0xefa   :  { %v1717_v22 = vsub.f32 %v1703_v43, %v4714_v1  ;;  %v4008_v52 = vpop.f32.mrb[42].mxu0 }
 0xefb   :  { %v1706_v6 = vpop.f32.mrb[43].mxu0  ;;  %v5994_v37 = vsub.f32 %v1719_v2, %v5341_v5 }
 0xefc   :  { %v5980_v40 = vsub.f32 %v1717_v22, %v5328_v57  ;;  %v1718_v27 = vsub.f32 %v1706_v6, %v4715_v16  ;;  %v4029_v42 = vpop.f32.mrb[28].mxu1 }
 0xefd   :  { %v1997_v21 = vpop.f32.mrb[29].mxu1  ;;  %v1729_v61 = vsel %vm494_vm4, %v5994_v37, -inf  ;;  %v2013_v18 = vsub.f32 %v4029_v42, %v4719_v14 }
 0xefe   :  { %v5989_v56 = vsub.f32 %v1718_v27, %v5333_v63  ;;  %v4030_v47 = vpop.f32.mrb[30].mxu1  ;;  %v1723_v51 = vsel %vm494_vm4, %v5980_v40, -inf  ;;  %v2011_v20 = vsub.f32 %v1997_v21, %v4717_v17 }
 0xeff   :  { %v2000_v59 = vpop.f32.mrb[31].mxu1  ;;  %1724 = vmax.xlane.f32.xlu0 %v1723_v51  ;;  %v6018_v22 = vsub.f32 %v2013_v18, %v5341_v5 }
 0xf00   :  { %v1726_v38 = vsel %vm494_vm4, %v5989_v56, -inf  ;;  %v6002_v11 = vsub.f32 %v2011_v20, %v5328_v57  ;;  %v2012_v60 = vsub.f32 %v2000_v59, %v4718_v19 }
 0xf01   :  { %v2023_v6 = vsel %vm494_vm4, %v6018_v22, -inf }
 0xf02   :  { %v6013_v43 = vsub.f32 %v2012_v60, %v5333_v63  ;;  %v2017_v1 = vsel %vm494_vm4, %v6002_v11, -inf }
 0xf03   :  { %1727 = vmax.xlane.f32.xlu0 %v1726_v38 }
 0xf04   :  { %v2020_v52 = vsel %vm494_vm4, %v6013_v43, -inf }
 0xf07   :  { %1730 = vmax.xlane.f32.xlu0 %v1729_v61 }
 0xf0b   :  { %2018 = vmax.xlane.f32.xlu0 %v2017_v1 }
 0xf0f   :  { %2021 = vmax.xlane.f32.xlu0 %v2020_v52 }
 0xf13   :  { %2024 = vmax.xlane.f32.xlu0 %v2023_v6 }
 0xf8c   :  { %v1725_v16 = vpop.xlane.xlu0 %1724 }
 0xf8d   :  { %v1732_v27 = vsub.f32 %v5980_v40, %v1725_v16 }
 0xf8f   :  { %v1735_v42 = vmul.f32 1.442695, %v1732_v27 }
 0xf90   :  { %v1728_v21 = vpop.xlane.xlu0 %1727 }
 0xf91   :  { %4571 = vpow2.f32 %v1735_v42  ;;  %v1733_v50 = vsub.f32 %v5989_v56, %v1728_v21 }
 0xf93   :  { %v1737_v2 = vmul.f32 1.442695, %v1733_v50 }
 0xf94   :  { %v1731_v47 = vpop.xlane.xlu0 %1730 }
 0xf95   :  { %4573 = vpow2.f32 %v1737_v2  ;;  %v1734_v51 = vsub.f32 %v5994_v37, %v1731_v47 }
 0xf97   :  { %v1739_v59 = vmul.f32 1.442695, %v1734_v51 }
 0xf98   :  { %v6027_v17 = vpop.xlane.xlu0 %2018 }
 0xf99   :  { %4575 = vpow2.f32 %v1739_v59  ;;  %v2026_v20 = vsub.f32 %v6002_v11, %v6027_v17 }
 0xf9b   :  { %v4572_v38 = vpop.eup %4571  ;;  %v2029_v19 = vmul.f32 1.442695, %v2026_v20 }
 0xf9c   :  { %v6031_v60 = vpop.xlane.xlu0 %2021  ;;  %v1741_v61 = vsel %vm494_vm4, %v4572_v38, 0.0 }
 0xf9d   :  { %4577 = vpow2.f32 %v2029_v19  ;;  %v2027_v14 = vsub.f32 %v6013_v43, %v6031_v60  ;;  %1742 = vadd.xlane.f32.xlu1 %v1741_v61 }
 0xf9f   :  { %v4574_v18 = vpop.eup %4573  ;;  %v2031_v1 = vmul.f32 1.442695, %v2027_v14  ;;  %v6045_v14 = vpop.trf.xlu1 }
 0xfa0   :  { %v6036_v52 = vpop.xlane.xlu0 %2024  ;;  %v1744_v6 = vsel %vm494_vm4, %v4574_v18, 0.0 }
 0xfa1   :  { %4579 = vpow2.f32 %v2031_v1  ;;  %v2028_v27 = vsub.f32 %v6018_v22, %v6036_v52  ;;  %1745 = vadd.xlane.f32.xlu0 %v1744_v6 }
 0xfa3   :  { %v4576_v42 = vpop.eup %4575  ;;  %v2033_v50 = vmul.f32 1.442695, %v2028_v27  ;;  %v6047_v18 = vpop.trf.xlu1 }
 0xfa4   :  { %v1747_v2 = vsel %vm494_vm4, %v4576_v42, 0.0 }
 0xfa5   :  { %4581 = vpow2.f32 %v2033_v50  ;;  %1748 = vadd.xlane.f32.xlu0 %v1747_v2 }
 0xfa7   :  { %v4578_v51 = vpop.eup %4577 }
 0xfa8   :  { %v2035_v59 = vsel %vm494_vm4, %v4578_v51, 0.0 }
 0xfa9   :  { %2036 = vadd.xlane.f32.xlu0 %v2035_v59 }
 0xfab   :  { %v4580_v20 = vpop.eup %4579 }
 0xfac   :  { %v2038_v38 = vsel %vm494_vm4, %v4580_v20, 0.0 }
 0xfad   :  { %2039 = vadd.xlane.f32.xlu0 %v2038_v38 }
 0xfaf   :  { %v4582_v19 = vpop.eup %4581 }
 0xfb0   :  { %v2041_v61 = vsel %vm494_vm4, %v4582_v19, 0.0 }
 0xfb1   :  { %2042 = vadd.xlane.f32.xlu0 %v2041_v61 }
0x102a   :  { %v1743_v1 = vpop.xlane.xlu1 %1742 }
0x102b   :  { %4583 = vlog2.f32 %v1743_v1 }
0x102e   :  { %v1746_v6 = vpop.xlane.xlu0 %1745 }
0x102f   :  { %4585 = vlog2.f32 %v1746_v6 }
0x1032   :  { %v1749_v27 = vpop.xlane.xlu0 %1748 }
0x1033   :  { %4587 = vlog2.f32 %v1749_v27 }
0x1035   :  { %v4584_v42 = vpop.eup %4583 }
0x1036   :  { %v1751_v50 = vmul.f32 0.6931472, %v4584_v42  ;;  %v2037_v2 = vpop.xlane.xlu0 %2036 }
0x1037   :  { %4589 = vlog2.f32 %v2037_v2 }
0x1038   :  { %v1756_v51 = vadd.f32 %v1751_v50, %v1725_v16 }
0x1039   :  { %v4586_v59 = vpop.eup %4585 }
0x103a   :  { %v1753_v20 = vmul.f32 0.6931472, %v4586_v59  ;;  %v2040_v38 = vpop.xlane.xlu0 %2039  ;;  %v1759_v19 = vsub.f32 %v5980_v40, %v1756_v51 }
0x103b   :  { %4591 = vlog2.f32 %v2040_v38 }
0x103c   :  { %v1757_v61 = vadd.f32 %v1753_v20, %v1728_v21  ;;  %v1762_v0 = vsub.f32 %v1759_v19, %v5328_v57 }
0x103d   :  { %v4588_v8 = vpop.eup %4587 }
0x103e   :  { %v1755_v1 = vmul.f32 0.6931472, %v4588_v8  ;;  %v2043_v26 = vpop.xlane.xlu0 %2042  ;;  %v1765_v6 = vsel %vm494_vm4, %v1762_v0, -inf  ;;  %v1760_v27 = vsub.f32 %v5989_v56, %v1757_v61 }
0x103f   :  { %4593 = vlog2.f32 %v2043_v26  ;;  %1766 = vmax.xlane.f32.xlu0 %v1765_v6 }
0x1040   :  { %v1758_v42 = vadd.f32 %v1755_v1, %v1731_v47  ;;  %v1763_v16 = vsub.f32 %v1760_v27, %v5333_v63 }
0x1041   :  { %v4590_v50 = vpop.eup %4589 }
0x1042   :  { %v2045_v2 = vmul.f32 0.6931472, %v4590_v50  ;;  %v1768_v40 = vsel %vm494_vm4, %v1763_v16, -inf  ;;  %v1761_v21 = vsub.f32 %v5994_v37, %v1758_v42 }
0x1043   :  { %1769 = vmax.xlane.f32.xlu0 %v1768_v40 }
0x1044   :  { %v2050_v51 = vadd.f32 %v2045_v2, %v6027_v17  ;;  %v1764_v8 = vsub.f32 %v1761_v21, %v5341_v5 }
0x1045   :  { %v4592_v59 = vpop.eup %4591 }
0x1046   :  { %v2047_v20 = vmul.f32 0.6931472, %v4592_v59  ;;  %v1771_v56 = vsel %vm494_vm4, %v1764_v8, -inf  ;;  %v2053_v26 = vsub.f32 %v6002_v11, %v2050_v51 }
0x1047   :  { %1772 = vmax.xlane.f32.xlu0 %v1771_v56 }
0x1048   :  { %v2051_v47 = vadd.f32 %v2047_v20, %v6031_v60  ;;  %v2056_v38 = vsub.f32 %v2053_v26, %v5328_v57 }
0x1049   :  { %v4594_v19 = vpop.eup %4593 }
0x104a   :  { %v2049_v61 = vmul.f32 0.6931472, %v4594_v19  ;;  %v2059_v37 = vsel %vm494_vm4, %v2056_v38, -inf  ;;  %v2054_v1 = vsub.f32 %v6013_v43, %v2051_v47 }
0x104b   :  { %2060 = vmax.xlane.f32.xlu0 %v2059_v37 }
0x104c   :  { %v2052_v17 = vadd.f32 %v2049_v61, %v6036_v52  ;;  %v2057_v6 = vsub.f32 %v2054_v1, %v5333_v63 }
0x104e   :  { %v2062_v27 = vsel %vm494_vm4, %v2057_v6, -inf  ;;  %v2055_v11 = vsub.f32 %v6018_v22, %v2052_v17 }
0x104f   :  { %2063 = vmax.xlane.f32.xlu0 %v2062_v27 }
0x1050   :  { %v2058_v60 = vsub.f32 %v2055_v11, %v5341_v5 }
0x1052   :  { %v2065_v42 = vsel %vm494_vm4, %v2058_v60, -inf }
0x1053   :  { %2066 = vmax.xlane.f32.xlu1 %v2065_v42 }
0x10cc   :  { %v1767_v50 = vpop.xlane.xlu0 %1766 }
0x10cd   :  { %v1774_v2 = vsub.f32 %v1762_v0, %v1767_v50 }
0x10cf   :  { %v1777_v40 = vmul.f32 1.442695, %v1774_v2 }
0x10d0   :  { %v1770_v21 = vpop.xlane.xlu0 %1769 }
0x10d1   :  { %4595 = vpow2.f32 %v1777_v40  ;;  %v1775_v43 = vsub.f32 %v1763_v16, %v1770_v21 }
0x10d3   :  { %v1779_v51 = vmul.f32 1.442695, %v1775_v43 }
0x10d4   :  { %v1773_v52 = vpop.xlane.xlu0 %1772 }
0x10d5   :  { %4597 = vpow2.f32 %v1779_v51  ;;  %v1776_v59 = vsub.f32 %v1764_v8, %v1773_v52 }
0x10d7   :  { %v1781_v20 = vmul.f32 1.442695, %v1776_v59 }
0x10d8   :  { %v2061_v16 = vpop.xlane.xlu0 %2060 }
0x10d9   :  { %4599 = vpow2.f32 %v1781_v20  ;;  %v2068_v1 = vsub.f32 %v2056_v38, %v2061_v16 }
0x10db   :  { %v4596_v56 = vpop.eup %4595  ;;  %v2071_v11 = vmul.f32 1.442695, %v2068_v1 }
0x10dc   :  { %v1783_v22 = vsel %vm494_vm4, %v4596_v56, 0.0  ;;  %v2064_v37 = vpop.xlane.xlu0 %2063 }
0x10dd   :  { %1784 = vadd.xlane.f32.xlu0 %v1783_v22  ;;  %v2069_v17 = vsub.f32 %v2057_v6, %v2064_v37 }
0x10df   :  { %v4598_v26 = vpop.eup %4597  ;;  %v2073_v42 = vmul.f32 1.442695, %v2069_v17 }
0x10e0   :  { %v1786_v47 = vsel %vm494_vm4, %v4598_v26, 0.0  ;;  %v2067_v8 = vpop.xlane.xlu1 %2066 }
0x10e1   :  { %1787 = vadd.xlane.f32.xlu1 %v1786_v47  ;;  %v2070_v61 = vsub.f32 %v2058_v60, %v2067_v8 }
0x10e3   :  { %v6072_v19 = vpop.eup %4599  ;;  %v2075_v27 = vmul.f32 1.442695, %v2070_v61 }
0x10e4   :  { %v1789_v0 = vsel %vm494_vm4, %v6072_v19, 0.0 }
0x10e5   :  { %1790 = vadd.xlane.f32.xlu0 %v1789_v0  ;;  %4601 = vpow2.f32 %v2075_v27 }
0x10e6   :  { %4603 = vpow2.f32 %v2071_v11 }
0x10e7   :  { %4605 = vpow2.f32 %v2073_v42 }
0x10ef   :  { %v6086_v31 = vpop.eup %4601 }
0x10f0   :  { %v2083_v50 = vsel %vm494_vm4, %v6086_v31, 0.0 }
0x10f2   :  { %4326 = vrot.lane.b32.xlu1 %v5523_v46, %s4989_s7 }
0x10f6   :  { %4331 = vrot.lane.b32.xlu1 %v4330_v32, %s4990_s22  ;;  %v6088_v32 = vpop.eup %4603 }
0x10f7   :  { %v6092_v2 = vpop.eup %4605  ;;  %v2077_v38 = vsel %vm494_vm4, %v6088_v32, 0.0 }
0x10f8   :  { %v2080_v6 = vsel %vm494_vm4, %v6092_v2, 0.0 }
0x10fb   :  { %1858 = vrot.lane.b32.xlu0 %v5409_v30, %s4989_s7 }
0x10ff   :  { %1871 = vrot.lane.b32.xlu0 %v5519_v45, %s4990_s22 }
0x111a   :  { %2084 = vadd.xlane.f32.xlu1 %v2083_v50 }
0x111e   :  { %2078 = vadd.xlane.f32.xlu1 %v2077_v38  ;;  %2081 = vadd.xlane.f32.xlu0 %v2080_v6 }
0x112f   :  { %1876 = vrot.lane.b32.xlu1 %v5409_v30, %s4991_s0 }
0x1133   :  { %2157 = vrot.lane.b32.xlu1 %v5418_v34, %s4995_s24 }
0x1134   :  { %4336 = vrot.lane.b32.xlu0 %v5523_v46, %s4991_s0 }
0x116a   :  { %v1785_v60 = vpop.xlane.xlu0 %1784 }
0x116b   :  { %4607 = vrcp.f32 %v1785_v60 }
0x116e   :  { %v1788_v40 = vpop.xlane.xlu1 %1787 }
0x116f   :  { %4609 = vrcp.f32 %v1788_v40 }
0x1172   :  { %v4327_v21 = vpop.permute.xlu1 %4326  ;;  %v1791_v43 = vpop.xlane.xlu0 %1790 }
0x1173   :  { %v4329_v51 = vunpack.i.h.bf16 %v4327_v21  ;;  %v4328_v52 = vunpack.i.l.bf16 %v4327_v21  ;;  %4611 = vrcp.f32 %v1791_v43 }
0x1175   :  { %v4608_v59 = vpop.eup %4607  ;;  %v6104_v20 = vpack.c.bf16 %v4329_v51, %v4328_v52 }
0x1176   :  { %v4332_v22 = vpop.permute.xlu1 %4331  ;;  %v1859_v47 = vpop.permute.xlu0 %1858  ;;  %v6111_v46 = vmul.f32 %v4608_v59, %v4596_v56 }
0x1177   :  { %v4334_v30 = vunpack.i.h.bf16 %v4332_v22  ;;  %v4333_v0 = vunpack.i.l.bf16 %v4332_v22  ;;  %v6107_v16 = vpack.c.bf16 %v1859_v47, %v5519_v45  ;;  %2161 = vrot.lane.b32.xlu1 %v6104_v20, %s4995_s24  ;;  %v6125_v45 = vld [vmem:[%s6901_s3 + $0x18] sm:$0xff] }
0x1178   :  { %v1801_v56 = vmul.f32 %v6125_v45, %v6111_v46  ;;  %v1804_v27 = vmul.f32 %v5813_v13, %v6111_v46  ;;  %v1807_v43 = vmul.f32 %v5844_v49, %v6111_v46 }
0x1179   :  { %v4610_v8 = vpop.eup %4609  ;;  %2159 = vrot.lane.b32.xlu0 %v6107_v16, %s4995_s24  ;;  %4011 = vmatprep.subr.bf16.mxu0 %v6107_v16  ;;  %v6119_v37 = vpack.c.bf16 %v4334_v30, %v4333_v0 }
0x117a   :  { %v6116_v61 = vmul.f32 %v4610_v8, %v4598_v26  ;;  %4012 = vmatpush3.bf16.msra.mxu0 %v6107_v16  ;;  %v1872_v42 = vpop.permute.xlu0 %1871 }
0x117b   :  { %4013 = vmatprep.subr.bf16.mxu0 %v6104_v20 }
0x117c   :  { %v1802_v1 = vmul.f32 %v5869_v54, %v6116_v61  ;;  %v1805_v17 = vmul.f32 %v5802_v10, %v6116_v61  ;;  %v1808_v59 = vmul.f32 %v5883_v36, %v6116_v61 }
0x117d   :  { %2163 = vrot.lane.b32.xlu0 %v6119_v37, %s4995_s24  ;;  %v4612_v22 = vpop.eup %4611 }
0x117e   :  { %4014 = vmatpush3.bf16.msra.mxu0 %v6104_v20  ;;  %v4340_v26 = vpack.i.bf16 %v1802_v1, %v1801_v56  ;;  %v4345_v11 = vpack.i.bf16 %v1805_v17, %v1804_v27  ;;  %v6155_v0 = vmul.f32 %v4612_v22, %v6072_v19  ;;  %v4350_v8 = vpack.i.bf16 %v1808_v59, %v1807_v43 }
0x117f   :  { %4015 = vmatprep.subr.bf16.mxu0 %v6119_v37 }
0x1181   :  { %4341 = vrot.lane.b32.xlu0 %v4340_v26, %s4993_s5  ;;  %v6160_v26 = vpack.c.bf16 %v6045_v14, %v6045_v14 }
0x1182   :  { %4016 = vmatpush3.bf16.msra.mxu0 %v6119_v37 }
0x1185   :  { %4346 = vrot.lane.b32.xlu0 %v4345_v11, %s4992_s27  ;;  %v1806_v11 = vmul.f32 %v5835_v53, %v6155_v0 }
0x11a7   :  { %v2085_v50 = vpop.xlane.xlu1 %2084 }
0x11a8   :  { %4613 = vrcp.f32 %v2085_v50 }
0x11ab   :  { %v2079_v38 = vpop.xlane.xlu1 %2078  ;;  %v2082_v6 = vpop.xlane.xlu0 %2081 }
0x11ac   :  { %4615 = vrcp.f32 %v2079_v38 }
0x11ad   :  { %4617 = vrcp.f32 %v2082_v6 }
0x11af   :  { %v1877_v60 = vpop.permute.xlu1 %1876  ;;  %v4337_v40 = vpop.permute.xlu0 %4336 }
0x11b0   :  { %v6142_v21 = vpack.c.bf16 %v1877_v60, %v1872_v42  ;;  %v4339_v51 = vunpack.i.h.bf16 %v4337_v40  ;;  %v4338_v52 = vunpack.i.l.bf16 %v4337_v40 }
0x11b2   :  { %v6146_v47 = vpack.c.bf16 %v4339_v51, %v4338_v52  ;;  %2165 = vrot.lane.b32.xlu1 %v6142_v21, %s4995_s24  ;;  %4017 = vmatprep.subr.bf16.mxu0 %v6142_v21  ;;  %v4614_v56 = vpop.eup %4613 }
0x11b3   :  { %v2158_v30 = vpop.permute.xlu1 %2157  ;;  %4018 = vmatpush3.bf16.msra.mxu0 %v6142_v21  ;;  %v6175_v14 = vmul.f32 %v4614_v56, %v6086_v31 }
0x11b4   :  { %4019 = vmatprep.subr.bf16.mxu0 %v6146_v47  ;;  %4031 = vmatprep.subr.bf16.mxu1 %v2158_v30 }
0x11b5   :  { %4032 = vmatpush3.bf16.msra.mxu1 %v2158_v30  ;;  %v2100_v31 = vmul.f32 %v5835_v53, %v6175_v14  ;;  %v2097_v59 = vmul.f32 %v5820_v24, %v6175_v14 }
0x11b6   :  { %v4616_v1 = vpop.eup %4615  ;;  %4351 = vrot.lane.b32.xlu1 %v4350_v8, %s4994_s18 }
0x11b7   :  { %v4618_v17 = vpop.eup %4617  ;;  %v6164_v27 = vmul.f32 %v4616_v1, %v6088_v32  ;;  %4020 = vmatpush3.bf16.msra.mxu0 %v6146_v47  ;;  %v1803_v32 = vmul.f32 %v5820_v24, %v6155_v0 }
0x11b8   :  { %v6168_v19 = vmul.f32 %v4618_v17, %v6092_v2  ;;  %4209 = vmatprep.subr.msk.bf16.mxu0 %vm433_vm3, %v6160_v26  ;;  %v1799_v17 = vmul.f32 %v5901_v28, %v6116_v61 }
0x11b9   :  { %v2098_v42 = vmul.f32 %v5813_v13, %v6164_v27  ;;  %v2095_v50 = vmul.f32 %v6125_v45, %v6164_v27  ;;  %v2101_v6 = vmul.f32 %v5844_v49, %v6164_v27  ;;  %v1809_v13 = vmul.f32 %v5891_v62, %v6155_v0 }
0x11ba   :  { %v2099_v60 = vmul.f32 %v5802_v10, %v6168_v19  ;;  %v2102_v52 = vmul.f32 %v5883_v36, %v6168_v19  ;;  %v2096_v49 = vmul.f32 %v5869_v54, %v6168_v19  ;;  %v2103_v10 = vmul.f32 %v5891_v62, %v6175_v14 }
0x11bb   :  { %v4360_v2 = vpack.i.bf16 %v2098_v42, %v1806_v11  ;;  %v4355_v38 = vpack.i.bf16 %v2095_v50, %v1803_v32  ;;  %v4365_v40 = vpack.i.bf16 %v2101_v6, %v1809_v13 }
0x11bc   :  { %v4375_v51 = vpack.i.bf16 %v2100_v31, %v2099_v60  ;;  %v4380_v22 = vpack.i.bf16 %v2103_v10, %v2102_v52  ;;  %v4370_v53 = vpack.i.bf16 %v2097_v59, %v2096_v49 }
0x11bd   :  { %4361 = vrot.lane.b32.xlu0 %v4360_v2, %s4992_s27  ;;  %4356 = vrot.lane.b32.xlu1 %v4355_v38, %s4993_s5 }
0x11c1   :  { %4366 = vrot.lane.b32.xlu1 %v4365_v40, %s4994_s18  ;;  %4376 = vrot.lane.b32.xlu0 %v4375_v51, %s4992_s27  ;;  %v1800_v40 = vmul.f32 %v5923_v41, %v6155_v0  ;;  %v2094_v0 = vmul.f32 %v5923_v41, %v6175_v14 }
0x11c5   :  { %4381 = vrot.lane.b32.xlu0 %v4380_v22, %s4994_s18  ;;  %4371 = vrot.lane.b32.xlu1 %v4370_v53, %s4993_s5 }
0x11c9   :  { %2230 = vrot.lane.b32.xlu0 %v5308_v44, %s4996_s15  ;;  %2167 = vrot.lane.b32.xlu1 %v6146_v47, %s4995_s24 }
0x11cd   :  { %2504 = vrot.lane.b32.xlu0 %v5308_v44, %s4997_s30  ;;  %2232 = vrot.lane.b32.xlu1 %v5856_v12, %s4996_s15 }
0x11d1   :  { %2506 = vrot.lane.b32.xlu1 %v5856_v12, %s4997_s30  ;;  %v1798_v12 = vmul.f32 %v5908_v55, %v6111_v46 }
0x11e9   :  { %v2162_v54 = vpop.permute.xlu1 %2161 }
0x11eb   :  { %v2160_v24 = vpop.permute.xlu0 %2159 }
0x11ec   :  { %4033 = vmatprep.subr.bf16.mxu1 %v2160_v24 }
0x11ed   :  { %4034 = vmatpush3.bf16.msra.mxu1 %v2160_v24 }
0x11ee   :  { %4035 = vmatprep.subr.bf16.mxu1 %v2162_v54 }
0x11ef   :  { %v2164_v36 = vpop.permute.xlu0 %2163 }
0x11f1   :  { %4036 = vmatpush3.bf16.msra.mxu1 %v2162_v54  ;;  %v2092_v54 = vmul.f32 %v5908_v55, %v6164_v27  ;;  %v2241_v55 = vsel %vm433_vm3, %v6160_v26, 0 }
0x11f2   :  { %4037 = vmatprep.subr.bf16.mxu1 %v2164_v36 }
0x11f3   :  { %v4342_v62 = vpop.permute.xlu0 %4341 }
0x11f4   :  { %v4344_v8 = vunpack.i.h.bf16 %v4342_v62  ;;  %v4343_v44 = vunpack.i.l.bf16 %v4342_v62 }
0x11f5   :  { %4038 = vmatpush3.bf16.msra.mxu1 %v2164_v36 }
0x11f6   :  { %v1847_v42 = vsel %vm494_vm4, %v1799_v17, %v4344_v8  ;;  %v1846_v32 = vsel %vm494_vm4, %v1798_v12, %v4343_v44  ;;  %v2093_v8 = vmul.f32 %v5901_v28, %v6168_v19  ;;  %v2503_v28 = vpack.c.bf16 %v6047_v18, %v6047_v18 }
0x11f7   :  { %v4347_v43 = vpop.permute.xlu0 %4346 }
0x11f8   :  { %v4349_v56 = vunpack.i.h.bf16 %v4347_v43  ;;  %v4348_v1 = vunpack.i.l.bf16 %v4347_v43 }
0x11fa   :  { %v1849_v38 = vsel %vm636_vm5, %v1846_v32, %v4348_v1  ;;  %v1850_v6 = vsel %vm636_vm5, %v1847_v42, %v4349_v56 }
0x1224   :  { %v2166_v30 = vpop.permute.xlu1 %2165 }
0x1225   :  { %4039 = vmatprep.subr.bf16.mxu1 %v2166_v30 }
0x1226   :  { %4040 = vmatpush3.bf16.msra.mxu1 %v2166_v30 }
0x1228   :  { %v4352_v11 = vpop.permute.xlu1 %4351 }
0x1229   :  { %v4354_v50 = vunpack.i.h.bf16 %v4352_v11  ;;  %v4353_v2 = vunpack.i.l.bf16 %v4352_v11 }
0x122b   :  { %v1852_v60 = vsel %vm640_vm6, %v1849_v38, %v4353_v2  ;;  %v1853_v13 = vsel %vm640_vm6, %v1850_v6, %v4354_v50 }
0x122c   :  { %v1885_v31 = vpack.c.bf16 %v1853_v13, %v1852_v60 }
0x122e   :  { %4021 = vmatprep.mubr.msk.bf16.mxu0 %vm682_vm7, %v1885_v31 }
0x122f   :  { %v4357_v46 = vpop.permute.xlu1 %4356  ;;  %v4362_v61 = vpop.permute.xlu0 %4361 }
0x1230   :  { %v4358_v51 = vunpack.i.l.bf16 %v4357_v46  ;;  %v4363_v52 = vunpack.i.l.bf16 %v4362_v61  ;;  %v4359_v22 = vunpack.i.h.bf16 %v4357_v46  ;;  %v4364_v62 = vunpack.i.h.bf16 %v4362_v61 }
0x1232   :  { %v1848_v49 = vsel %vm494_vm4, %v1800_v40, %v4358_v51  ;;  %v2140_v56 = vsel %vm494_vm4, %v2092_v54, %v4359_v22  ;;  %v2515_v40 = vsel %vm433_vm3, %v2503_v28, 0 }
0x1233   :  { %v4367_v10 = vpop.permute.xlu1 %4366  ;;  %v4377_v59 = vpop.permute.xlu0 %4376  ;;  %v1851_v24 = vsel %vm636_vm5, %v1848_v49, %v4363_v52  ;;  %v2143_v19 = vsel %vm636_vm5, %v2140_v56, %v4364_v62 }
0x1234   :  { %v4368_v53 = vunpack.i.l.bf16 %v4367_v10  ;;  %v4369_v1 = vunpack.i.h.bf16 %v4367_v10  ;;  %v4379_v11 = vunpack.i.h.bf16 %v4377_v59  ;;  %v4378_v42 = vunpack.i.l.bf16 %v4377_v59 }
0x1236   :  { %v1854_v36 = vsel %vm640_vm6, %v1851_v24, %v4368_v53  ;;  %v2146_v26 = vsel %vm640_vm6, %v2143_v19, %v4369_v1  ;;  %v4724_v19 = vld [vmem:[%s6900_s11 + $0x48] sm:$0xff] }
0x1237   :  { %v1886_v43 = vpack.c.bf16 %v1854_v36, %v1854_v36  ;;  %v4372_v30 = vpop.permute.xlu1 %4371  ;;  %v4382_v44 = vpop.permute.xlu0 %4381 }
0x1238   :  { %v4374_v12 = vunpack.i.h.bf16 %v4372_v30  ;;  %v4373_v17 = vunpack.i.l.bf16 %v4372_v30  ;;  %v4384_v14 = vunpack.i.h.bf16 %v4382_v44  ;;  %v4383_v32 = vunpack.i.l.bf16 %v4382_v44  ;;  %v4722_v30 = vld [vmem:[%s6900_s11 + $0x30] sm:$0xff] }
0x1239   :  { %4022 = vmatmul.mubr.msk.bf16.vlgmr.msra.gmra.mrb[44].mxu0 %vm682_vm7, %v1886_v43  ;;  %v4721_v43 = vld [vmem:[%s6900_s11 + $0x40] sm:$0xff] }
0x123a   :  { %v2142_v27 = vsel %vm494_vm4, %v2094_v0, %v4374_v12  ;;  %v2141_v41 = vsel %vm494_vm4, %v2093_v8, %v4373_v17  ;;  %4048 = vmatpush3.bf16.msra.mxu0 %v2241_v55 }
0x123b   :  { %v2144_v50 = vsel %vm636_vm5, %v2141_v41, %v4378_v42  ;;  %v2145_v2 = vsel %vm636_vm5, %v2142_v27, %v4379_v11  ;;  %v2231_v38 = vpop.permute.xlu0 %2230  ;;  %v2168_v6 = vpop.permute.xlu1 %2167  ;;  %v4723_v11 = vld [vmem:[%s6900_s11 + $0x38] sm:$0xff] }
0x123c   :  { %v2147_v60 = vsel %vm640_vm6, %v2144_v50, %v4383_v32  ;;  %v2148_v13 = vsel %vm640_vm6, %v2145_v2, %v4384_v14  ;;  %4041 = vmatprep.subr.bf16.mxu1 %v2168_v6  ;;  %4049 = vmatprep.mubr.msk.bf16.mxu0 %vm426_vm2, %v2231_v38  ;;  %v4725_v38 = vld [vmem:[%s6900_s11 + $0x58] sm:$0xff] }
0x123d   :  { %v2149_v31 = vpack.c.bf16 %v2147_v60, %v2146_v26  ;;  %v2150_v46 = vpack.c.bf16 %v2148_v13, %v2148_v13  ;;  %4042 = vmatpush3.bf16.msra.mxu1 %v2168_v6 }
0x123e   :  { %4210 = vmatprep.subr.msk.bf16.mxu1 %vm433_vm3, %v2503_v28 }
0x123f   :  { %v2505_v18 = vpop.permute.xlu0 %2504  ;;  %4043 = vmatprep.mubr.msk.bf16.mxu1 %vm682_vm7, %v2149_v31  ;;  %v2233_v61 = vpop.permute.xlu1 %2232  ;;  %v4726_v31 = vld [vmem:[%s6900_s11 + $0x50] sm:$0xff] }
0x1240   :  { %4044 = vmatmul.mubr.msk.bf16.vlgmr.msra.gmra.mrb[32].mxu1 %vm682_vm7, %v2150_v46 }
0x1241   :  { %4050 = vmatmul.mubr.msk.bf16.vlgmr.msra.gmra.mrb[48].mxu0 %vm426_vm2, %v2233_v61  ;;  %4070 = vmatpush3.bf16.msra.mxu1 %v2515_v40 }
0x1242   :  { %4071 = vmatprep.mubr.msk.bf16.mxu1 %vm426_vm2, %v2505_v18 }
0x1243   :  { %v2507_v51 = vpop.permute.xlu1 %2506 }
0x1248   :  { %4072 = vmatmul.mubr.msk.bf16.vlgmr.msra.gmra.mrb[36].mxu1 %vm426_vm2, %v2507_v51 }
0x130c   :  { %v6259_v52 = vpop.f32.mrb[44].mxu0 }
0x130d   :  { %v6261_v49 = vpop.f32.mrb[45].mxu0 }
0x130e   :  { %v4024_v10 = vpop.f32.mrb[46].mxu0 }
0x130f   :  { %v6263_v59 = vpop.f32.mrb[47].mxu0 }
0x1313   :  { %v6265_v22 = vpop.f32.mrb[32].mxu1 }
0x1314   :  { %v6267_v53 = vpop.f32.mrb[33].mxu1  ;;  %v4051_v24 = vpop.f32.mrb[48].mxu0 }
0x1315   :  { %v4445_v54 = vpack.i.bf16 %v6267_v53, %v5655_v7  ;;  %v4046_v36 = vpop.f32.mrb[34].mxu1  ;;  %v2277_v62 = vpop.f32.mrb[49].mxu0  ;;  %v2293_v0 = vsub.f32 %v4051_v24, %v4721_v43 }
0x1316   :  { %v2291_v8 = vsub.f32 %v2277_v62, %v4722_v30  ;;  %v6277_v44 = vpop.f32.mrb[35].mxu1  ;;  %v4052_v56 = vpop.f32.mrb[50].mxu0 }
0x1317   :  { %v4460_v1 = vpack.i.bf16 %v6265_v22, %v6277_v44  ;;  %v2280_v12 = vpop.f32.mrb[51].mxu0  ;;  %v6288_v55 = vsub.f32 %v2293_v0, %v5341_v5  ;;  %v4739_v22 = vld [vmem:[%s6898_s29 + $0x8] sm:$0xff] }
0x1318   :  { %v6282_v17 = vsub.f32 %v2291_v8, %v5328_v57  ;;  %v2292_v42 = vsub.f32 %v2280_v12, %v4723_v11 }
0x1319   :  { %v2303_v60 = vsel %vm494_vm4, %v6288_v55, -inf }
0x131a   :  { %v6291_v27 = vsub.f32 %v2292_v42, %v5333_v63  ;;  %v2297_v41 = vsel %vm494_vm4, %v6282_v17, -inf }
0x131b   :  { %v4073_v14 = vpop.f32.mrb[36].mxu1  ;;  %2298 = vmax.xlane.f32.xlu0 %v2297_v41 }
0x131c   :  { %v2551_v32 = vpop.f32.mrb[37].mxu1  ;;  %v2300_v28 = vsel %vm494_vm4, %v6291_v27, -inf  ;;  %v2567_v6 = vsub.f32 %v4073_v14, %v4725_v38 }
0x131d   :  { %v2565_v50 = vsub.f32 %v2551_v32, %v4724_v19  ;;  %v4074_v2 = vpop.f32.mrb[38].mxu1  ;;  %2301 = vmax.xlane.f32.xlu1 %v2300_v28 }
0x131e   :  { %v2554_v26 = vpop.f32.mrb[39].mxu1  ;;  %v6317_v40 = vsub.f32 %v2567_v6, %v5341_v5 }
0x131f   :  { %v6306_v13 = vsub.f32 %v2565_v50, %v5328_v57  ;;  %v2566_v46 = vsub.f32 %v2554_v26, %v4726_v31  ;;  %2304 = vmax.xlane.f32.xlu0 %v2303_v60 }
0x1320   :  { %v2577_v10 = vsel %vm494_vm4, %v6317_v40, -inf }
0x1321   :  { %v6312_v18 = vsub.f32 %v2566_v46, %v5333_v63  ;;  %v2571_v61 = vsel %vm494_vm4, %v6306_v13, -inf }
0x1323   :  { %2572 = vmax.xlane.f32.xlu0 %v2571_v61  ;;  %v2574_v51 = vsel %vm494_vm4, %v6312_v18, -inf }
0x1324   :  { %2575 = vmax.xlane.f32.xlu1 %v2574_v51 }
0x1327   :  { %2578 = vmax.xlane.f32.xlu0 %v2577_v10 }
0x13a8   :  { %v2299_v24 = vpop.xlane.xlu0 %2298 }
0x13a9   :  { %v2306_v36 = vsub.f32 %v6282_v17, %v2299_v24 }
0x13aa   :  { %v2302_v62 = vpop.xlane.xlu1 %2301 }
0x13ab   :  { %v2309_v43 = vmul.f32 1.442695, %v2306_v36  ;;  %v2307_v0 = vsub.f32 %v6291_v27, %v2302_v62 }
0x13ac   :  { %v2305_v30 = vpop.xlane.xlu0 %2304 }
0x13ad   :  { %4619 = vpow2.f32 %v2309_v43  ;;  %v2311_v8 = vmul.f32 1.442695, %v2307_v0  ;;  %v2308_v56 = vsub.f32 %v6288_v55, %v2305_v30 }
0x13af   :  { %4621 = vpow2.f32 %v2311_v8  ;;  %v2313_v12 = vmul.f32 1.442695, %v2308_v56 }
0x13b0   :  { %v6326_v11 = vpop.xlane.xlu0 %2572 }
0x13b1   :  { %4623 = vpow2.f32 %v2313_v12  ;;  %v2580_v42 = vsub.f32 %v6306_v13, %v6326_v11  ;;  %v6330_v41 = vpop.xlane.xlu1 %2575 }
0x13b2   :  { %v2581_v14 = vsub.f32 %v6312_v18, %v6330_v41 }
0x13b3   :  { %v2583_v32 = vmul.f32 1.442695, %v2580_v42 }
0x13b4   :  { %v2585_v28 = vmul.f32 1.442695, %v2581_v14  ;;  %v6334_v19 = vpop.xlane.xlu0 %2578 }
0x13b5   :  { %4625 = vpow2.f32 %v2583_v32  ;;  %v2582_v50 = vsub.f32 %v6317_v40, %v6334_v19 }
0x13b6   :  { %4627 = vpow2.f32 %v2585_v28 }
0x13b7   :  { %v4620_v2 = vpop.eup %4619  ;;  %v2587_v38 = vmul.f32 1.442695, %v2582_v50 }
0x13b8   :  { %v2315_v6 = vsel %vm494_vm4, %v4620_v2, 0.0 }
0x13b9   :  { %v4622_v26 = vpop.eup %4621  ;;  %4629 = vpow2.f32 %v2587_v38  ;;  %2316 = vadd.xlane.f32.xlu1 %v2315_v6 }
0x13ba   :  { %v2318_v60 = vsel %vm494_vm4, %v4622_v26, 0.0 }
0x13bb   :  { %v4624_v31 = vpop.eup %4623  ;;  %2319 = vadd.xlane.f32.xlu0 %v2318_v60 }
0x13bc   :  { %v2321_v46 = vsel %vm494_vm4, %v4624_v31, 0.0 }
0x13bd   :  { %2322 = vadd.xlane.f32.xlu1 %v2321_v46 }
0x13bf   :  { %v4626_v61 = vpop.eup %4625 }
0x13c0   :  { %v4628_v51 = vpop.eup %4627  ;;  %v2589_v10 = vsel %vm494_vm4, %v4626_v61, 0.0 }
0x13c1   :  { %2590 = vadd.xlane.f32.xlu0 %v2589_v10  ;;  %v2592_v36 = vsel %vm494_vm4, %v4628_v51, 0.0 }
0x13c2   :  { %2593 = vadd.xlane.f32.xlu1 %v2592_v36 }
0x13c3   :  { %v4630_v43 = vpop.eup %4629 }
0x13c4   :  { %v2595_v0 = vsel %vm494_vm4, %v4630_v43, 0.0 }
0x13c5   :  { %2596 = vadd.xlane.f32.xlu0 %v2595_v0 }
0x1446   :  { %v2317_v8 = vpop.xlane.xlu1 %2316 }
0x1447   :  { %4631 = vlog2.f32 %v2317_v8 }
0x1448   :  { %v2320_v56 = vpop.xlane.xlu0 %2319 }
0x1449   :  { %4633 = vlog2.f32 %v2320_v56 }
0x144a   :  { %v2323_v12 = vpop.xlane.xlu1 %2322 }
0x144b   :  { %4635 = vlog2.f32 %v2323_v12 }
0x144e   :  { %v2591_v42 = vpop.xlane.xlu0 %2590 }
0x144f   :  { %4637 = vlog2.f32 %v2591_v42  ;;  %v2594_v14 = vpop.xlane.xlu1 %2593 }
0x1450   :  { %4639 = vlog2.f32 %v2594_v14 }
0x1451   :  { %v4632_v32 = vpop.eup %4631 }
0x1452   :  { %v2325_v28 = vmul.f32 0.6931472, %v4632_v32  ;;  %v2597_v50 = vpop.xlane.xlu0 %2596 }
0x1453   :  { %v4634_v2 = vpop.eup %4633  ;;  %4641 = vlog2.f32 %v2597_v50 }
0x1454   :  { %v2330_v38 = vadd.f32 %v2325_v28, %v2299_v24  ;;  %v2327_v6 = vmul.f32 0.6931472, %v4634_v2 }
0x1455   :  { %v4636_v26 = vpop.eup %4635 }
0x1456   :  { %v2331_v60 = vadd.f32 %v2327_v6, %v2302_v62  ;;  %v2329_v31 = vmul.f32 0.6931472, %v4636_v26  ;;  %v2333_v46 = vsub.f32 %v6282_v17, %v2330_v38 }
0x1458   :  { %v2332_v61 = vadd.f32 %v2329_v31, %v2305_v30  ;;  %v2336_v51 = vsub.f32 %v2333_v46, %v5328_v57  ;;  %v2334_v10 = vsub.f32 %v6291_v27, %v2331_v60 }
0x1459   :  { %v4638_v36 = vpop.eup %4637 }
0x145a   :  { %v4640_v43 = vpop.eup %4639  ;;  %v2599_v0 = vmul.f32 0.6931472, %v4638_v36  ;;  %v2339_v8 = vsel %vm494_vm4, %v2336_v51, -inf  ;;  %v2337_v56 = vsub.f32 %v2334_v10, %v5333_v63  ;;  %v2335_v24 = vsub.f32 %v6288_v55, %v2332_v61 }
0x145b   :  { %v2601_v12 = vmul.f32 0.6931472, %v4640_v43  ;;  %2340 = vmax.xlane.f32.xlu1 %v2339_v8 }
0x145c   :  { %v2604_v62 = vadd.f32 %v2599_v0, %v6326_v11  ;;  %v2342_v17 = vsel %vm494_vm4, %v2337_v56, -inf  ;;  %v2338_v30 = vsub.f32 %v2335_v24, %v5341_v5 }
0x145d   :  { %v4642_v42 = vpop.eup %4641  ;;  %v2605_v27 = vadd.f32 %v2601_v12, %v6330_v41  ;;  %2343 = vmax.xlane.f32.xlu0 %v2342_v17 }
0x145e   :  { %v2603_v14 = vmul.f32 0.6931472, %v4642_v42  ;;  %v2345_v32 = vsel %vm494_vm4, %v2338_v30, -inf  ;;  %v2607_v28 = vsub.f32 %v6306_v13, %v2604_v62 }
0x145f   :  { %2346 = vmax.xlane.f32.xlu1 %v2345_v32  ;;  %v2608_v55 = vsub.f32 %v6312_v18, %v2605_v27 }
0x1460   :  { %v2606_v50 = vadd.f32 %v2603_v14, %v6334_v19  ;;  %v2610_v11 = vsub.f32 %v2607_v28, %v5328_v57 }
0x1461   :  { %v2611_v2 = vsub.f32 %v2608_v55, %v5333_v63 }
0x1462   :  { %v2613_v38 = vsel %vm494_vm4, %v2610_v11, -inf  ;;  %v2609_v6 = vsub.f32 %v6317_v40, %v2606_v50 }
0x1463   :  { %2614 = vmax.xlane.f32.xlu0 %v2613_v38  ;;  %v2616_v41 = vsel %vm494_vm4, %v2611_v2, -inf }
0x1464   :  { %2617 = vmax.xlane.f32.xlu1 %v2616_v41  ;;  %v2612_v26 = vsub.f32 %v2609_v6, %v5341_v5 }
0x1466   :  { %v2619_v13 = vsel %vm494_vm4, %v2612_v26, -inf }
0x1467   :  { %2620 = vmax.xlane.f32.xlu0 %v2619_v13 }
0x14e8   :  { %v2341_v18 = vpop.xlane.xlu1 %2340 }
0x14e9   :  { %v2348_v60 = vsub.f32 %v2336_v51, %v2341_v18 }
0x14ea   :  { %v2344_v19 = vpop.xlane.xlu0 %2343 }
0x14eb   :  { %v2351_v31 = vmul.f32 1.442695, %v2348_v60  ;;  %v2349_v57 = vsub.f32 %v2337_v56, %v2344_v19  ;;  %v4727_v19 = vld [vmem:[%s6901_s3 + $0x48] sm:$0xff] }
0x14ec   :  { %v2347_v46 = vpop.xlane.xlu1 %2346 }
0x14ed   :  { %4643 = vpow2.f32 %v2351_v31  ;;  %v2353_v63 = vmul.f32 1.442695, %v2349_v57  ;;  %v2350_v61 = vsub.f32 %v2338_v30, %v2347_v46  ;;  %v6408_v57 = vld [vmem:[%s6901_s3 + $0x50] sm:$0xff] }
0x14ef   :  { %4645 = vpow2.f32 %v2353_v63  ;;  %v2355_v40 = vmul.f32 1.442695, %v2350_v61  ;;  %v4729_v61 = vld [vmem:[%s6901_s3 + $0x20] sm:$0xff] }
0x14f0   :  { %v2615_v10 = vpop.xlane.xlu0 %2614 }
0x14f1   :  { %4647 = vpow2.f32 %v2355_v40  ;;  %v2622_v36 = vsub.f32 %v2610_v11, %v2615_v10  ;;  %v2618_v43 = vpop.xlane.xlu1 %2617 }
0x14f2   :  { %v2623_v0 = vsub.f32 %v2611_v2, %v2618_v43 }
0x14f3   :  { %v2625_v5 = vmul.f32 1.442695, %v2622_v36 }
0x14f4   :  { %v2627_v8 = vmul.f32 1.442695, %v2623_v0  ;;  %v2621_v24 = vpop.xlane.xlu0 %2620 }
0x14f5   :  { %4649 = vpow2.f32 %v2625_v5  ;;  %v2624_v12 = vsub.f32 %v2612_v26, %v2621_v24  ;;  %v4730_v5 = vld [vmem:[%s6901_s3 + $0x38] sm:$0xff] }
0x14f6   :  { %4651 = vpow2.f32 %v2627_v8 }
0x14f7   :  { %v4644_v51 = vpop.eup %4643  ;;  %v2629_v62 = vmul.f32 1.442695, %v2624_v12 }
0x14f8   :  { %v2357_v56 = vsel %vm494_vm4, %v4644_v51, 0.0 }
0x14f9   :  { %v4646_v17 = vpop.eup %4645  ;;  %4653 = vpow2.f32 %v2629_v62  ;;  %2358 = vadd.xlane.f32.xlu1 %v2357_v56  ;;  %v4731_v56 = vld [vmem:[%s6901_s3 + $0x30] sm:$0xff] }
0x14fa   :  { %v2360_v30 = vsel %vm494_vm4, %v4646_v17, 0.0 }
0x14fb   :  { %v4648_v42 = vpop.eup %4647  ;;  %2361 = vadd.xlane.f32.xlu0 %v2360_v30 }
0x14fc   :  { %v2363_v27 = vsel %vm494_vm4, %v4648_v42, 0.0 }
0x14fd   :  { %2364 = vadd.xlane.f32.xlu1 %v2363_v27 }
0x14ff   :  { %v4650_v14 = vpop.eup %4649 }
0x1500   :  { %v6368_v32 = vpop.eup %4651  ;;  %v2631_v28 = vsel %vm494_vm4, %v4650_v14, 0.0 }
0x1501   :  { %2632 = vadd.xlane.f32.xlu0 %v2631_v28  ;;  %v2634_v55 = vsel %vm494_vm4, %v6368_v32, 0.0 }
0x1502   :  { %2635 = vadd.xlane.f32.xlu1 %v2634_v55 }
0x1503   :  { %v6373_v50 = vpop.eup %4653 }
0x1504   :  { %v2637_v11 = vsel %vm494_vm4, %v6373_v50, 0.0 }
0x1505   :  { %2638 = vadd.xlane.f32.xlu0 %v2637_v11 }
0x1513   :  { %2431 = vrot.lane.b32.xlu1 %v5418_v34, %s4996_s15 }
0x1517   :  { %2433 = vrot.lane.b32.xlu1 %v6107_v16, %s4996_s15 }
0x151b   :  { %2705 = vrot.lane.b32.xlu0 %v5418_v34, %s4997_s30  ;;  %2707 = vrot.lane.b32.xlu1 %v6107_v16, %s4997_s30 }
0x151f   :  { %2435 = vrot.lane.b32.xlu0 %v6104_v20, %s4996_s15  ;;  %2709 = vrot.lane.b32.xlu1 %v6104_v20, %s4997_s30 }
0x1523   :  { %2437 = vrot.lane.b32.xlu0 %v6119_v37, %s4996_s15  ;;  %2711 = vrot.lane.b32.xlu1 %v6119_v37, %s4997_s30 }
0x1527   :  { %2439 = vrot.lane.b32.xlu0 %v6142_v21, %s4996_s15  ;;  %2713 = vrot.lane.b32.xlu1 %v6142_v21, %s4997_s30 }
0x1586   :  { %v2359_v34 = vpop.xlane.xlu1 %2358 }
0x1587   :  { %4655 = vrcp.f32 %v2359_v34 }
0x1588   :  { %v2362_v16 = vpop.xlane.xlu0 %2361 }
0x1589   :  { %4657 = vrcp.f32 %v2362_v16 }
0x158a   :  { %v2365_v2 = vpop.xlane.xlu1 %2364 }
0x158b   :  { %4659 = vrcp.f32 %v2365_v2 }
0x158e   :  { %v2633_v38 = vpop.xlane.xlu0 %2632 }
0x158f   :  { %4661 = vrcp.f32 %v2633_v38  ;;  %v2636_v20 = vpop.xlane.xlu1 %2635 }
0x1590   :  { %4663 = vrcp.f32 %v2636_v20 }
0x1591   :  { %v4656_v6 = vpop.eup %4655 }
0x1592   :  { %v6397_v41 = vmul.f32 %v4656_v6, %v4644_v51  ;;  %v2639_v37 = vpop.xlane.xlu0 %2638 }
0x1593   :  { %v4658_v26 = vpop.eup %4657  ;;  %4665 = vrcp.f32 %v2639_v37  ;;  %v2432_v13 = vpop.permute.xlu1 %2431  ;;  %v4733_v37 = vld [vmem:[%s6901_s3 + $0x40] sm:$0xff] }
0x1594   :  { %v6399_v18 = vmul.f32 %v4658_v26, %v4646_v17  ;;  %4053 = vmatprep.subr.bf16.mxu0 %v2432_v13  ;;  %v2381_v31 = vmul.f32 %v4727_v19, %v6397_v41  ;;  %v2375_v63 = vmul.f32 %v6125_v45, %v6397_v41  ;;  %v2378_v17 = vmul.f32 %v4731_v56, %v6397_v41 }
0x1595   :  { %v4660_v21 = vpop.eup %4659  ;;  %4054 = vmatpush3.bf16.msra.mxu0 %v2432_v13 }
0x1596   :  { %v2706_v60 = vpop.permute.xlu0 %2705  ;;  %v2382_v46 = vmul.f32 %v6408_v57, %v6399_v18  ;;  %v2376_v40 = vmul.f32 %v4729_v61, %v6399_v18  ;;  %v6418_v10 = vmul.f32 %v4660_v21, %v4648_v42  ;;  %v2379_v8 = vmul.f32 %v4730_v5, %v6399_v18 }
0x1597   :  { %4075 = vmatprep.subr.bf16.mxu1 %v2706_v60  ;;  %v2434_v36 = vpop.permute.xlu1 %2433 }
0x1598   :  { %4055 = vmatprep.subr.bf16.mxu0 %v2434_v36  ;;  %4076 = vmatpush3.bf16.msra.mxu1 %v2706_v60  ;;  %v4395_v43 = vpack.i.bf16 %v2382_v46, %v2381_v31  ;;  %v4385_v0 = vpack.i.bf16 %v2376_v40, %v2375_v63  ;;  %v4390_v27 = vpack.i.bf16 %v2379_v8, %v2378_v17 }
0x1599   :  { %v4662_v24 = vpop.eup %4661  ;;  %4056 = vmatpush3.bf16.msra.mxu0 %v2434_v36  ;;  %v2380_v26 = vmul.f32 %v4733_v37, %v6418_v10  ;;  %v6902_v8 = vpack.i.bf16 %v5964_v48, %v5962_v58  ;;  %v4736_v48 = vld [vmem:[%s6901_s3] sm:$0xff] }
0x159a   :  { %v4664_v12 = vpop.eup %4663  ;;  %v6424_v51 = vmul.f32 %v4662_v24, %v4650_v14  ;;  %v2436_v62 = vpop.permute.xlu0 %2435  ;;  %4396 = vrot.lane.b32.xlu1 %v4395_v43, %s4994_s18  ;;  %4386 = vrot.lane.b32.xlu0 %v4385_v0, %s4993_s5  ;;  %v4732_v14 = vld [vmem:[%s6901_s3 + $0x28] sm:$0xff] }
0x159b   :  { %4057 = vmatprep.subr.bf16.mxu0 %v2436_v62  ;;  %v2708_v30 = vpop.permute.xlu1 %2707  ;;  %v6433_v42 = vmul.f32 %v4664_v12, %v6368_v32  ;;  %v2377_v28 = vmul.f32 %v4732_v14, %v6418_v10 }
0x159c   :  { %4077 = vmatprep.subr.bf16.mxu1 %v2708_v30  ;;  %v2649_v55 = vmul.f32 %v6125_v45, %v6424_v51  ;;  %v2652_v45 = vmul.f32 %v4731_v56, %v6424_v51  ;;  %v2655_v46 = vmul.f32 %v4727_v19, %v6424_v51 }
0x159d   :  { %v4666_v11 = vpop.eup %4665  ;;  %4058 = vmatpush3.bf16.msra.mxu0 %v2436_v62  ;;  %4078 = vmatpush3.bf16.msra.mxu1 %v2708_v30  ;;  %v2650_v38 = vmul.f32 %v4729_v61, %v6433_v42  ;;  %v2653_v31 = vmul.f32 %v4730_v5, %v6433_v42  ;;  %v4734_v61 = vld [vmem:[%s6901_s3 + $0x58] sm:$0xff]  ;;  %v2656_v19 = vmul.f32 %v6408_v57, %v6433_v42 }
0x159e   :  { %v6442_v34 = vmul.f32 %v4666_v11, %v6373_v50  ;;  %v2438_v16 = vpop.permute.xlu0 %2437  ;;  %4391 = vrot.lane.b32.xlu0 %v4390_v27, %s4992_s27  ;;  %v4400_v32 = vpack.i.bf16 %v2649_v55, %v2377_v28  ;;  %v4405_v60 = vpack.i.bf16 %v2652_v45, %v2380_v26  ;;  %v2383_v40 = vmul.f32 %v4734_v61, %v6418_v10 }
0x159f   :  { %4059 = vmatprep.subr.bf16.mxu0 %v2438_v16  ;;  %v2710_v2 = vpop.permute.xlu1 %2709  ;;  %v6903_v57 = vpack.i.bf16 %v5972_v39, %v5970_v25  ;;  %v2372_v25 = vmul.f32 %v4736_v48, %v6397_v41  ;;  %v6904_v11 = vmov 0.0  }
0x15a0   :  { %4401 = vrot.lane.b32.xlu1 %v4400_v32, %s4993_s5  ;;  %4079 = vmatprep.subr.bf16.mxu1 %v2710_v2  ;;  %v2651_v20 = vmul.f32 %v4732_v14, %v6442_v34  ;;  %v2654_v13 = vmul.f32 %v4733_v37, %v6442_v34  ;;  %v2657_v36 = vmul.f32 %v4734_v61, %v6442_v34 }
0x15a1   :  { %4060 = vmatpush3.bf16.msra.mxu0 %v2438_v16  ;;  %4080 = vmatpush3.bf16.msra.mxu1 %v2710_v2  ;;  %v4410_v0 = vpack.i.bf16 %v2655_v46, %v2383_v40  ;;  %v2646_v37 = vmul.f32 %v4736_v48, %v6424_v51  ;;  %v2824_v48 = vld [vmem:[#allocation2 + $0x10] sm:$0xff] }
0x15a2   :  { %v2440_v6 = vpop.permute.xlu0 %2439  ;;  %2441 = vrot.lane.b32.xlu0 %v6146_v47, %s4996_s15  ;;  %v4415_v50 = vpack.i.bf16 %v2651_v20, %v2650_v38  ;;  %v4420_v63 = vpack.i.bf16 %v2654_v13, %v2653_v31  ;;  %v4425_v5 = vpack.i.bf16 %v2657_v36, %v2656_v19  ;;  %v2822_v13 = vld [vmem:[#allocation2] sm:$0xff]  ;;  %s6905_s15 = sld [smem:[#allocation28_spill]] }
0x15a3   :  { %4061 = vmatprep.subr.bf16.mxu0 %v2440_v6  ;;  %v2712_v21 = vpop.permute.xlu1 %2711 }
0x15a4   :  { %4416 = vrot.lane.b32.xlu1 %v4415_v50, %s4993_s5  ;;  %4081 = vmatprep.subr.bf16.mxu1 %v2712_v21 }
0x15a5   :  { %4062 = vmatpush3.bf16.msra.mxu0 %v2440_v6  ;;  %4082 = vmatpush3.bf16.msra.mxu1 %v2712_v21  ;;  %v4737_v6 = vld [vmem:[%s6901_s3 + $0x10] sm:$0xff]  ;;  %v2823_v21 = vld [vmem:[#allocation2 + $0x8] sm:$0xff] }
0x15a6   :  { %4406 = vrot.lane.b32.xlu0 %v4405_v60, %s4992_s27  ;;  %v2374_v50 = vmul.f32 %v4737_v6, %v6418_v10  ;;  %v2648_v60 = vmul.f32 %v4737_v6, %v6442_v34 }
0x15a7   :  { %v2714_v43 = vpop.permute.xlu1 %2713 }
0x15a8   :  { %4421 = vrot.lane.b32.xlu1 %v4420_v63, %s4992_s27  ;;  %4083 = vmatprep.subr.bf16.mxu1 %v2714_v43  ;;  %s4998_s27 = smov 16  }
0x15a9   :  { %4084 = vmatpush3.bf16.msra.mxu1 %v2714_v43 }
0x15aa   :  { %4411 = vrot.lane.b32.xlu0 %v4410_v0, %s4994_s18 }
0x15ac   :  { %4426 = vrot.lane.b32.xlu1 %v4425_v5, %s4994_s18 }
0x15ae   :  { %2715 = vrot.lane.b32.xlu0 %v6146_v47, %s4997_s30 }
0x15b0   :  { %4431 = vrot.lane.b32.xlu1 %v4430_v29, %s4980_s4  ;;  %v4735_v29 = vld [vmem:[%s6901_s3 + $0x8] sm:$0xff] }
0x15b1   :  { %v2373_v58 = vmul.f32 %v4735_v29, %v6399_v18  ;;  %v2647_v36 = vmul.f32 %v4735_v29, %v6433_v42 }
0x15b2   :  { %4436 = vrot.lane.b32.xlu0 %v6902_v8, %s4998_s27  ;;  %v2829_v8 = vpack.c.bf16 %v2823_v21, %v2822_v13 }
0x15b4   :  { %4441 = vrot.lane.b32.xlu1 %v6903_v57, %s4993_s5 }
0x15b6   :  { %4446 = vrot.lane.b32.xlu0 %v4445_v54, %s4980_s4 }
0x160c   :  { %v4387_v47 = vpop.permute.xlu0 %4386  ;;  %v4397_v15 = vpop.permute.xlu1 %4396 }
0x160d   :  { %v4389_v24 = vunpack.i.h.bf16 %v4387_v47  ;;  %v4388_v35 = vunpack.i.l.bf16 %v4387_v47  ;;  %v4399_v62 = vunpack.i.h.bf16 %v4397_v15  ;;  %v4398_v56 = vunpack.i.l.bf16 %v4397_v15 }
0x160f   :  { %v2421_v53 = vsel %vm494_vm4, %v2373_v58, %v4389_v24  ;;  %v2420_v54 = vsel %vm494_vm4, %v2372_v25, %v4388_v35  ;;  %v2825_v25 = vld [vmem:[#allocation2 + $0x18] sm:$0xff] }
0x1610   :  { %v4392_v39 = vpop.permute.xlu0 %4391 }
0x1611   :  { %v4394_v12 = vunpack.i.h.bf16 %v4392_v39  ;;  %v4393_v7 = vunpack.i.l.bf16 %v4392_v39 }
0x1612   :  { %v4402_v17 = vpop.permute.xlu1 %4401 }
0x1613   :  { %v2423_v30 = vsel %vm636_vm5, %v2420_v54, %v4393_v7  ;;  %v2424_v18 = vsel %vm636_vm5, %v2421_v53, %v4394_v12  ;;  %v4403_v32 = vunpack.i.l.bf16 %v4402_v17  ;;  %v4404_v2 = vunpack.i.h.bf16 %v4402_v17 }
0x1614   :  { %v2442_v27 = vpop.permute.xlu0 %2441  ;;  %v2426_v14 = vsel %vm640_vm6, %v2423_v30, %v4398_v56  ;;  %v2427_v28 = vsel %vm640_vm6, %v2424_v18, %v4399_v62  ;;  %v2830_v30 = vpack.c.bf16 %v2825_v25, %v2824_v48 }
0x1615   :  { %4063 = vmatprep.subr.bf16.mxu0 %v2442_v27  ;;  %v2429_v41 = vpack.c.bf16 %v2427_v28, %v2426_v14  ;;  %v2422_v40 = vsel %vm494_vm4, %v2374_v50, %v4403_v32  ;;  %v2694_v19 = vsel %vm494_vm4, %v2646_v37, %v4404_v2 }
0x1616   :  { %4064 = vmatpush3.bf16.msra.mxu0 %v2442_v27  ;;  %v4417_v55 = vpop.permute.xlu1 %4416 }
0x1617   :  { %4065 = vmatprep.mubr.msk.bf16.mxu0 %vm682_vm7, %v2429_v41  ;;  %4091 = vmatprep.subr.bf16.mxu0 %v6904_v11  ;;  %v4419_v38 = vunpack.i.h.bf16 %v4417_v55  ;;  %v4418_v26 = vunpack.i.l.bf16 %v4417_v55 }
0x1618   :  { %v4407_v16 = vpop.permute.xlu0 %4406 }
0x1619   :  { %v4408_v20 = vunpack.i.l.bf16 %v4407_v16  ;;  %v4409_v31 = vunpack.i.h.bf16 %v4407_v16  ;;  %v2696_v10 = vsel %vm494_vm4, %v2648_v60, %v4419_v38  ;;  %v2695_v34 = vsel %vm494_vm4, %v2647_v36, %v4418_v26 }
0x161a   :  { %v4422_v45 = vpop.permute.xlu1 %4421 }
0x161b   :  { %v4424_v46 = vunpack.i.h.bf16 %v4422_v45  ;;  %v4423_v63 = vunpack.i.l.bf16 %v4422_v45  ;;  %v2425_v51 = vsel %vm636_vm5, %v2422_v40, %v4408_v20  ;;  %v2697_v35 = vsel %vm636_vm5, %v2694_v19, %v4409_v31 }
0x161c   :  { %v4412_v61 = vpop.permute.xlu0 %4411 }
0x161d   :  { %v4414_v43 = vunpack.i.h.bf16 %v4412_v61  ;;  %v4413_v0 = vunpack.i.l.bf16 %v4412_v61  ;;  %v2698_v42 = vsel %vm636_vm5, %v2695_v34, %v4423_v63  ;;  %v2699_v15 = vsel %vm636_vm5, %v2696_v10, %v4424_v46 }
0x161e   :  { %v4427_v5 = vpop.permute.xlu1 %4426 }
0x161f   :  { %v2428_v57 = vsel %vm640_vm6, %v2425_v51, %v4413_v0  ;;  %v4429_v47 = vunpack.i.h.bf16 %v4427_v5  ;;  %v4428_v24 = vunpack.i.l.bf16 %v4427_v5  ;;  %v2700_v39 = vsel %vm640_vm6, %v2697_v35, %v4414_v43 }
0x1620   :  { %v2430_v29 = vpack.c.bf16 %v2428_v57, %v2428_v57  ;;  %v2716_v58 = vpop.permute.xlu0 %2715 }
0x1621   :  { %v2701_v12 = vsel %vm640_vm6, %v2698_v42, %v4428_v24  ;;  %v2702_v7 = vsel %vm640_vm6, %v2699_v15, %v4429_v47  ;;  %4085 = vmatprep.subr.bf16.mxu1 %v2716_v58 }
0x1622   :  { %v2703_v53 = vpack.c.bf16 %v2701_v12, %v2700_v39  ;;  %v2704_v54 = vpack.c.bf16 %v2702_v7, %v2702_v7  ;;  %4086 = vmatpush3.bf16.msra.mxu1 %v2716_v58  ;;  %v4432_v62 = vpop.permute.xlu1 %4431  ;;  %4066 = vmatmul.mubr.msk.bf16.vlgmr.msra.gmra.mrb[52].mxu0 %vm682_vm7, %v2430_v29 }
0x1623   :  { %v4434_v56 = vunpack.i.h.bf16 %v4432_v62  ;;  %v4433_v17 = vunpack.i.l.bf16 %v4432_v62  ;;  %4092 = vmatpush3.bf16.msra.mxu0 %v2829_v8  ;;  %4095 = vmatprep.mubr.msk.bf16.mxu0 %vm4988_vm0, %v6904_v11 }
0x1624   :  { %v4437_v18 = vpop.permute.xlu0 %4436  ;;  %4087 = vmatprep.mubr.msk.bf16.mxu1 %vm682_vm7, %v2703_v53  ;;  %4093 = vmatprep.subr.bf16.mxu0 %v6904_v11 }
0x1625   :  { %v1616_v27 = vsel %vm426_vm2, %v5569_v9, %v4434_v56  ;;  %v1615_v14 = vsel %vm426_vm2, %v5567_v4, %v4433_v17  ;;  %v4439_v28 = vunpack.i.h.bf16 %v4437_v18  ;;  %v4438_v41 = vunpack.i.l.bf16 %v4437_v18  ;;  %4088 = vmatmul.mubr.msk.bf16.vlgmr.msra.gmra.mrb[40].mxu1 %vm682_vm7, %v2704_v54  ;;  %4107 = vmatprep.subr.bf16.mxu1 %v6904_v11 }
0x1626   :  { %v4442_v55 = vpop.permute.xlu1 %4441  ;;  %4111 = vmatprep.mubr.msk.bf16.mxu1 %vm4988_vm0, %v6904_v11 }
0x1627   :  { %v1619_v16 = vsel %vm1618_vm8, %v1615_v14, %v4438_v41  ;;  %v1620_v32 = vsel %vm1618_vm8, %v1616_v27, %v4439_v28  ;;  %v4444_v2 = vunpack.i.h.bf16 %v4442_v55  ;;  %v4443_v38 = vunpack.i.l.bf16 %v4442_v55  ;;  %4094 = vmatpush3.bf16.msra.mxu0 %v2830_v30 }
0x1628   :  { %4123 = vmatprep.subr.bf16.mxu0 %v6904_v11  ;;  %v4447_v10 = vpop.permute.xlu0 %4446 }
0x1629   :  { %v1622_v4 = vsel %vm494_vm4, %v1619_v16, %v4443_v38  ;;  %v1623_v9 = vsel %vm494_vm4, %v1620_v32, %v4444_v2  ;;  %v4449_v51 = vunpack.i.h.bf16 %v4447_v10  ;;  %v4448_v5 = vunpack.i.l.bf16 %v4447_v10  ;;  %v4740_v16 = vld [vmem:[%s6898_s29 + $0x10] sm:$0xff] }
0x162a   :  { %v2826_v20 = vpack.c.bf16 %v1623_v9, %v1622_v4  ;;  %v3003_v10 = vld [vmem:[#allocation8 + $0x8] sm:$0xff] }
0x162b   :  { %v2813_v24 = vsel %vm426_vm2, %v6261_v49, %v4449_v51  ;;  %v1617_v35 = vsel %vm426_vm2, %v5565_v3, %v4448_v5  ;;  %v3004_v5 = vld [vmem:[#allocation8 + $0x10] sm:$0xff] }
0x162c   :  { %4096 = vmatmul.mubr.msk.bf16.vlgmr.msra.gmra.mrb[56].mxu0 %vm198_vm1, %v2826_v20  ;;  %v4741_v20 = vld [vmem:[%s6898_s29 + $0x18] sm:$0xff] }
0x162d   :  { %4099 = vmatprep.mubr.msk.bf16.mxu0 %vm4988_vm0, %v6904_v11 }
0x16f5   :  { %v4067_v45 = vpop.f32.mrb[52].mxu0 }
0x16f6   :  { %v2489_v6 = vpop.f32.mrb[53].mxu0 }
0x16f7   :  { %v4450_v50 = vpack.i.bf16 %v2489_v6, %v5960_v23  ;;  %v4068_v37 = vpop.f32.mrb[54].mxu0 }
0x16f8   :  { %v2492_v26 = vpop.f32.mrb[55].mxu0  ;;  %v4089_v13 = vpop.f32.mrb[40].mxu1 }
0x16f9   :  { %v4465_v21 = vpack.i.bf16 %v4067_v45, %v2492_v26  ;;  %v2763_v60 = vpop.f32.mrb[41].mxu1  ;;  %4451 = vrot.lane.b32.xlu1 %v4450_v50, %s4998_s27 }
0x16fa   :  { %v4455_v31 = vpack.i.bf16 %v2763_v60, %v5968_v33  ;;  %v4090_v46 = vpop.f32.mrb[42].mxu1  ;;  %v4738_v33 = vld [vmem:[%s6898_s29] sm:$0xff] }
0x16fb   :  { %v2766_v63 = vpop.f32.mrb[43].mxu1 }
0x16fc   :  { %v4470_v61 = vpack.i.bf16 %v4089_v13, %v2766_v63  ;;  %4456 = vrot.lane.b32.xlu0 %v4455_v31, %s4993_s5  ;;  %v4742_v31 = vld [vmem:[%s6898_s29 + $0x20] sm:$0xff] }
0x16fd   :  { %4461 = vrot.lane.b32.xlu1 %v4460_v1, %s4980_s4 }
0x16ff   :  { %v2874_v23 = vpop.f32.mrb[56].mxu0 }
0x1700   :  { %4466 = vrot.lane.b32.xlu0 %v4465_v21, %s4998_s27  ;;  %v4097_v40 = vpop.f32.mrb[57].mxu0  ;;  %v2875_v0 = vadd.f32 %v4738_v33, %v2874_v23  ;;  %v4743_v23 = vld [vmem:[%s6898_s29 + $0x28] sm:$0xff] }
0x1701   :  { %4471 = vrot.lane.b32.xlu1 %v4470_v61, %s4993_s5  ;;  %v2877_v36 = vpop.f32.mrb[58].mxu0 }
0x1702   :  { %v4098_v43 = vpop.f32.mrb[59].mxu0  ;;  %v2899_v19 = vsel %vm198_vm1, %v2875_v0, 0.0  ;;  %v2878_v44 = vadd.f32 %v4739_v22, %v2877_v36 }
0x1704   :  { %v2902_v1 = vsel %vm198_vm1, %v2878_v44, 0.0 }
0x171f   :  { %2900 = vadd.xlane.f32.xlu0 %v2899_v19 }
0x1725   :  { %2903 = vadd.xlane.f32.xlu1 %v2902_v1  ;;  %v3002_v1 = vld [vmem:[#allocation8] sm:$0xff] }
0x1726   :  { %v3009_v51 = vpack.c.bf16 %v3003_v10, %v3002_v1 }
0x1728   :  { %4108 = vmatpush3.bf16.msra.mxu1 %v3009_v51 }
0x1729   :  { %4109 = vmatprep.subr.bf16.mxu1 %v6904_v11 }
0x176b   :  { %v4452_v8 = vpop.permute.xlu1 %4451 }
0x176c   :  { %v4454_v34 = vunpack.i.h.bf16 %v4452_v8  ;;  %v4453_v57 = vunpack.i.l.bf16 %v4452_v8  ;;  %v3005_v8 = vld [vmem:[#allocation8 + $0x18] sm:$0xff] }
0x176e   :  { %v4457_v47 = vpop.permute.xlu0 %4456  ;;  %v2816_v58 = vsel %vm1618_vm8, %v2813_v24, %v4454_v34  ;;  %v1621_v48 = vsel %vm1618_vm8, %v1617_v35, %v4453_v57  ;;  %v3010_v34 = vpack.c.bf16 %v3005_v8, %v3004_v5 }
0x176f   :  { %v4459_v42 = vunpack.i.h.bf16 %v4457_v47  ;;  %v4458_v15 = vunpack.i.l.bf16 %v4457_v47  ;;  %v4462_v29 = vpop.permute.xlu1 %4461 }
0x1770   :  { %v4464_v25 = vunpack.i.h.bf16 %v4462_v29  ;;  %v4463_v39 = vunpack.i.l.bf16 %v4462_v29  ;;  %4110 = vmatpush3.bf16.msra.mxu1 %v3010_v34 }
0x1771   :  { %v1624_v12 = vsel %vm494_vm4, %v1621_v48, %v4458_v15  ;;  %v2819_v7 = vsel %vm494_vm4, %v2816_v58, %v4459_v42  ;;  %4143 = vmatprep.subr.bf16.mxu1 %v6904_v11 }
0x1772   :  { %v2827_v53 = vpack.c.bf16 %v2819_v7, %v1624_v12  ;;  %v4467_v54 = vpop.permute.xlu0 %4466  ;;  %v2815_v3 = vsel %vm426_vm2, %v6259_v52, %v4464_v25  ;;  %v2814_v17 = vsel %vm426_vm2, %v6263_v59, %v4463_v39 }
0x1773   :  { %v4469_v62 = vunpack.i.h.bf16 %v4467_v54  ;;  %v4468_v49 = vunpack.i.l.bf16 %v4467_v54  ;;  %v4472_v56 = vpop.permute.xlu1 %4471 }
0x1774   :  { %v4474_v30 = vunpack.i.h.bf16 %v4472_v56  ;;  %v4473_v18 = vunpack.i.l.bf16 %v4472_v56  ;;  %4100 = vmatmul.mubr.msk.bf16.gmra.mrb[60].mxu0 %vm198_vm1, %v2827_v53 }
0x1775   :  { %v2818_v27 = vsel %vm1618_vm8, %v2815_v3, %v4469_v62  ;;  %v2817_v14 = vsel %vm1618_vm8, %v2814_v17, %v4468_v49  ;;  %4103 = vmatprep.mubr.msk.bf16.mxu0 %vm4988_vm0, %v6904_v11 }
0x1776   :  { %v2820_v28 = vsel %vm494_vm4, %v2817_v14, %v4473_v18  ;;  %v2821_v41 = vsel %vm494_vm4, %v2818_v27, %v4474_v30 }
0x1777   :  { %v2828_v55 = vpack.c.bf16 %v2821_v41, %v2820_v28 }
0x177c   :  { %4104 = vmatmul.mubr.msk.bf16.gmra.mrb[64].mxu0 %vm198_vm1, %v2828_v55 }
0x177d   :  { %4131 = vmatprep.mubr.msk.bf16.mxu0 %vm4988_vm0, %v6904_v11 }
0x17ac   :  { %v2901_v52 = vpop.xlane.xlu0 %2900 }
0x17ad   :  { %v2918_v9 = vmul.f32 0.03125, %v2901_v52  ;;  %v6632_v52 = vld [vmem:[#allocation5] ss:$0 sm:$0xff] }
0x17af   :  { %v6591_v26 = vsub.f32 %v2875_v0, %v2918_v9 }
0x17b1   :  { %v2930_v33 = vmul.f32 %v6591_v26, %v6591_v26 }
0x17b2   :  { %v2904_v38 = vpop.xlane.xlu1 %2903 }
0x17b3   :  { %v2919_v37 = vmul.f32 0.03125, %v2904_v38  ;;  %v2936_v22 = vsel %vm198_vm1, %v2930_v33, 0.0  ;;  %v3703_v38 = vld [vmem:[#allocation7] ss:$0 sm:$0xff] }
0x17b5   :  { %v6594_v60 = vsub.f32 %v2878_v44, %v2919_v37 }
0x17b7   :  { %v2931_v19 = vmul.f32 %v6594_v60, %v6594_v60 }
0x17b9   :  { %v2939_v44 = vsel %vm198_vm1, %v2931_v19, 0.0 }
0x1847   :  { %v2882_v59 = vpop.f32.mrb[60].mxu0 }
0x1848   :  { %v2883_v32 = vadd.f32 %v4740_v16, %v2882_v59  ;;  %v4101_v2 = vpop.f32.mrb[61].mxu0 }
0x1849   :  { %v2885_v4 = vpop.f32.mrb[62].mxu0 }
0x184a   :  { %v2886_v45 = vadd.f32 %v4741_v20, %v2885_v4  ;;  %v4102_v6 = vpop.f32.mrb[63].mxu0  ;;  %v2905_v50 = vsel %vm198_vm1, %v2883_v32, 0.0 }
0x184b   :  { %2906 = vadd.xlane.f32.xlu0 %v2905_v50  ;;  %v3138_v6 = vld [vmem:[%s6878_s13] sm:$0xff]  ;;  %v3139_v50 = vld [vmem:[%s6878_s13 + $0x8] sm:$0xff] }
0x184c   :  { %v2908_v13 = vsel %vm198_vm1, %v2886_v45, 0.0  ;;  %v3149_v37 = vpack.c.bf16 %v3139_v50, %v3138_v6 }
0x184e   :  { %4124 = vmatpush3.bf16.msra.mxu0 %v3149_v37 }
0x184f   :  { %2909 = vadd.xlane.f32.xlu0 %v2908_v13  ;;  %v2890_v21 = vpop.f32.mrb[64].mxu0  ;;  %4125 = vmatprep.subr.bf16.mxu0 %v6904_v11  ;;  %v3141_v13 = vld [vmem:[%s6878_s13 + $0x18] sm:$0xff] }
0x1850   :  { %v2891_v46 = vadd.f32 %v4742_v31, %v2890_v21  ;;  %v4105_v63 = vpop.f32.mrb[65].mxu0  ;;  %v3143_v31 = vld [vmem:[%s6878_s13 + $0x28] sm:$0xff] }
0x1851   :  { %v2893_v61 = vpop.f32.mrb[66].mxu0 }
0x1852   :  { %v2894_v40 = vadd.f32 %v4743_v23, %v2893_v61  ;;  %v4106_v36 = vpop.f32.mrb[67].mxu0  ;;  %v2911_v43 = vsel %vm198_vm1, %v2891_v46, 0.0  ;;  %v3144_v23 = vld [vmem:[%s6878_s13 + $0x30] sm:$0xff] }
0x1853   :  { %2912 = vadd.xlane.f32.xlu1 %v2911_v43 }
0x1854   :  { %v2914_v0 = vsel %vm198_vm1, %v2894_v40, 0.0 }
0x1855   :  { %2915 = vadd.xlane.f32.xlu0 %v2914_v0 }
0x1857   :  { %2937 = vadd.xlane.f32.xlu1 %v2936_v22 }
0x1859   :  { %2940 = vadd.xlane.f32.xlu0 %v2939_v44 }
0x18d8   :  { %v2907_v57 = vpop.xlane.xlu0 %2906 }
0x18d9   :  { %v2920_v47 = vmul.f32 0.03125, %v2907_v57 }
0x18db   :  { %v6612_v24 = vsub.f32 %v2883_v32, %v2920_v47 }
0x18dc   :  { %v2910_v35 = vpop.xlane.xlu0 %2909 }
0x18dd   :  { %v2921_v42 = vmul.f32 0.03125, %v2910_v35  ;;  %v2932_v15 = vmul.f32 %v6612_v24, %v6612_v24 }
0x18df   :  { %v6616_v29 = vsub.f32 %v2886_v45, %v2921_v42  ;;  %v2942_v58 = vsel %vm198_vm1, %v2932_v15, 0.0 }
0x18e0   :  { %2943 = vadd.xlane.f32.xlu1 %v2942_v58  ;;  %v2913_v48 = vpop.xlane.xlu1 %2912 }
0x18e1   :  { %v2922_v25 = vmul.f32 0.03125, %v2913_v48  ;;  %v2933_v39 = vmul.f32 %v6616_v29, %v6616_v29 }
0x18e2   :  { %v2916_v12 = vpop.xlane.xlu0 %2915 }
0x18e3   :  { %v6621_v7 = vsub.f32 %v2891_v46, %v2922_v25  ;;  %v2923_v53 = vmul.f32 0.03125, %v2916_v12  ;;  %v2945_v54 = vsel %vm198_vm1, %v2933_v39, 0.0 }
0x18e4   :  { %v2938_v62 = vpop.xlane.xlu1 %2937  ;;  %2946 = vadd.xlane.f32.xlu0 %v2945_v54 }
0x18e5   :  { %v6624_v49 = vsub.f32 %v2894_v40, %v2923_v53  ;;  %v2954_v56 = vmul.f32 0.03125, %v2938_v62  ;;  %v2934_v3 = vmul.f32 %v6621_v7, %v6621_v7  ;;  %v3145_v40 = vld [vmem:[%s6878_s13 + $0x38] sm:$0xff] }
0x18e6   :  { %v2941_v17 = vpop.xlane.xlu0 %2940  ;;  %v3152_v43 = vpack.c.bf16 %v3145_v40, %v3144_v23 }
0x18e7   :  { %v2960_v30 = vadd.f32 1e-12, %v2954_v56  ;;  %v2955_v18 = vmul.f32 0.03125, %v2941_v17  ;;  %v2948_v27 = vsel %vm198_vm1, %v2934_v3, 0.0  ;;  %v2935_v14 = vmul.f32 %v6624_v49, %v6624_v49 }
0x18e8   :  { %2949 = vadd.xlane.f32.xlu1 %v2948_v27 }
0x18e9   :  { %4667 = vrsqrt.f32 %v2960_v30  ;;  %v2961_v28 = vadd.f32 1e-12, %v2955_v18  ;;  %v2951_v41 = vsel %vm198_vm1, %v2935_v14, 0.0 }
0x18ea   :  { %2952 = vadd.xlane.f32.xlu0 %v2951_v41 }
0x18eb   :  { %4669 = vrsqrt.f32 %v2961_v28 }
0x18f3   :  { %v4668_v55 = vpop.eup %4667 }
0x18f4   :  { %v2972_v59 = vmul.f32 %v4668_v55, %v6591_v26  ;;  %v3140_v26 = vld [vmem:[%s6878_s13 + $0x10] sm:$0xff] }
0x18f5   :  { %v4670_v16 = vpop.eup %4669  ;;  %v3150_v21 = vpack.c.bf16 %v3141_v13, %v3140_v26 }
0x18f6   :  { %v2984_v32 = vmul.f32 %v6632_v52, %v2972_v59  ;;  %v2973_v2 = vmul.f32 %v4670_v16, %v6594_v60  ;;  %v3142_v60 = vld [vmem:[%s6878_s13 + $0x20] sm:$0xff] }
0x18f7   :  { %4126 = vmatpush3.bf16.msra.mxu0 %v3150_v21  ;;  %v3151_v46 = vpack.c.bf16 %v3143_v31, %v3142_v60 }
0x18f8   :  { %v2985_v4 = vmul.f32 %v6632_v52, %v2973_v2  ;;  %v6638_v9 = vadd.f32 %v3703_v38, %v2984_v32  ;;  %4127 = vmatprep.subr.bf16.mxu0 %v6904_v11 }
0x18fa   :  { %v6640_v20 = vadd.f32 %v3703_v38, %v2985_v4 }
0x18fb   :  { %4128 = vmatpush3.bf16.msra.mxu0 %v3151_v46 }
0x18fc   :  { %v3006_v45 = vpack.c.bf16 %v6640_v20, %v6638_v9  ;;  %4129 = vmatprep.subr.bf16.mxu0 %v6904_v11 }
0x18fe   :  { %4112 = vmatmul.mubr.msk.bf16.vlgmr.msra.gmra.mrb[44].mxu1 %vm198_vm1, %v3006_v45 }
0x18ff   :  { %4115 = vmatprep.mubr.msk.bf16.mxu1 %vm4988_vm0, %v6904_v11  ;;  %4130 = vmatpush3.bf16.msra.mxu0 %v3152_v43 }
0x1900   :  { %4183 = vmatprep.subr.bf16.mxu0 %v6904_v11 }
0x196d   :  { %v2944_v63 = vpop.xlane.xlu1 %2943 }
0x196e   :  { %v2956_v61 = vmul.f32 0.03125, %v2944_v63 }
0x1970   :  { %v2962_v36 = vadd.f32 1e-12, %v2956_v61 }
0x1971   :  { %v2947_v33 = vpop.xlane.xlu0 %2946 }
0x1972   :  { %4671 = vrsqrt.f32 %v2962_v36  ;;  %v2957_v0 = vmul.f32 0.03125, %v2947_v33 }
0x1974   :  { %v2963_v19 = vadd.f32 1e-12, %v2957_v0 }
0x1975   :  { %v2950_v22 = vpop.xlane.xlu1 %2949 }
0x1976   :  { %4673 = vrsqrt.f32 %v2963_v19  ;;  %v2958_v44 = vmul.f32 0.03125, %v2950_v22 }
0x1977   :  { %v2953_v1 = vpop.xlane.xlu0 %2952 }
0x1978   :  { %v2964_v10 = vadd.f32 1e-12, %v2958_v44  ;;  %v2959_v51 = vmul.f32 0.03125, %v2953_v1 }
0x197a   :  { %4675 = vrsqrt.f32 %v2964_v10  ;;  %v2965_v5 = vadd.f32 1e-12, %v2959_v51 }
0x197c   :  { %v4672_v8 = vpop.eup %4671  ;;  %4677 = vrsqrt.f32 %v2965_v5 }
0x197d   :  { %v2974_v34 = vmul.f32 %v4672_v8, %v6612_v24 }
0x197f   :  { %v2986_v35 = vmul.f32 %v6632_v52, %v2974_v34 }
0x1980   :  { %v4674_v57 = vpop.eup %4673 }
0x1981   :  { %v2975_v47 = vmul.f32 %v4674_v57, %v6616_v29  ;;  %v6680_v48 = vadd.f32 %v3703_v38, %v2986_v35 }
0x1983   :  { %v2987_v42 = vmul.f32 %v6632_v52, %v2975_v47 }
0x1984   :  { %v4676_v15 = vpop.eup %4675 }
0x1985   :  { %v2976_v58 = vmul.f32 %v4676_v15, %v6621_v7  ;;  %v6682_v25 = vadd.f32 %v3703_v38, %v2987_v42 }
0x1986   :  { %v4678_v39 = vpop.eup %4677 }
0x1987   :  { %v2977_v12 = vmul.f32 %v4678_v39, %v6624_v49  ;;  %v3007_v24 = vpack.c.bf16 %v6682_v25, %v6680_v48  ;;  %v2988_v29 = vmul.f32 %v6632_v52, %v2976_v58  ;;  %v3704_v49 = vld [vmem:[#allocation10] ss:$0 sm:$0xff] }
0x1989   :  { %4116 = vmatmul.mubr.msk.bf16.gmra.mrb[48].mxu1 %vm198_vm1, %v3007_v24  ;;  %v2989_v53 = vmul.f32 %v6632_v52, %v2977_v12  ;;  %v6694_v54 = vadd.f32 %v3703_v38, %v2988_v29 }
0x198a   :  { %4119 = vmatprep.mubr.msk.bf16.mxu1 %vm4988_vm0, %v6904_v11 }
0x198b   :  { %v6692_v7 = vadd.f32 %v3703_v38, %v2989_v53 }
0x198d   :  { %v3008_v62 = vpack.c.bf16 %v6692_v7, %v6694_v54 }
0x1991   :  { %4120 = vmatmul.mubr.msk.bf16.gmra.mrb[52].mxu1 %vm198_vm1, %v3008_v62 }
0x1992   :  { %4149 = vmatprep.mubr.msk.bf16.mxu1 %vm4988_vm0, %v6904_v11 }
0x19d1   :  { %v3061_v56 = vpop.f32.mrb[44].mxu1 }
0x19d2   :  { %v3062_v3 = vadd.f32 %v3704_v49, %v3061_v56  ;;  %v4113_v17 = vpop.f32.mrb[45].mxu1 }
0x19d3   :  { %v3064_v30 = vpop.f32.mrb[46].mxu1 }
0x19d4   :  { %v3084_v18 = vmul.f32 %v3062_v3, %v3062_v3  ;;  %v3065_v27 = vadd.f32 %v3704_v49, %v3064_v30  ;;  %v4114_v14 = vpop.f32.mrb[47].mxu1 }
0x19d6   :  { %v3090_v28 = vmul.f32 %v3084_v18, %v3062_v3  ;;  %v3085_v41 = vmul.f32 %v3065_v27, %v3065_v27 }
0x19d8   :  { %v3096_v55 = vmul.f32 0.044715, %v3090_v28  ;;  %v3091_v52 = vmul.f32 %v3085_v41, %v3065_v27 }
0x19da   :  { %v3102_v59 = vadd.f32 %v3096_v55, %v3062_v3  ;;  %v3097_v16 = vmul.f32 0.044715, %v3091_v52 }
0x19dc   :  { %v3108_v32 = vmul.f32 0.7978846, %v3102_v59  ;;  %v3103_v2 = vadd.f32 %v3097_v16, %v3065_v27 }
0x19de   :  { %4679 = vtanh.f32 %v3108_v32  ;;  %v3109_v38 = vmul.f32 0.7978846, %v3103_v2 }
0x19e0   :  { %4681 = vtanh.f32 %v3109_v38 }
0x19e8   :  { %v4680_v4 = vpop.eup %4679 }
0x19e9   :  { %v3120_v45 = vadd.f32 1.0, %v4680_v4 }
0x19ea   :  { %v4682_v6 = vpop.eup %4681 }
0x19eb   :  { %v3126_v50 = vmul.f32 0.5, %v3120_v45  ;;  %v3121_v37 = vadd.f32 1.0, %v4682_v6  ;;  %v3708_v6 = vld [vmem:[#allocation11] ss:$0 sm:$0xff] }
0x19ed   :  { %v3127_v26 = vmul.f32 0.5, %v3121_v37  ;;  %v3132_v13 = vmul.f32 %v3126_v50, %v3062_v3 }
0x19ef   :  { %v3133_v21 = vmul.f32 %v3127_v26, %v3065_v27 }
0x19f1   :  { %v3146_v60 = vpack.c.bf16 %v3133_v21, %v3132_v13 }
0x19f3   :  { %4132 = vmatmul.mubr.msk.bf16.vlgmr.msra.gmra.mrb[68].mxu0 %vm3160_vm9, %v3146_v60 }
0x19f4   :  { %4135 = vmatprep.mubr.msk.bf16.mxu0 %vm4988_vm0, %v6904_v11 }
0x1a5c   :  { %v3069_v31 = vpop.f32.mrb[48].mxu1 }
0x1a5d   :  { %v3070_v46 = vadd.f32 %v3704_v49, %v3069_v31  ;;  %v4117_v63 = vpop.f32.mrb[49].mxu1 }
0x1a5e   :  { %v3072_v61 = vpop.f32.mrb[50].mxu1 }
0x1a5f   :  { %v3086_v23 = vmul.f32 %v3070_v46, %v3070_v46  ;;  %v3073_v40 = vadd.f32 %v3704_v49, %v3072_v61  ;;  %v4118_v36 = vpop.f32.mrb[51].mxu1 }
0x1a61   :  { %v3092_v43 = vmul.f32 %v3086_v23, %v3070_v46  ;;  %v3087_v33 = vmul.f32 %v3073_v40, %v3073_v40 }
0x1a63   :  { %v3098_v0 = vmul.f32 0.044715, %v3092_v43  ;;  %v3093_v19 = vmul.f32 %v3087_v33, %v3073_v40 }
0x1a64   :  { %v3077_v22 = vpop.f32.mrb[52].mxu1 }
0x1a65   :  { %v3104_v44 = vadd.f32 %v3098_v0, %v3070_v46  ;;  %v3099_v1 = vmul.f32 0.044715, %v3093_v19  ;;  %v3078_v10 = vadd.f32 %v3704_v49, %v3077_v22  ;;  %v4121_v51 = vpop.f32.mrb[53].mxu1 }
0x1a66   :  { %v3080_v5 = vpop.f32.mrb[54].mxu1 }
0x1a67   :  { %v3110_v8 = vmul.f32 0.7978846, %v3104_v44  ;;  %v3105_v34 = vadd.f32 %v3099_v1, %v3073_v40  ;;  %v3088_v57 = vmul.f32 %v3078_v10, %v3078_v10  ;;  %v3081_v47 = vadd.f32 %v3704_v49, %v3080_v5  ;;  %v4122_v35 = vpop.f32.mrb[55].mxu1 }
0x1a69   :  { %4683 = vtanh.f32 %v3110_v8  ;;  %v3111_v42 = vmul.f32 0.7978846, %v3105_v34  ;;  %v3094_v15 = vmul.f32 %v3088_v57, %v3078_v10  ;;  %v3089_v58 = vmul.f32 %v3081_v47, %v3081_v47 }
0x1a6b   :  { %4685 = vtanh.f32 %v3111_v42  ;;  %v3100_v39 = vmul.f32 0.044715, %v3094_v15  ;;  %v3095_v12 = vmul.f32 %v3089_v58, %v3081_v47 }
0x1a6d   :  { %v3106_v24 = vadd.f32 %v3100_v39, %v3078_v10  ;;  %v3101_v29 = vmul.f32 0.044715, %v3095_v12 }
0x1a6f   :  { %v3112_v53 = vmul.f32 0.7978846, %v3106_v24  ;;  %v3107_v62 = vadd.f32 %v3101_v29, %v3081_v47 }
0x1a71   :  { %4687 = vtanh.f32 %v3112_v53  ;;  %v3113_v56 = vmul.f32 0.7978846, %v3107_v62 }
0x1a73   :  { %v4684_v3 = vpop.eup %4683  ;;  %4689 = vtanh.f32 %v3113_v56 }
0x1a74   :  { %v3122_v17 = vadd.f32 1.0, %v4684_v3 }
0x1a75   :  { %v4686_v30 = vpop.eup %4685 }
0x1a76   :  { %v3128_v18 = vmul.f32 0.5, %v3122_v17  ;;  %v3123_v49 = vadd.f32 1.0, %v4686_v30 }
0x1a78   :  { %v3129_v27 = vmul.f32 0.5, %v3123_v49  ;;  %v3134_v14 = vmul.f32 %v3128_v18, %v3070_v46 }
0x1a7a   :  { %v3135_v28 = vmul.f32 %v3129_v27, %v3073_v40 }
0x1a7b   :  { %v4688_v41 = vpop.eup %4687 }
0x1a7c   :  { %v3124_v55 = vadd.f32 1.0, %v4688_v41  ;;  %v3147_v52 = vpack.c.bf16 %v3135_v28, %v3134_v14 }
0x1a7d   :  { %v4690_v59 = vpop.eup %4689 }
0x1a7e   :  { %v3130_v16 = vmul.f32 0.5, %v3124_v55  ;;  %v3125_v32 = vadd.f32 1.0, %v4690_v59  ;;  %4136 = vmatmul.mubr.msk.bf16.gmra.mrb[72].mxu0 %vm3160_vm9, %v3147_v52 }
0x1a7f   :  { %4139 = vmatprep.mubr.msk.bf16.mxu0 %vm4988_vm0, %v6904_v11 }
0x1a80   :  { %v3131_v2 = vmul.f32 0.5, %v3125_v32  ;;  %v3136_v38 = vmul.f32 %v3130_v16, %v3078_v10 }
0x1a82   :  { %v3137_v4 = vmul.f32 %v3131_v2, %v3081_v47 }
0x1a84   :  { %v3148_v45 = vpack.c.bf16 %v3137_v4, %v3136_v38 }
0x1a86   :  { %4140 = vmatmul.mubr.msk.bf16.gmra.mrb[76].mxu0 %vm3160_vm9, %v3148_v45 }
0x1a87   :  { %4199 = vmatprep.mubr.msk.bf16.mxu0 %vm4988_vm0, %v6904_v11 }
0x1ac6   :  { %v3204_v50 = vpop.f32.mrb[68].mxu0 }
0x1ac7   :  { %v3205_v37 = vadd.f32 %v3708_v6, %v3204_v50  ;;  %v4133_v26 = vpop.f32.mrb[69].mxu0 }
0x1ac8   :  { %v3207_v13 = vpop.f32.mrb[70].mxu0 }
0x1ac9   :  { %v3227_v21 = vadd.f32 %v3205_v37, %v6638_v9  ;;  %v3208_v60 = vadd.f32 %v3708_v6, %v3207_v13  ;;  %v4134_v31 = vpop.f32.mrb[71].mxu0 }
0x1acb   :  { %v3228_v46 = vadd.f32 %v3208_v60, %v6640_v20  ;;  %v3235_v63 = vsel %vm198_vm1, %v3227_v21, 0.0 }
0x1acc   :  { %3236 = vadd.xlane.f32.xlu1 %v3235_v63 }
0x1acd   :  { %v3238_v61 = vsel %vm198_vm1, %v3228_v46, 0.0 }
0x1ace   :  { %3239 = vadd.xlane.f32.xlu0 %v3238_v61 }
0x1b51   :  { %v3212_v23 = vpop.f32.mrb[72].mxu0 }
0x1b52   :  { %v3213_v40 = vadd.f32 %v3708_v6, %v3212_v23  ;;  %v4137_v36 = vpop.f32.mrb[73].mxu0 }
0x1b53   :  { %v3215_v43 = vpop.f32.mrb[74].mxu0 }
0x1b54   :  { %v3229_v33 = vadd.f32 %v3213_v40, %v6680_v48  ;;  %v3216_v0 = vadd.f32 %v3708_v6, %v3215_v43  ;;  %v4138_v19 = vpop.f32.mrb[75].mxu0 }
0x1b56   :  { %v3230_v9 = vadd.f32 %v3216_v0, %v6682_v25  ;;  %v3241_v22 = vsel %vm198_vm1, %v3229_v33, 0.0 }
0x1b57   :  { %3242 = vadd.xlane.f32.xlu1 %v3241_v22 }
0x1b58   :  { %v3244_v20 = vsel %vm198_vm1, %v3230_v9, 0.0 }
0x1b59   :  { %v3237_v44 = vpop.xlane.xlu1 %3236  ;;  %3245 = vadd.xlane.f32.xlu0 %v3244_v20  ;;  %v3220_v1 = vpop.f32.mrb[76].mxu0 }
0x1b5a   :  { %v3253_v10 = vmul.f32 0.03125, %v3237_v44  ;;  %v3221_v51 = vadd.f32 %v3708_v6, %v3220_v1  ;;  %v4141_v5 = vpop.f32.mrb[77].mxu0 }
0x1b5b   :  { %v3240_v8 = vpop.xlane.xlu0 %3239  ;;  %v3223_v34 = vpop.f32.mrb[78].mxu0 }
0x1b5c   :  { %v3259_v57 = vsub.f32 %v3227_v21, %v3253_v10  ;;  %v3231_v48 = vadd.f32 %v3221_v51, %v6694_v54  ;;  %v3254_v47 = vmul.f32 0.03125, %v3240_v8  ;;  %v3224_v35 = vadd.f32 %v3708_v6, %v3223_v34  ;;  %v4142_v42 = vpop.f32.mrb[79].mxu0  ;;  %v3712_v21 = vld [vmem:[#allocation13] ss:$0 sm:$0xff] }
0x1b5e   :  { %v3260_v25 = vsub.f32 %v3228_v46, %v3254_v47  ;;  %v3232_v15 = vadd.f32 %v3224_v35, %v6692_v7  ;;  %v3247_v58 = vsel %vm198_vm1, %v3231_v48, 0.0  ;;  %v3265_v39 = vmul.f32 %v3259_v57, %v3259_v57  ;;  %v3713_v46 = vld [vmem:[#allocation14] ss:$0 sm:$0xff] }
0x1b5f   :  { %3248 = vadd.xlane.f32.xlu1 %v3247_v58 }
0x1b60   :  { %v3250_v12 = vsel %vm198_vm1, %v3232_v15, 0.0  ;;  %v3266_v24 = vmul.f32 %v3260_v25, %v3260_v25  ;;  %v3271_v29 = vsel %vm198_vm1, %v3265_v39, 0.0 }
0x1b61   :  { %3251 = vadd.xlane.f32.xlu0 %v3250_v12 }
0x1b62   :  { %v3274_v53 = vsel %vm198_vm1, %v3266_v24, 0.0 }
0x1b63   :  { %3272 = vadd.xlane.f32.xlu1 %v3271_v29 }
0x1b65   :  { %3275 = vadd.xlane.f32.xlu0 %v3274_v53 }
0x1be4   :  { %v3243_v54 = vpop.xlane.xlu1 %3242 }
0x1be5   :  { %v3255_v62 = vmul.f32 0.03125, %v3243_v54 }
0x1be6   :  { %v3246_v56 = vpop.xlane.xlu0 %3245 }
0x1be7   :  { %v3261_v3 = vsub.f32 %v3229_v33, %v3255_v62  ;;  %v3256_v17 = vmul.f32 0.03125, %v3246_v56 }
0x1be9   :  { %v3262_v7 = vsub.f32 %v3230_v9, %v3256_v17  ;;  %v3267_v30 = vmul.f32 %v3261_v3, %v3261_v3 }
0x1beb   :  { %v3277_v18 = vsel %vm198_vm1, %v3267_v30, 0.0  ;;  %v3268_v49 = vmul.f32 %v3262_v7, %v3262_v7  ;;  %v3715_v30 = vld [vmem:[%s6905_s15 + $0x8] sm:$0xff] }
0x1bec   :  { %3278 = vadd.xlane.f32.xlu1 %v3277_v18  ;;  %v3249_v27 = vpop.xlane.xlu1 %3248  ;;  %v3393_v18 = vpack.c.bf16 %v3715_v30, %v3715_v30 }
0x1bed   :  { %v3257_v14 = vmul.f32 0.03125, %v3249_v27  ;;  %v3280_v28 = vsel %vm198_vm1, %v3268_v49, 0.0  ;;  %v3717_v49 = vld [vmem:[%s6905_s15 + $0x10] sm:$0xff] }
0x1bee   :  { %3281 = vadd.xlane.f32.xlu0 %v3280_v28  ;;  %v3252_v41 = vpop.xlane.xlu0 %3251  ;;  %v3439_v27 = vpack.c.bf16 %v3717_v49, %v3717_v49 }
0x1bef   :  { %v3263_v55 = vsub.f32 %v3231_v48, %v3257_v14  ;;  %v3258_v52 = vmul.f32 0.03125, %v3252_v41  ;;  %v3719_v14 = vld [vmem:[%s6905_s15 + $0x18] sm:$0xff]  ;;  %v3544_v41 = vld [vmem:[%s6882_s17] sm:$0xff] }
0x1bf0   :  { %v3273_v59 = vpop.xlane.xlu1 %3272  ;;  %v3485_v28 = vpack.c.bf16 %v3719_v14, %v3719_v14 }
0x1bf1   :  { %v3264_v16 = vsub.f32 %v3232_v15, %v3258_v52  ;;  %v3289_v32 = vmul.f32 0.03125, %v3273_v59  ;;  %v3269_v2 = vmul.f32 %v3263_v55, %v3263_v55  ;;  %v3546_v59 = vld [vmem:[%s6882_s17 + $0x10] sm:$0xff] }
0x1bf2   :  { %v3276_v38 = vpop.xlane.xlu0 %3275 }
0x1bf3   :  { %v3295_v4 = vadd.f32 1e-12, %v3289_v32  ;;  %v3290_v45 = vmul.f32 0.03125, %v3276_v38  ;;  %v3283_v6 = vsel %vm198_vm1, %v3269_v2, 0.0  ;;  %v3270_v50 = vmul.f32 %v3264_v16, %v3264_v16  ;;  %v3548_v38 = vld [vmem:[%s6882_s17 + $0x20] sm:$0xff] }
0x1bf4   :  { %3284 = vadd.xlane.f32.xlu1 %v3283_v6 }
0x1bf5   :  { %4691 = vrsqrt.f32 %v3295_v4  ;;  %v3296_v37 = vadd.f32 1e-12, %v3290_v45  ;;  %v3286_v26 = vsel %vm198_vm1, %v3270_v50, 0.0  ;;  %v3549_v4 = vld [vmem:[%s6882_s17 + $0x28] sm:$0xff] }
0x1bf6   :  { %3287 = vadd.xlane.f32.xlu0 %v3286_v26  ;;  %v3563_v50 = vpack.c.bf16 %v3549_v4, %v3548_v38  ;;  %v3550_v26 = vld [vmem:[%s6882_s17 + $0x30] sm:$0xff] }
0x1bf7   :  { %4693 = vrsqrt.f32 %v3296_v37 }
0x1bff   :  { %v4692_v13 = vpop.eup %4691 }
0x1c00   :  { %v3307_v60 = vmul.f32 %v4692_v13, %v3259_v57  ;;  %v3551_v13 = vld [vmem:[%s6882_s17 + $0x38] sm:$0xff] }
0x1c01   :  { %v4694_v31 = vpop.eup %4693 }
0x1c02   :  { %v3308_v63 = vmul.f32 %v4694_v31, %v3260_v25  ;;  %v3319_v61 = vmul.f32 %v3712_v21, %v3307_v60  ;;  %v3552_v60 = vld [vmem:[%s6882_s17 + $0x40] sm:$0xff]  ;;  %v3553_v31 = vld [vmem:[%s6882_s17 + $0x48] sm:$0xff] }
0x1c04   :  { %v3320_v23 = vmul.f32 %v3712_v21, %v3308_v63  ;;  %v3331_v40 = vadd.f32 %v3713_v46, %v3319_v61  ;;  %v3565_v63 = vpack.c.bf16 %v3553_v31, %v3552_v60  ;;  %v3554_v61 = vld [vmem:[%s6882_s17 + $0x50] sm:$0xff] }
0x1c06   :  { %v3332_v36 = vadd.f32 %v3713_v46, %v3320_v23  ;;  %3337 = vst.msk [vmem:[%s6884_s19] sm:$0xff] %vm198_vm1, %v3331_v40  ;;  %v3555_v23 = vld [vmem:[%s6882_s17 + $0x58] sm:$0xff] }
0x1c08   :  { %3338 = vst.msk [vmem:[%s6884_s19 + $0x8] sm:$0xff] %vm198_vm1, %v3332_v36  ;;  %v6736_v43 = vpack.c.bf16 %v3332_v36, %v3331_v40 }
0x1c0a   :  { %4144 = vmatpush3.bf16.msra.mxu1 %v6736_v43 }
0x1c0b   :  { %4145 = vmatprep.subr.bf16.mxu1 %v6904_v11 }
0x1c79   :  { %v3279_v33 = vpop.xlane.xlu1 %3278 }
0x1c7a   :  { %v3291_v0 = vmul.f32 0.03125, %v3279_v33 }
0x1c7b   :  { %v3282_v19 = vpop.xlane.xlu0 %3281 }
0x1c7c   :  { %v3297_v9 = vadd.f32 1e-12, %v3291_v0  ;;  %v3292_v22 = vmul.f32 0.03125, %v3282_v19  ;;  %v3556_v0 = vld [vmem:[%s6882_s17 + $0x60] sm:$0xff]  ;;  %v3557_v19 = vld [vmem:[%s6882_s17 + $0x68] sm:$0xff] }
0x1c7e   :  { %4695 = vrsqrt.f32 %v3297_v9  ;;  %v3298_v20 = vadd.f32 1e-12, %v3292_v22  ;;  %v3567_v9 = vpack.c.bf16 %v3557_v19, %v3556_v0  ;;  %v3558_v22 = vld [vmem:[%s6882_s17 + $0x70] sm:$0xff] }
0x1c80   :  { %4697 = vrsqrt.f32 %v3298_v20  ;;  %v3559_v20 = vld [vmem:[%s6882_s17 + $0x78] sm:$0xff] }
0x1c81   :  { %v3285_v44 = vpop.xlane.xlu1 %3284 }
0x1c82   :  { %v3293_v1 = vmul.f32 0.03125, %v3285_v44 }
0x1c83   :  { %v3288_v10 = vpop.xlane.xlu0 %3287 }
0x1c84   :  { %v3299_v51 = vadd.f32 1e-12, %v3293_v1  ;;  %v3294_v5 = vmul.f32 0.03125, %v3288_v10  ;;  %v3568_v1 = vpack.c.bf16 %v3559_v20, %v3558_v22 }
0x1c86   :  { %4699 = vrsqrt.f32 %v3299_v51  ;;  %v3300_v8 = vadd.f32 1e-12, %v3294_v5 }
0x1c88   :  { %v4696_v34 = vpop.eup %4695  ;;  %4701 = vrsqrt.f32 %v3300_v8 }
0x1c89   :  { %v3309_v57 = vmul.f32 %v4696_v34, %v3261_v3  ;;  %v3343_v3 = vld [vmem:[%s6905_s15] sm:$0xff] }
0x1c8a   :  { %v4698_v48 = vpop.eup %4697 }
0x1c8b   :  { %v3310_v47 = vmul.f32 %v4698_v48, %v3262_v7  ;;  %v3321_v35 = vmul.f32 %v3712_v21, %v3309_v57  ;;  %v3344_v7 = vpack.c.bf16 %v3343_v3, %v3343_v3 }
0x1c8d   :  { %v3322_v42 = vmul.f32 %v3712_v21, %v3310_v47  ;;  %v3333_v25 = vadd.f32 %v3713_v46, %v3321_v35 }
0x1c8f   :  { %v3334_v15 = vadd.f32 %v3713_v46, %v3322_v42  ;;  %3339 = vst.msk [vmem:[%s6884_s19 + $0x10] sm:$0xff] %vm198_vm1, %v3333_v25 }
0x1c90   :  { %v4700_v58 = vpop.eup %4699 }
0x1c91   :  { %v3311_v39 = vmul.f32 %v4700_v58, %v3263_v55  ;;  %3340 = vst.msk [vmem:[%s6884_s19 + $0x18] sm:$0xff] %vm198_vm1, %v3334_v15  ;;  %v3346_v12 = vpack.c.bf16 %v3334_v15, %v3333_v25  ;;  %v3545_v55 = vld [vmem:[%s6882_s17 + $0x8] sm:$0xff] }
0x1c92   :  { %v4702_v24 = vpop.eup %4701  ;;  %v3561_v52 = vpack.c.bf16 %v3545_v55, %v3544_v41 }
0x1c93   :  { %v3312_v29 = vmul.f32 %v4702_v24, %v3264_v16  ;;  %4146 = vmatpush3.bf16.msra.mxu1 %v3346_v12  ;;  %v3323_v53 = vmul.f32 %v3712_v21, %v3311_v39  ;;  %v3547_v16 = vld [vmem:[%s6882_s17 + $0x18] sm:$0xff]  ;;  %v3721_v39 = vld [vmem:[#allocation16] ss:$0 sm:$0xff]  ;;  %s4999_s17 = smov [#allocation17]  }
0x1c94   :  { %4147 = vmatprep.subr.bf16.mxu1 %v6904_v11  ;;  %4184 = vmatpush3.bf16.msra.mxu0 %v3561_v52  ;;  %v3562_v2 = vpack.c.bf16 %v3547_v16, %v3546_v59 }
0x1c95   :  { %v3324_v54 = vmul.f32 %v3712_v21, %v3312_v29  ;;  %v3335_v62 = vadd.f32 %v3713_v46, %v3323_v53  ;;  %4185 = vmatprep.subr.bf16.mxu0 %v6904_v11  ;;  %v3564_v21 = vpack.c.bf16 %v3551_v13, %v3550_v26 }
0x1c97   :  { %v3336_v56 = vadd.f32 %v3713_v46, %v3324_v54  ;;  %3341 = vst.msk [vmem:[%s6884_s19 + $0x20] sm:$0xff] %vm198_vm1, %v3335_v62 }
0x1c98   :  { %4186 = vmatpush3.bf16.msra.mxu0 %v3562_v2 }
0x1c99   :  { %3342 = vst.msk [vmem:[%s6884_s19 + $0x28] sm:$0xff] %vm198_vm1, %v3336_v56  ;;  %v3347_v17 = vpack.c.bf16 %v3336_v56, %v3335_v62  ;;  %4187 = vmatprep.subr.bf16.mxu0 %v6904_v11 }
0x1c9b   :  { %4148 = vmatpush3.bf16.msra.mxu1 %v3347_v17 }
0x1c9c   :  { %4153 = vmatprep.subr.bf16.mxu1 %v6904_v11  ;;  %4188 = vmatpush3.bf16.msra.mxu0 %v3563_v50 }
0x1c9d   :  { %4189 = vmatprep.subr.bf16.mxu0 %v6904_v11 }
0x1c9e   :  { %4150 = vmatmul.mubr.msk.bf16.vlgmr.msra.gmra.mrb[56].mxu1 %vm636_vm5, %v3344_v7 }
0x1c9f   :  { %4154 = vmatpush3.bf16.msra.mxu1 %v6736_v43  ;;  %4159 = vmatprep.mubr.msk.bf16.mxu1 %vm4988_vm0, %v6904_v11 }
0x1ca0   :  { %4155 = vmatprep.subr.bf16.mxu1 %v6904_v11  ;;  %4190 = vmatpush3.bf16.msra.mxu0 %v3564_v21 }
0x1ca1   :  { %4191 = vmatprep.subr.bf16.mxu0 %v6904_v11 }
0x1ca3   :  { %4156 = vmatpush3.bf16.msra.mxu1 %v3346_v12 }
0x1ca4   :  { %4157 = vmatprep.subr.bf16.mxu1 %v6904_v11  ;;  %4192 = vmatpush3.bf16.msra.mxu0 %v3565_v63 }
0x1ca5   :  { %4193 = vmatprep.subr.bf16.mxu0 %v6904_v11 }
0x1ca7   :  { %4158 = vmatpush3.bf16.msra.mxu1 %v3347_v17 }
0x1ca8   :  { %4163 = vmatprep.subr.bf16.mxu1 %v6904_v11 }
0x1caa   :  { %4160 = vmatmul.mubr.msk.bf16.vlgmr.msra.gmra.mrb[60].mxu1 %vm636_vm5, %v3393_v18 }
0x1cab   :  { %4164 = vmatpush3.bf16.msra.mxu1 %v6736_v43  ;;  %4169 = vmatprep.mubr.msk.bf16.mxu1 %vm4988_vm0, %v6904_v11 }
0x1cac   :  { %4165 = vmatprep.subr.bf16.mxu1 %v6904_v11 }
0x1caf   :  { %4166 = vmatpush3.bf16.msra.mxu1 %v3346_v12 }
0x1cb0   :  { %4167 = vmatprep.subr.bf16.mxu1 %v6904_v11 }
0x1cb3   :  { %4168 = vmatpush3.bf16.msra.mxu1 %v3347_v17 }
0x1cb4   :  { %4173 = vmatprep.subr.bf16.mxu1 %v6904_v11 }
0x1cb6   :  { %4170 = vmatmul.mubr.msk.bf16.vlgmr.msra.gmra.mrb[64].mxu1 %vm636_vm5, %v3439_v27 }
0x1cb7   :  { %4174 = vmatpush3.bf16.msra.mxu1 %v6736_v43  ;;  %4179 = vmatprep.mubr.msk.bf16.mxu1 %vm4988_vm0, %v6904_v11  ;;  %v3566_v43 = vpack.c.bf16 %v3555_v23, %v3554_v61 }
0x1cb8   :  { %4175 = vmatprep.subr.bf16.mxu1 %v6904_v11 }
0x1cb9   :  { %4194 = vmatpush3.bf16.msra.mxu0 %v3566_v43 }
0x1cba   :  { %4195 = vmatprep.subr.bf16.mxu0 %v6904_v11 }
0x1cbb   :  { %4176 = vmatpush3.bf16.msra.mxu1 %v3346_v12 }
0x1cbc   :  { %4177 = vmatprep.subr.bf16.mxu1 %v6904_v11 }
0x1cbd   :  { %4196 = vmatpush3.bf16.msra.mxu0 %v3567_v9 }
0x1cbe   :  { %4197 = vmatprep.subr.bf16.mxu0 %v6904_v11 }
0x1cbf   :  { %4178 = vmatpush3.bf16.msra.mxu1 %v3347_v17 }
0x1cc1   :  { %4198 = vmatpush3.bf16.msra.mxu0 %v3568_v1 }
0x1cc2   :  { %4180 = vmatmul.mubr.msk.bf16.vlgmr.msra.gmra.mrb[68].mxu1 %vm636_vm5, %v3485_v28 }
0x1d71   :  { %v3385_v32 = vpop.f32.mrb[56].mxu1 }
0x1d72   :  { %v4151_v45 = vpop.f32.mrb[57].mxu1 }
0x1d73   :  { %v3388_v6 = vpop.f32.mrb[58].mxu1 }
0x1d74   :  { %v4152_v37 = vpop.f32.mrb[59].mxu1 }
0x1d7d   :  { %v3431_v46 = vpop.f32.mrb[60].mxu1 }
0x1d7e   :  { %3530 = vrot.lane.b32.xlu1 %v3431_v46, %s4991_s0  ;;  %v4161_v40 = vpop.f32.mrb[61].mxu1 }
0x1d7f   :  { %v3434_v36 = vpop.f32.mrb[62].mxu1 }
0x1d80   :  { %v4162_v33 = vpop.f32.mrb[63].mxu1 }
0x1d89   :  { %v3477_v44 = vpop.f32.mrb[64].mxu1 }
0x1d8a   :  { %3534 = vrot.lane.b32.xlu0 %v3477_v44, %s4990_s22  ;;  %v4171_v10 = vpop.f32.mrb[65].mxu1  ;;  %s3625_s22 = sshll.u32 %s4999_s17, 4  ;;  %s3626_s22 = int_to_ptr.vmem [resolvable:$true] %s3625_s22 }
0x1d8b   :  { %v3480_v51 = vpop.f32.mrb[66].mxu1  ;;  %p4947_p3 = scmp.lt.s32.totalorder %s3626_s22, %s3626_s22 }
0x1d8c   :  { %v4172_v5 = vpop.f32.mrb[67].mxu1 }
0x1d95   :  { %v3523_v8 = vpop.f32.mrb[68].mxu1 }
0x1d96   :  { %3538 = vrot.lane.b32.xlu1 %v3523_v8, %s4989_s7  ;;  %v4181_v11 = vpop.f32.mrb[69].mxu1  ;;  %s4942_s7 = scalar_lea.vmem %s3626_s22, 128 }
0x1d97   :  { %v3526_v34 = vpop.f32.mrb[70].mxu1  ;;  %p4943_p2 = scmp.ne.s32.totalorder %s3626_s22, %s4942_s7  ;;  %p4948_p4 = scmp.lt.s32.totalorder %s4942_s7, %s4942_s7 }
0x1d98   :  { %v4182_v57 = vpop.f32.mrb[71].mxu1 }
0x1d99   :  { %p4949_p5 = por %p4948_p4, %p4947_p3 }
0x1d9b   :  { %p4950_p6 = pnand %p4949_p5, %p4943_p2 }
0x1df0   :  { %v3531_v48 = vpop.permute.xlu1 %3530 }
0x1df1   :  { %v3541_v35 = vsel %vm198_vm1, %v3385_v32, %v3531_v48 }
0x1dfc   :  { %v3535_v47 = vpop.permute.xlu0 %3534 }
0x1dfd   :  { %v3542_v42 = vsel %vm3160_vm9, %v3541_v35, %v3535_v47 }
0x1e08   :  { %v3539_v25 = vpop.permute.xlu1 %3538 }
0x1e09   :  { %v3543_v15 = vsel %vm682_vm7, %v3542_v42, %v3539_v25 }
0x1e0a   :  { %v3560_v58 = vpack.c.bf16 %v3543_v15, %v3543_v15 }
0x1e0c   :  { %4200 = vmatmul.mubr.bf16.vlgmr.msra.gmra.mrb[80].mxu0 %v3560_v58 }
0x1edf   :  { %v3610_v12 = vpop.f32.mrb[80].mxu0 }
0x1ee0   :  { %v3611_v24 = vadd.f32 %v3721_v39, %v3610_v12  ;;  %v4201_v29 = vpop.f32.mrb[81].mxu0 }
0x1ee1   :  { %v3613_v53 = vpop.f32.mrb[82].mxu0 }
0x1ee2   :  { %3616 = vst.msk [vmem:[#allocation17] sm:$0xff] %vm198_vm1, %v3611_v24  ;;  %v4202_v54 = vpop.f32.mrb[83].mxu0 }
0x1ee3   :  { %4953 = shalt.err (!%p4950_p6)
}
0x1ee4   :  { %s4954_s5 = scalar_lea.hbm %s6885_s20, 128 }
0x1ee5   :  { %p4955_p7 = scmp.ne.s32.totalorder %s6885_s20, %s4954_s5  ;;  %p4958_p8 = scmp.lt.u32.totalorder %s4954_s5, %s6885_s20 }
0x1ee7   :  { %p4960_p9 = pnand %p4958_p8, %p4955_p7 }
0x1ee9   :  { %4963 = shalt.err (!%p4960_p9)
}
0x1eea   :  { %3628 = dma.vmem_to_hbm [thread:$0]  %s3626_s22, 128, %s6885_s20, [#allocation4]  }
0x1eeb   :  { %4974 = dma.done.wait [#allocation4], 128  }
0x1eec   :  { %4975 = vsyncadd [#allocation4], 4294967168 }
0x1eed   :  { %3634 = vsyncpa [#allocation3], 1 }
0x1eee   :  { %3635 = vsyncpa [#allocation6], 1 }
0x1eef   :  { %3636 = vsyncpa [#allocation9], 1 }
0x1ef0   :  { %3637 = vsyncpa [#allocation12], 1 }
0x1ef1   :  { %3638 = vsyncpa [#allocation15], 1 }
0x1ef2   :  { %3639 = vsyncpa [#allocation4], 1 }

</bundles_post_ra>
